<compile_context>
chip_gen: v5e
topology: v5e:2x2
jax: 0.10.0
libtpu: 0.0.40
codegen_flags: <defaults>
</compile_context>

<pallas_src>
import functools

import jax
import jax.numpy as jnp
from jax.experimental import pallas as pl
from jax.experimental.pallas import tpu as pltpu

OUT_FEATS = 16


# ----------------------------------------------------------------------------
# Static layout of the packed f32 parameter table (width = OUT_FEATS lanes).
# Every block starts at a multiple of 8 rows so in-kernel slices stay
# sublane-aligned.
# ----------------------------------------------------------------------------
def _round8(n):
    return -(-n // 8) * 8


def _param_layout(radius, layer_in_feats, out_feats=OUT_FEATS):
    row = 0

    def alloc(nrows):
        nonlocal row
        start = row
        row += _round8(nrows)
        return start

    layers = []
    for in_f in layer_in_feats:
        cores = []
        for _ in range(2):                      # g core, then lg core
            w_off = alloc((3 + radius) * in_f)  # stacked [prev;deg;rad_k...;fuse]
            bgb_off = alloc(3)                  # rows: b_sum, gamma, beta
            cores.append((w_off, bgb_off))
        layers.append(tuple(cores))
    w_out_off = alloc(out_feats)                # w_out padded to (16, 16)
    b_out_off = alloc(1)                        # b_out padded to (1, 16)
    return dict(layers=tuple(layers), w_out=w_out_off, b_out=b_out_off,
                total=row, in_feats=tuple(layer_in_feats))


# ----------------------------------------------------------------------------
# Fused Pallas kernel: entire LGNN forward
# ----------------------------------------------------------------------------
def lgnn_fused_kernel(A_g_ref, A_lg_ref, pm_ref, pmT_ref, tab_ref, out_ref,
                      Pg_ref, Plg_ref, *, radius, layout, out_feats):
    f32 = jnp.float32
    N = A_g_ref.shape[0]
    M = A_lg_ref.shape[0]
    half = out_feats // 2

    # in-degrees = row sums of the aggregation matrices (A[i,j]=1 iff j->i)
    deg_g = jnp.sum(A_g_ref[...], axis=1, keepdims=True)      # (N, 1)
    deg_lg = jnp.sum(A_lg_ref[...], axis=1, keepdims=True)    # (M, 1)

    # Layer-invariant powers A^(2^k), k = 0..radius-1, stacked by rows and
    # spilled to VMEM scratch so they are read per-use instead of being live
    # SSA values across the fully unrolled 3-layer body.
    def build_powers(A_ref, P_ref, n):
        P_ref[0:n, :] = A_ref[...]
        for k in range(1, radius):
            prev = P_ref[(k - 1) * n:k * n, :]
            P_ref[k * n:(k + 1) * n, :] = jnp.dot(
                prev, prev, preferred_element_type=f32)

    build_powers(A_g_ref, Pg_ref, N)
    build_powers(A_lg_ref, Plg_ref, M)

    # Hoisted constants (JAX does not CSE broadcast_in_dim / iota).
    relu_mask_g = jax.lax.broadcasted_iota(jnp.int32, (N, out_feats), 1) < half
    relu_mask_lg = jax.lax.broadcasted_iota(jnp.int32, (M, out_feats), 1) < half
    deg_g_b = jnp.broadcast_to(deg_g, (N, out_feats))
    deg_lg_b = jnp.broadcast_to(deg_lg, (M, out_feats))

    def bn_relu_half(pre, gamma, beta, relu_mask):
        # result = cat([pre[:, :half], relu(pre[:, half:])], 1), then
        # BatchNorm1d (training mode: batch stats, biased var, eps=1e-5).
        act = jnp.where(relu_mask, pre, jnp.maximum(pre, 0.0))
        inv_n = 1.0 / act.shape[0]
        s1 = jnp.sum(act, axis=0, keepdims=True)
        s2 = jnp.sum(act * act, axis=0, keepdims=True)
        mean = s1 * inv_n
        var = jnp.maximum(s2 * inv_n - mean * mean, 0.0)
        return (act - mean) * jax.lax.rsqrt(var + 1e-5) * gamma + beta

    def read_bgb(bgb_off):
        b_sum = tab_ref[bgb_off:bgb_off + 1, :]
        gamma = tab_ref[bgb_off + 1:bgb_off + 2, :]
        beta = tab_ref[bgb_off + 2:bgb_off + 3, :]
        return b_sum, gamma, beta

    # --- core step, in_feats == out_feats (layers 1, 2) ----------------------
    def core_step_wide(P_ref, feat_a, feat_b, deg_b, fuse_ref, w_off, bgb_off,
                       relu_mask):
        n = feat_a.shape[0]
        w_stack = tab_ref[w_off:w_off + (3 + radius) * out_feats, :]   # (96,16)
        b_sum, gamma, beta = read_bgb(bgb_off)
        # ONE stacked hop matmul: [A; A^2; A^4] @ feat_a -> (radius*n, 16)
        z_all = jnp.dot(P_ref[...], feat_a, preferred_element_type=f32)
        fuse_in = jnp.dot(fuse_ref[...], feat_b, preferred_element_type=f32)
        cols = [feat_a, deg_b * feat_a]
        cols += [z_all[k * n:(k + 1) * n, :] for k in range(radius)]
        cols += [fuse_in]
        x_cat = jnp.concatenate(cols, axis=1)               # (n, (3+radius)*16)
        pre = jnp.dot(x_cat, w_stack, preferred_element_type=f32) + b_sum
        return bn_relu_half(pre, gamma, beta, relu_mask)

    # --- core step, in_feats == 1 (layer 0): fold rank-1 weights into RHS ----
    def core_step_narrow(P_ref, feat_a, feat_b, deg_b, fuse_ref, w_off,
                         bgb_off, relu_mask):
        n = feat_a.shape[0]
        m = feat_b.shape[0]
        w0 = tab_ref[w_off:w_off + (3 + radius), :]          # (3+radius, 16)
        b_sum, gamma, beta = read_bgb(bgb_off)
        fa_b = jnp.broadcast_to(feat_a, (n, out_feats))
        fb_b = jnp.broadcast_to(feat_b, (m, out_feats))
        # prev / deg projections: pure VPU outer products
        pre = b_sum + fa_b * w0[0:1, :] + (deg_b * fa_b) * w0[1:2, :]
        # hop projections: P_k @ (feat_a * w_rad_k) -> 16-lane MXU outputs
        for k in range(radius):
            pre = pre + jnp.dot(P_ref[k * n:(k + 1) * n, :],
                                fa_b * w0[2 + k:3 + k, :],
                                preferred_element_type=f32)
        # fuse projection: pm_pd @ (feat_b * w_fuse)
        pre = pre + jnp.dot(fuse_ref[...],
                            fb_b * w0[2 + radius:3 + radius, :],
                            preferred_element_type=f32)
        return bn_relu_half(pre, gamma, beta, relu_mask)

    # --- unrolled 3-layer body ------------------------------------------------
    x, lg_x = deg_g, deg_lg
    for layer, in_f in enumerate(layout["in_feats"]):
        (gw, gb), (lw, lb) = layout["layers"][layer]
        step = core_step_narrow if in_f == 1 else core_step_wide
        next_x = step(Pg_ref, x, lg_x, deg_g_b, pm_ref, gw, gb, relu_mask_g)
        next_lg_x = step(Plg_ref, lg_x, x, deg_lg_b, pmT_ref, lw, lb,
                         relu_mask_lg)
        x, lg_x = next_x, next_lg_x

    # Final linear, padded to out_feats lanes (wrapper slices [:, :2]).
    w_out = tab_ref[layout["w_out"]:layout["w_out"] + out_feats, :]
    b_out = tab_ref[layout["b_out"]:layout["b_out"] + 1, :]
    out_ref[...] = jnp.dot(x, w_out, preferred_element_type=f32) + b_out


# ----------------------------------------------------------------------------
# Wrapper: pack parameters into one table, launch one fused pallas_call
# ----------------------------------------------------------------------------
def _pack_core(tab, p, radius, w_off, bgb_off):
    # Row order must match the kernel's column order:
    # [feat_a, deg*feat_a, z_0 .. z_{r-1}, fuse_in]
    w_stack = jnp.concatenate(
        [p["w_prev"], p["w_deg"]]
        + [p["w_rad"][k] for k in range(radius)]
        + [p["w_fuse"]], axis=0)
    b_sum = (p["b_prev"] + p["b_deg"]
             + jnp.sum(p["b_rad"], axis=0) + p["b_fuse"])
    tab = tab.at[w_off:w_off + w_stack.shape[0], :].set(w_stack)
    bgb = jnp.concatenate([b_sum, p["gamma"], p["beta"]], axis=0)
    tab = tab.at[bgb_off:bgb_off + 3, :].set(bgb)
    return tab


def lgnn_forward(A_g, A_lg, pm_pd, params, *, radius, out_feats=OUT_FEATS):
    N = A_g.shape[0]
    M = A_lg.shape[0]
    in_feats = tuple(lp["g"]["w_prev"].shape[0] for lp in params["layers"])
    layout = _param_layout(radius, in_feats, out_feats)

    # One f32 parameter table instead of ~30 tiny inputs.
    tab = jnp.zeros((layout["total"], out_feats), jnp.float32)
    for layer, lp in enumerate(params["layers"]):
        (gw, gb), (lw, lb) = layout["layers"][layer]
        tab = _pack_core(tab, lp["g"], radius, gw, gb)
        tab = _pack_core(tab, lp["lg"], radius, lw, lb)
    w_out_pad = jnp.zeros((out_feats, out_feats), jnp.float32)
    w_out_pad = w_out_pad.at[:, :params["w_out"].shape[1]].set(params["w_out"])
    b_out_pad = jnp.zeros((1, out_feats), jnp.float32)
    b_out_pad = b_out_pad.at[:, :params["b_out"].shape[1]].set(params["b_out"])
    tab = tab.at[layout["w_out"]:layout["w_out"] + out_feats, :].set(w_out_pad)
    tab = tab.at[layout["b_out"]:layout["b_out"] + 1, :].set(b_out_pad)

    inputs = [A_g.astype(jnp.float32), A_lg.astype(jnp.float32),
              pm_pd.astype(jnp.float32),
              jnp.transpose(pm_pd).astype(jnp.float32), tab]

    kernel = functools.partial(lgnn_fused_kernel, radius=radius,
                               layout=layout, out_feats=out_feats)
    out16 = pl.pallas_call(
        kernel,
        out_shape=jax.ShapeDtypeStruct((N, out_feats), jnp.float32),
        in_specs=[pl.BlockSpec(memory_space=pltpu.MemorySpace.VMEM)] * len(inputs),
        out_specs=pl.BlockSpec(memory_space=pltpu.MemorySpace.VMEM),
        scratch_shapes=[pltpu.VMEM((radius * N, N), jnp.float32),
                        pltpu.VMEM((radius * M, M), jnp.float32)],
        compiler_params=pltpu.CompilerParams(vmem_limit_bytes=32 * 1024 * 1024),
    )(*inputs)
    return out16[:, :2]


# ----------------------------------------------------------------------------
# Pure-JAX reference (literal translation of the PyTorch module) for checking
# ----------------------------------------------------------------------------
def lgnn_reference(A_g, A_lg, pm_pd, params, *, radius):
    def bn(x, gamma, beta):
        mean = jnp.mean(x, axis=0, keepdims=True)
        var = jnp.mean((x - mean) ** 2, axis=0, keepdims=True)
        return (x - mean) / jnp.sqrt(var + 1e-5) * gamma + beta

    def aggregate(A, z):
        zs = []
        z = A @ z
        zs.append(z)
        for i in range(radius - 1):
            for _ in range(2 ** i):
                z = A @ z
            zs.append(z)
        return zs

    def core(A, p, feat_a, feat_b, deg, fuse_mat):
        prev = feat_a @ p["w_prev"] + p["b_prev"]
        degp = (deg * feat_a) @ p["w_deg"] + p["b_deg"]
        hops = aggregate(A, feat_a)
        rad = sum(h @ p["w_rad"][k] + p["b_rad"][k] for k, h in enumerate(hops))
        fuse = (fuse_mat @ feat_b) @ p["w_fuse"] + p["b_fuse"]
        res = prev + degp + rad + fuse
        h = res.shape[1] // 2
        res = jnp.concatenate([res[:, :h], jnp.maximum(res[:, h:], 0.0)], 1)
        return bn(res, p["gamma"], p["beta"])

    deg_g = jnp.sum(A_g, axis=1, keepdims=True)
    deg_lg = jnp.sum(A_lg, axis=1, keepdims=True)
    x, lg_x = deg_g, deg_lg
    pmT = jnp.transpose(pm_pd)
    for lp in params["layers"]:
        nx = core(A_g, lp["g"], x, lg_x, deg_g, pm_pd)
        nlg = core(A_lg, lp["lg"], lg_x, x, deg_lg, pmT)
        x, lg_x = nx, nlg
    return x @ params["w_out"] + params["b_out"]


# ----------------------------------------------------------------------------
# Deterministic parameter initialization (matches PyTorch module shapes)
# ----------------------------------------------------------------------------
def init_linear(key, in_f, out_f):
    k1, k2 = jax.random.split(key)
    bound = 1.0 / (in_f ** 0.5)
    w = jax.random.uniform(k1, (in_f, out_f), jnp.float32, -bound, bound)
    b = jax.random.uniform(k2, (1, out_f), jnp.float32, -bound, bound)
    return w, b


def init_core(key, in_f, out_f, radius):
    keys = jax.random.split(key, 3 + radius)
    w_prev, b_prev = init_linear(keys[0], in_f, out_f)
    w_deg, b_deg = init_linear(keys[1], in_f, out_f)
    w_fuse, b_fuse = init_linear(keys[2], in_f, out_f)
    w_rads, b_rads = [], []
    for r in range(radius):
        w, b = init_linear(keys[3 + r], in_f, out_f)
        w_rads.append(w)
        b_rads.append(b)
    return dict(
        w_prev=w_prev, b_prev=b_prev,
        w_deg=w_deg, b_deg=b_deg,
        w_fuse=w_fuse, b_fuse=b_fuse,
        w_rad=jnp.stack(w_rads),                    # (radius, in_f, out_f)
        b_rad=jnp.stack(b_rads),                    # (radius, 1, out_f)
        gamma=jnp.ones((1, out_f), jnp.float32),    # BN weight init
        beta=jnp.zeros((1, out_f), jnp.float32),    # BN bias init
    )


def init_lgnn(key, radius):
    layer_dims = [(1, 16), (16, 16), (16, 16)]
    layers = []
    for in_f, out_f in layer_dims:
        key, kg, klg = jax.random.split(key, 3)
        layers.append(dict(g=init_core(kg, in_f, out_f, radius),
                           lg=init_core(klg, in_f, out_f, radius)))
    key, kout = jax.random.split(key)
    w_out, b_out = init_linear(kout, 16, 2)
    return dict(layers=layers, w_out=w_out, b_out=b_out)


# ----------------------------------------------------------------------------
if __name__ == "__main__":
    RADIUS = 3
    N = 64    # nodes of g
    M = 128   # nodes of line graph (directed edges of g)

    key = jax.random.PRNGKey(0)
    k_ag, k_alg, k_pm, k_params = jax.random.split(key, 4)

    # Synthetic aggregation matrices (A[i,j]=1 iff edge j->i) and incidence-
    # like pm_pd matrix of shape (N, M), as in the DGL LGNN tutorial.
    A_g = jax.random.bernoulli(k_ag, 0.15, (N, N)).astype(jnp.float32)
    A_lg = jax.random.bernoulli(k_alg, 0.08, (M, M)).astype(jnp.float32)
    pm_pd = jax.random.bernoulli(k_pm, 0.05, (N, M)).astype(jnp.float32)

    params = init_lgnn(k_params, RADIUS)

    fwd = jax.jit(functools.partial(lgnn_forward, radius=RADIUS))
    out = fwd(A_g, A_lg, pm_pd, params)
    jax.block_until_ready(out)
    assert out.shape == (N, 2) and out.dtype == jnp.float32

    # Tolerance check against the literal (serial message-passing) reference.
    ref = jax.jit(functools.partial(lgnn_reference, radius=RADIUS))(
        A_g, A_lg, pm_pd, params)
    jax.block_until_ready(ref)
    max_err = float(jnp.max(jnp.abs(out - ref)))
    assert max_err < 5e-2, f"kernel/reference mismatch: max abs err {max_err}"

    print("KERNEL_OK")
</pallas_src>

<mosaic_0001>
module attributes {stable_mosaic.version = 11 : i64} {
  func.func @lgnn_fused_kernel(%arg0: memref<64x64xf32, #tpu.memory_space<vmem>>, %arg1: memref<128x128xf32, #tpu.memory_space<vmem>>, %arg2: memref<64x128xf32, #tpu.memory_space<vmem>>, %arg3: memref<128x64xf32, #tpu.memory_space<vmem>>, %arg4: memref<472x16xf32, #tpu.memory_space<vmem>>, %arg5: memref<64x16xf32, #tpu.memory_space<vmem>>, %arg6: memref<192x64xf32, #tpu.memory_space<vmem>>, %arg7: memref<384x128xf32, #tpu.memory_space<vmem>>) attributes {dimension_semantics = [], scalar_prefetch = 0 : i64, scratch_operands = 2 : i64, tpu.core_type = #tpu.core_type<tc>} {
    %c0 = arith.constant 0 : index
    %c0_0 = arith.constant 0 : index
    %0 = vector.load %arg0[%c0, %c0_0] : memref<64x64xf32, #tpu.memory_space<vmem>>, vector<64x64xf32>
    %cst = arith.constant dense<0.000000e+00> : vector<64xf32>
    %1 = vector.multi_reduction <add>, %0, %cst [1] : vector<64x64xf32> to vector<64xf32>
    %2 = vector.shape_cast %1 : vector<64xf32> to vector<64x1xf32>
    %c0_1 = arith.constant 0 : index
    %c0_2 = arith.constant 0 : index
    %3 = vector.load %arg1[%c0_1, %c0_2] : memref<128x128xf32, #tpu.memory_space<vmem>>, vector<128x128xf32>
    %cst_3 = arith.constant dense<0.000000e+00> : vector<128xf32>
    %4 = vector.multi_reduction <add>, %3, %cst_3 [1] : vector<128x128xf32> to vector<128xf32>
    %5 = vector.shape_cast %4 : vector<128xf32> to vector<128x1xf32>
    %c0_4 = arith.constant 0 : index
    %c0_5 = arith.constant 0 : index
    %6 = vector.load %arg0[%c0_4, %c0_5] : memref<64x64xf32, #tpu.memory_space<vmem>>, vector<64x64xf32>
    %c0_6 = arith.constant 0 : index
    %c0_7 = arith.constant 0 : index
    %7 = vector.load %arg6[%c0_6, %c0_7] : memref<192x64xf32, #tpu.memory_space<vmem>>, vector<64x64xf32>
    tpu.vector_store %arg6[%c0_6, %c0_7], %6 {strides = array<i32>} : memref<192x64xf32, #tpu.memory_space<vmem>>, vector<64x64xf32>,
    %c0_8 = arith.constant 0 : index
    %c0_9 = arith.constant 0 : index
    %8 = vector.load %arg6[%c0_8, %c0_9] : memref<192x64xf32, #tpu.memory_space<vmem>>, vector<64x64xf32>
    %cst_10 = arith.constant dense<0.000000e+00> : vector<64x64xf32>
    %9 = tpu.matmul %8, %8, %cst_10 {dimension_numbers = #tpu.dot_dimension_numbers<[1], [0], [0], [1], [0, 0, 1, 1], [], []>} : vector<64x64xf32>, vector<64x64xf32>, vector<64x64xf32> -> vector<64x64xf32>
    %c64 = arith.constant 64 : index
    %c0_11 = arith.constant 0 : index
    %10 = vector.load %arg6[%c64, %c0_11] : memref<192x64xf32, #tpu.memory_space<vmem>>, vector<64x64xf32>
    tpu.vector_store %arg6[%c64, %c0_11], %9 {strides = array<i32>} : memref<192x64xf32, #tpu.memory_space<vmem>>, vector<64x64xf32>,
    %c64_12 = arith.constant 64 : index
    %c0_13 = arith.constant 0 : index
    %11 = vector.load %arg6[%c64_12, %c0_13] : memref<192x64xf32, #tpu.memory_space<vmem>>, vector<64x64xf32>
    %cst_14 = arith.constant dense<0.000000e+00> : vector<64x64xf32>
    %12 = tpu.matmul %11, %11, %cst_14 {dimension_numbers = #tpu.dot_dimension_numbers<[1], [0], [0], [1], [0, 0, 1, 1], [], []>} : vector<64x64xf32>, vector<64x64xf32>, vector<64x64xf32> -> vector<64x64xf32>
    %c128 = arith.constant 128 : index
    %c0_15 = arith.constant 0 : index
    %13 = vector.load %arg6[%c128, %c0_15] : memref<192x64xf32, #tpu.memory_space<vmem>>, vector<64x64xf32>
    tpu.vector_store %arg6[%c128, %c0_15], %12 {strides = array<i32>} : memref<192x64xf32, #tpu.memory_space<vmem>>, vector<64x64xf32>,
    %c0_16 = arith.constant 0 : index
    %c0_17 = arith.constant 0 : index
    %14 = vector.load %arg1[%c0_16, %c0_17] : memref<128x128xf32, #tpu.memory_space<vmem>>, vector<128x128xf32>
    %c0_18 = arith.constant 0 : index
    %c0_19 = arith.constant 0 : index
    %15 = vector.load %arg7[%c0_18, %c0_19] : memref<384x128xf32, #tpu.memory_space<vmem>>, vector<128x128xf32>
    tpu.vector_store %arg7[%c0_18, %c0_19], %14 {strides = array<i32>} : memref<384x128xf32, #tpu.memory_space<vmem>>, vector<128x128xf32>,
    %c0_20 = arith.constant 0 : index
    %c0_21 = arith.constant 0 : index
    %16 = vector.load %arg7[%c0_20, %c0_21] : memref<384x128xf32, #tpu.memory_space<vmem>>, vector<128x128xf32>
    %cst_22 = arith.constant dense<0.000000e+00> : vector<128x128xf32>
    %17 = tpu.matmul %16, %16, %cst_22 {dimension_numbers = #tpu.dot_dimension_numbers<[1], [0], [0], [1], [0, 0, 1, 1], [], []>} : vector<128x128xf32>, vector<128x128xf32>, vector<128x128xf32> -> vector<128x128xf32>
    %c128_23 = arith.constant 128 : index
    %c0_24 = arith.constant 0 : index
    %18 = vector.load %arg7[%c128_23, %c0_24] : memref<384x128xf32, #tpu.memory_space<vmem>>, vector<128x128xf32>
    tpu.vector_store %arg7[%c128_23, %c0_24], %17 {strides = array<i32>} : memref<384x128xf32, #tpu.memory_space<vmem>>, vector<128x128xf32>,
    %c128_25 = arith.constant 128 : index
    %c0_26 = arith.constant 0 : index
    %19 = vector.load %arg7[%c128_25, %c0_26] : memref<384x128xf32, #tpu.memory_space<vmem>>, vector<128x128xf32>
    %cst_27 = arith.constant dense<0.000000e+00> : vector<128x128xf32>
    %20 = tpu.matmul %19, %19, %cst_27 {dimension_numbers = #tpu.dot_dimension_numbers<[1], [0], [0], [1], [0, 0, 1, 1], [], []>} : vector<128x128xf32>, vector<128x128xf32>, vector<128x128xf32> -> vector<128x128xf32>
    %c256 = arith.constant 256 : index
    %c0_28 = arith.constant 0 : index
    %21 = vector.load %arg7[%c256, %c0_28] : memref<384x128xf32, #tpu.memory_space<vmem>>, vector<128x128xf32>
    tpu.vector_store %arg7[%c256, %c0_28], %20 {strides = array<i32>} : memref<384x128xf32, #tpu.memory_space<vmem>>, vector<128x128xf32>,
    %22 = tpu.iota {dimensions = array<i32: 1>} : vector<64x16xi32>
    %c8_i32 = arith.constant 8 : i32
    %23 = vector.broadcast %c8_i32 : i32 to vector<64x16xi32>
    %24 = arith.cmpi slt, %22, %23 : vector<64x16xi32>
    %25 = tpu.iota {dimensions = array<i32: 1>} : vector<128x16xi32>
    %c8_i32_29 = arith.constant 8 : i32
    %26 = vector.broadcast %c8_i32_29 : i32 to vector<128x16xi32>
    %27 = arith.cmpi slt, %25, %26 : vector<128x16xi32>
    %28 = vector.shape_cast %2 : vector<64x1xf32> to vector<64x1xf32>
    %29 = vector.broadcast %28 : vector<64x1xf32> to vector<64x16xf32>
    %30 = vector.shape_cast %5 : vector<128x1xf32> to vector<128x1xf32>
    %31 = vector.broadcast %30 : vector<128x1xf32> to vector<128x16xf32>
    %c0_30 = arith.constant 0 : index
    %c0_31 = arith.constant 0 : index
    %32 = vector.load %arg4[%c0_30, %c0_31] : memref<472x16xf32, #tpu.memory_space<vmem>>, vector<6x16xf32>
    %c8 = arith.constant 8 : index
    %c0_32 = arith.constant 0 : index
    %33 = vector.load %arg4[%c8, %c0_32] : memref<472x16xf32, #tpu.memory_space<vmem>>, vector<1x16xf32>
    %c9 = arith.constant 9 : index
    %c0_33 = arith.constant 0 : index
    %34 = vector.load %arg4[%c9, %c0_33] : memref<472x16xf32, #tpu.memory_space<vmem>>, vector<1x16xf32>
    %c10 = arith.constant 10 : index
    %c0_34 = arith.constant 0 : index
    %35 = vector.load %arg4[%c10, %c0_34] : memref<472x16xf32, #tpu.memory_space<vmem>>, vector<1x16xf32>
    %36 = vector.shape_cast %2 : vector<64x1xf32> to vector<64x1xf32>
    %37 = vector.broadcast %36 : vector<64x1xf32> to vector<64x16xf32>
    %38 = vector.shape_cast %5 : vector<128x1xf32> to vector<128x1xf32>
    %39 = vector.broadcast %38 : vector<128x1xf32> to vector<128x16xf32>
    %40 = vector.extract_strided_slice %32 {offsets = [0, 0], sizes = [1, 16], strides = [1, 1]} : vector<6x16xf32> to vector<1x16xf32>
    %41 = vector.broadcast %40 : vector<1x16xf32> to vector<64x16xf32>
    %42 = arith.mulf %37, %41 : vector<64x16xf32>
    %43 = vector.broadcast %33 : vector<1x16xf32> to vector<64x16xf32>
    %44 = arith.addf %43, %42 : vector<64x16xf32>
    %45 = arith.mulf %29, %37 : vector<64x16xf32>
    %46 = vector.extract_strided_slice %32 {offsets = [1, 0], sizes = [1, 16], strides = [1, 1]} : vector<6x16xf32> to vector<1x16xf32>
    %47 = vector.broadcast %46 : vector<1x16xf32> to vector<64x16xf32>
    %48 = arith.mulf %45, %47 : vector<64x16xf32>
    %49 = arith.addf %44, %48 : vector<64x16xf32>
    %c0_35 = arith.constant 0 : index
    %c0_36 = arith.constant 0 : index
    %50 = vector.load %arg6[%c0_35, %c0_36] : memref<192x64xf32, #tpu.memory_space<vmem>>, vector<64x64xf32>
    %51 = vector.extract_strided_slice %32 {offsets = [2, 0], sizes = [1, 16], strides = [1, 1]} : vector<6x16xf32> to vector<1x16xf32>
    %52 = vector.broadcast %51 : vector<1x16xf32> to vector<64x16xf32>
    %53 = arith.mulf %37, %52 : vector<64x16xf32>
    %cst_37 = arith.constant dense<0.000000e+00> : vector<64x16xf32>
    %54 = tpu.matmul %50, %53, %cst_37 {dimension_numbers = #tpu.dot_dimension_numbers<[1], [0], [0], [1], [0, 0, 1, 1], [], []>} : vector<64x64xf32>, vector<64x16xf32>, vector<64x16xf32> -> vector<64x16xf32>
    %55 = arith.addf %49, %54 : vector<64x16xf32>
    %c64_38 = arith.constant 64 : index
    %c0_39 = arith.constant 0 : index
    %56 = vector.load %arg6[%c64_38, %c0_39] : memref<192x64xf32, #tpu.memory_space<vmem>>, vector<64x64xf32>
    %57 = vector.extract_strided_slice %32 {offsets = [3, 0], sizes = [1, 16], strides = [1, 1]} : vector<6x16xf32> to vector<1x16xf32>
    %58 = vector.broadcast %57 : vector<1x16xf32> to vector<64x16xf32>
    %59 = arith.mulf %37, %58 : vector<64x16xf32>
    %cst_40 = arith.constant dense<0.000000e+00> : vector<64x16xf32>
    %60 = tpu.matmul %56, %59, %cst_40 {dimension_numbers = #tpu.dot_dimension_numbers<[1], [0], [0], [1], [0, 0, 1, 1], [], []>} : vector<64x64xf32>, vector<64x16xf32>, vector<64x16xf32> -> vector<64x16xf32>
    %61 = arith.addf %55, %60 : vector<64x16xf32>
    %c128_41 = arith.constant 128 : index
    %c0_42 = arith.constant 0 : index
    %62 = vector.load %arg6[%c128_41, %c0_42] : memref<192x64xf32, #tpu.memory_space<vmem>>, vector<64x64xf32>
    %63 = vector.extract_strided_slice %32 {offsets = [4, 0], sizes = [1, 16], strides = [1, 1]} : vector<6x16xf32> to vector<1x16xf32>
    %64 = vector.broadcast %63 : vector<1x16xf32> to vector<64x16xf32>
    %65 = arith.mulf %37, %64 : vector<64x16xf32>
    %cst_43 = arith.constant dense<0.000000e+00> : vector<64x16xf32>
    %66 = tpu.matmul %62, %65, %cst_43 {dimension_numbers = #tpu.dot_dimension_numbers<[1], [0], [0], [1], [0, 0, 1, 1], [], []>} : vector<64x64xf32>, vector<64x16xf32>, vector<64x16xf32> -> vector<64x16xf32>
    %67 = arith.addf %61, %66 : vector<64x16xf32>
    %c0_44 = arith.constant 0 : index
    %c0_45 = arith.constant 0 : index
    %68 = vector.load %arg2[%c0_44, %c0_45] : memref<64x128xf32, #tpu.memory_space<vmem>>, vector<64x128xf32>
    %69 = vector.extract_strided_slice %32 {offsets = [5, 0], sizes = [1, 16], strides = [1, 1]} : vector<6x16xf32> to vector<1x16xf32>
    %70 = vector.broadcast %69 : vector<1x16xf32> to vector<128x16xf32>
    %71 = arith.mulf %39, %70 : vector<128x16xf32>
    %cst_46 = arith.constant dense<0.000000e+00> : vector<64x16xf32>
    %72 = tpu.matmul %68, %71, %cst_46 {dimension_numbers = #tpu.dot_dimension_numbers<[1], [0], [0], [1], [0, 0, 1, 1], [], []>} : vector<64x128xf32>, vector<128x16xf32>, vector<64x16xf32> -> vector<64x16xf32>
    %73 = arith.addf %67, %72 : vector<64x16xf32>
    %cst_47 = arith.constant 0.000000e+00 : f32
    %74 = vector.broadcast %cst_47 : f32 to vector<64x16xf32>
    %75 = arith.maximumf %73, %74 : vector<64x16xf32>
    %76 = arith.select %24, %73, %75 : vector<64x16xi1>, vector<64x16xf32>
    %cst_48 = arith.constant dense<0.000000e+00> : vector<16xf32>
    %77 = vector.multi_reduction <add>, %76, %cst_48 [0] : vector<64x16xf32> to vector<16xf32>
    %78 = vector.shape_cast %77 : vector<16xf32> to vector<1x16xf32>
    %79 = arith.mulf %76, %76 : vector<64x16xf32>
    %cst_49 = arith.constant dense<0.000000e+00> : vector<16xf32>
    %80 = vector.multi_reduction <add>, %79, %cst_49 [0] : vector<64x16xf32> to vector<16xf32>
    %81 = vector.shape_cast %80 : vector<16xf32> to vector<1x16xf32>
    %cst_50 = arith.constant 1.562500e-02 : f32
    %82 = vector.broadcast %cst_50 : f32 to vector<1x16xf32>
    %83 = arith.mulf %78, %82 : vector<1x16xf32>
    %cst_51 = arith.constant 1.562500e-02 : f32
    %84 = vector.broadcast %cst_51 : f32 to vector<1x16xf32>
    %85 = arith.mulf %81, %84 : vector<1x16xf32>
    %86 = arith.mulf %83, %83 : vector<1x16xf32>
    %87 = arith.subf %85, %86 : vector<1x16xf32>
    %cst_52 = arith.constant 0.000000e+00 : f32
    %88 = vector.broadcast %cst_52 : f32 to vector<1x16xf32>
    %89 = arith.maximumf %87, %88 : vector<1x16xf32>
    %90 = vector.broadcast %83 : vector<1x16xf32> to vector<64x16xf32>
    %91 = arith.subf %76, %90 : vector<64x16xf32>
    %cst_53 = arith.constant 9.99999974E-6 : f32
    %92 = vector.broadcast %cst_53 : f32 to vector<1x16xf32>
    %93 = arith.addf %89, %92 : vector<1x16xf32>
    %94 = math.rsqrt %93 : vector<1x16xf32>
    %95 = vector.broadcast %94 : vector<1x16xf32> to vector<64x16xf32>
    %96 = arith.mulf %91, %95 : vector<64x16xf32>
    %97 = vector.broadcast %34 : vector<1x16xf32> to vector<64x16xf32>
    %98 = arith.mulf %96, %97 : vector<64x16xf32>
    %99 = vector.broadcast %35 : vector<1x16xf32> to vector<64x16xf32>
    %100 = arith.addf %98, %99 : vector<64x16xf32>
    %c16 = arith.constant 16 : index
    %c0_54 = arith.constant 0 : index
    %101 = vector.load %arg4[%c16, %c0_54] : memref<472x16xf32, #tpu.memory_space<vmem>>, vector<6x16xf32>
    %c24 = arith.constant 24 : index
    %c0_55 = arith.constant 0 : index
    %102 = vector.load %arg4[%c24, %c0_55] : memref<472x16xf32, #tpu.memory_space<vmem>>, vector<1x16xf32>
    %c25 = arith.constant 25 : index
    %c0_56 = arith.constant 0 : index
    %103 = vector.load %arg4[%c25, %c0_56] : memref<472x16xf32, #tpu.memory_space<vmem>>, vector<1x16xf32>
    %c26 = arith.constant 26 : index
    %c0_57 = arith.constant 0 : index
    %104 = vector.load %arg4[%c26, %c0_57] : memref<472x16xf32, #tpu.memory_space<vmem>>, vector<1x16xf32>
    %105 = vector.shape_cast %5 : vector<128x1xf32> to vector<128x1xf32>
    %106 = vector.broadcast %105 : vector<128x1xf32> to vector<128x16xf32>
    %107 = vector.shape_cast %2 : vector<64x1xf32> to vector<64x1xf32>
    %108 = vector.broadcast %107 : vector<64x1xf32> to vector<64x16xf32>
    %109 = vector.extract_strided_slice %101 {offsets = [0, 0], sizes = [1, 16], strides = [1, 1]} : vector<6x16xf32> to vector<1x16xf32>
    %110 = vector.broadcast %109 : vector<1x16xf32> to vector<128x16xf32>
    %111 = arith.mulf %106, %110 : vector<128x16xf32>
    %112 = vector.broadcast %102 : vector<1x16xf32> to vector<128x16xf32>
    %113 = arith.addf %112, %111 : vector<128x16xf32>
    %114 = arith.mulf %31, %106 : vector<128x16xf32>
    %115 = vector.extract_strided_slice %101 {offsets = [1, 0], sizes = [1, 16], strides = [1, 1]} : vector<6x16xf32> to vector<1x16xf32>
    %116 = vector.broadcast %115 : vector<1x16xf32> to vector<128x16xf32>
    %117 = arith.mulf %114, %116 : vector<128x16xf32>
    %118 = arith.addf %113, %117 : vector<128x16xf32>
    %c0_58 = arith.constant 0 : index
    %c0_59 = arith.constant 0 : index
    %119 = vector.load %arg7[%c0_58, %c0_59] : memref<384x128xf32, #tpu.memory_space<vmem>>, vector<128x128xf32>
    %120 = vector.extract_strided_slice %101 {offsets = [2, 0], sizes = [1, 16], strides = [1, 1]} : vector<6x16xf32> to vector<1x16xf32>
    %121 = vector.broadcast %120 : vector<1x16xf32> to vector<128x16xf32>
    %122 = arith.mulf %106, %121 : vector<128x16xf32>
    %cst_60 = arith.constant dense<0.000000e+00> : vector<128x16xf32>
    %123 = tpu.matmul %119, %122, %cst_60 {dimension_numbers = #tpu.dot_dimension_numbers<[1], [0], [0], [1], [0, 0, 1, 1], [], []>} : vector<128x128xf32>, vector<128x16xf32>, vector<128x16xf32> -> vector<128x16xf32>
    %124 = arith.addf %118, %123 : vector<128x16xf32>
    %c128_61 = arith.constant 128 : index
    %c0_62 = arith.constant 0 : index
    %125 = vector.load %arg7[%c128_61, %c0_62] : memref<384x128xf32, #tpu.memory_space<vmem>>, vector<128x128xf32>
    %126 = vector.extract_strided_slice %101 {offsets = [3, 0], sizes = [1, 16], strides = [1, 1]} : vector<6x16xf32> to vector<1x16xf32>
    %127 = vector.broadcast %126 : vector<1x16xf32> to vector<128x16xf32>
    %128 = arith.mulf %106, %127 : vector<128x16xf32>
    %cst_63 = arith.constant dense<0.000000e+00> : vector<128x16xf32>
    %129 = tpu.matmul %125, %128, %cst_63 {dimension_numbers = #tpu.dot_dimension_numbers<[1], [0], [0], [1], [0, 0, 1, 1], [], []>} : vector<128x128xf32>, vector<128x16xf32>, vector<128x16xf32> -> vector<128x16xf32>
    %130 = arith.addf %124, %129 : vector<128x16xf32>
    %c256_64 = arith.constant 256 : index
    %c0_65 = arith.constant 0 : index
    %131 = vector.load %arg7[%c256_64, %c0_65] : memref<384x128xf32, #tpu.memory_space<vmem>>, vector<128x128xf32>
    %132 = vector.extract_strided_slice %101 {offsets = [4, 0], sizes = [1, 16], strides = [1, 1]} : vector<6x16xf32> to vector<1x16xf32>
    %133 = vector.broadcast %132 : vector<1x16xf32> to vector<128x16xf32>
    %134 = arith.mulf %106, %133 : vector<128x16xf32>
    %cst_66 = arith.constant dense<0.000000e+00> : vector<128x16xf32>
    %135 = tpu.matmul %131, %134, %cst_66 {dimension_numbers = #tpu.dot_dimension_numbers<[1], [0], [0], [1], [0, 0, 1, 1], [], []>} : vector<128x128xf32>, vector<128x16xf32>, vector<128x16xf32> -> vector<128x16xf32>
    %136 = arith.addf %130, %135 : vector<128x16xf32>
    %c0_67 = arith.constant 0 : index
    %c0_68 = arith.constant 0 : index
    %137 = vector.load %arg3[%c0_67, %c0_68] : memref<128x64xf32, #tpu.memory_space<vmem>>, vector<128x64xf32>
    %138 = vector.extract_strided_slice %101 {offsets = [5, 0], sizes = [1, 16], strides = [1, 1]} : vector<6x16xf32> to vector<1x16xf32>
    %139 = vector.broadcast %138 : vector<1x16xf32> to vector<64x16xf32>
    %140 = arith.mulf %108, %139 : vector<64x16xf32>
    %cst_69 = arith.constant dense<0.000000e+00> : vector<128x16xf32>
    %141 = tpu.matmul %137, %140, %cst_69 {dimension_numbers = #tpu.dot_dimension_numbers<[1], [0], [0], [1], [0, 0, 1, 1], [], []>} : vector<128x64xf32>, vector<64x16xf32>, vector<128x16xf32> -> vector<128x16xf32>
    %142 = arith.addf %136, %141 : vector<128x16xf32>
    %cst_70 = arith.constant 0.000000e+00 : f32
    %143 = vector.broadcast %cst_70 : f32 to vector<128x16xf32>
    %144 = arith.maximumf %142, %143 : vector<128x16xf32>
    %145 = arith.select %27, %142, %144 : vector<128x16xi1>, vector<128x16xf32>
    %cst_71 = arith.constant dense<0.000000e+00> : vector<16xf32>
    %146 = vector.multi_reduction <add>, %145, %cst_71 [0] : vector<128x16xf32> to vector<16xf32>
    %147 = vector.shape_cast %146 : vector<16xf32> to vector<1x16xf32>
    %148 = arith.mulf %145, %145 : vector<128x16xf32>
    %cst_72 = arith.constant dense<0.000000e+00> : vector<16xf32>
    %149 = vector.multi_reduction <add>, %148, %cst_72 [0] : vector<128x16xf32> to vector<16xf32>
    %150 = vector.shape_cast %149 : vector<16xf32> to vector<1x16xf32>
    %cst_73 = arith.constant 7.812500e-03 : f32
    %151 = vector.broadcast %cst_73 : f32 to vector<1x16xf32>
    %152 = arith.mulf %147, %151 : vector<1x16xf32>
    %cst_74 = arith.constant 7.812500e-03 : f32
    %153 = vector.broadcast %cst_74 : f32 to vector<1x16xf32>
    %154 = arith.mulf %150, %153 : vector<1x16xf32>
    %155 = arith.mulf %152, %152 : vector<1x16xf32>
    %156 = arith.subf %154, %155 : vector<1x16xf32>
    %cst_75 = arith.constant 0.000000e+00 : f32
    %157 = vector.broadcast %cst_75 : f32 to vector<1x16xf32>
    %158 = arith.maximumf %156, %157 : vector<1x16xf32>
    %159 = vector.broadcast %152 : vector<1x16xf32> to vector<128x16xf32>
    %160 = arith.subf %145, %159 : vector<128x16xf32>
    %cst_76 = arith.constant 9.99999974E-6 : f32
    %161 = vector.broadcast %cst_76 : f32 to vector<1x16xf32>
    %162 = arith.addf %158, %161 : vector<1x16xf32>
    %163 = math.rsqrt %162 : vector<1x16xf32>
    %164 = vector.broadcast %163 : vector<1x16xf32> to vector<128x16xf32>
    %165 = arith.mulf %160, %164 : vector<128x16xf32>
    %166 = vector.broadcast %103 : vector<1x16xf32> to vector<128x16xf32>
    %167 = arith.mulf %165, %166 : vector<128x16xf32>
    %168 = vector.broadcast %104 : vector<1x16xf32> to vector<128x16xf32>
    %169 = arith.addf %167, %168 : vector<128x16xf32>
    %c32 = arith.constant 32 : index
    %c0_77 = arith.constant 0 : index
    %170 = vector.load %arg4[%c32, %c0_77] : memref<472x16xf32, #tpu.memory_space<vmem>>, vector<96x16xf32>
    %c128_78 = arith.constant 128 : index
    %c0_79 = arith.constant 0 : index
    %171 = vector.load %arg4[%c128_78, %c0_79] : memref<472x16xf32, #tpu.memory_space<vmem>>, vector<1x16xf32>
    %c129 = arith.constant 129 : index
    %c0_80 = arith.constant 0 : index
    %172 = vector.load %arg4[%c129, %c0_80] : memref<472x16xf32, #tpu.memory_space<vmem>>, vector<1x16xf32>
    %c130 = arith.constant 130 : index
    %c0_81 = arith.constant 0 : index
    %173 = vector.load %arg4[%c130, %c0_81] : memref<472x16xf32, #tpu.memory_space<vmem>>, vector<1x16xf32>
    %c0_82 = arith.constant 0 : index
    %c0_83 = arith.constant 0 : index
    %174 = vector.load %arg6[%c0_82, %c0_83] : memref<192x64xf32, #tpu.memory_space<vmem>>, vector<192x64xf32>
    %cst_84 = arith.constant dense<0.000000e+00> : vector<192x16xf32>
    %175 = tpu.matmul %174, %100, %cst_84 {dimension_numbers = #tpu.dot_dimension_numbers<[1], [0], [0], [1], [0, 0, 1, 1], [], []>} : vector<192x64xf32>, vector<64x16xf32>, vector<192x16xf32> -> vector<192x16xf32>
    %c0_85 = arith.constant 0 : index
    %c0_86 = arith.constant 0 : index
    %176 = vector.load %arg2[%c0_85, %c0_86] : memref<64x128xf32, #tpu.memory_space<vmem>>, vector<64x128xf32>
    %cst_87 = arith.constant dense<0.000000e+00> : vector<64x16xf32>
    %177 = tpu.matmul %176, %169, %cst_87 {dimension_numbers = #tpu.dot_dimension_numbers<[1], [0], [0], [1], [0, 0, 1, 1], [], []>} : vector<64x128xf32>, vector<128x16xf32>, vector<64x16xf32> -> vector<64x16xf32>
    %178 = arith.mulf %29, %100 : vector<64x16xf32>
    %179 = vector.extract_strided_slice %175 {offsets = [0, 0], sizes = [64, 16], strides = [1, 1]} : vector<192x16xf32> to vector<64x16xf32>
    %180 = vector.extract_strided_slice %175 {offsets = [64, 0], sizes = [64, 16], strides = [1, 1]} : vector<192x16xf32> to vector<64x16xf32>
    %181 = vector.extract_strided_slice %175 {offsets = [128, 0], sizes = [64, 16], strides = [1, 1]} : vector<192x16xf32> to vector<64x16xf32>
    %182 = tpu.concatenate %100, %178, %179, %180, %181, %177 in 1 : vector<64x16xf32>, vector<64x16xf32>, vector<64x16xf32>, vector<64x16xf32>, vector<64x16xf32>, vector<64x16xf32> -> vector<64x96xf32>
    %cst_88 = arith.constant dense<0.000000e+00> : vector<64x16xf32>
    %183 = tpu.matmul %182, %170, %cst_88 {dimension_numbers = #tpu.dot_dimension_numbers<[1], [0], [0], [1], [0, 0, 1, 1], [], []>} : vector<64x96xf32>, vector<96x16xf32>, vector<64x16xf32> -> vector<64x16xf32>
    %184 = vector.broadcast %171 : vector<1x16xf32> to vector<64x16xf32>
    %185 = arith.addf %183, %184 : vector<64x16xf32>
    %cst_89 = arith.constant 0.000000e+00 : f32
    %186 = vector.broadcast %cst_89 : f32 to vector<64x16xf32>
    %187 = arith.maximumf %185, %186 : vector<64x16xf32>
    %188 = arith.select %24, %185, %187 : vector<64x16xi1>, vector<64x16xf32>
    %cst_90 = arith.constant dense<0.000000e+00> : vector<16xf32>
    %189 = vector.multi_reduction <add>, %188, %cst_90 [0] : vector<64x16xf32> to vector<16xf32>
    %190 = vector.shape_cast %189 : vector<16xf32> to vector<1x16xf32>
    %191 = arith.mulf %188, %188 : vector<64x16xf32>
    %cst_91 = arith.constant dense<0.000000e+00> : vector<16xf32>
    %192 = vector.multi_reduction <add>, %191, %cst_91 [0] : vector<64x16xf32> to vector<16xf32>
    %193 = vector.shape_cast %192 : vector<16xf32> to vector<1x16xf32>
    %cst_92 = arith.constant 1.562500e-02 : f32
    %194 = vector.broadcast %cst_92 : f32 to vector<1x16xf32>
    %195 = arith.mulf %190, %194 : vector<1x16xf32>
    %cst_93 = arith.constant 1.562500e-02 : f32
    %196 = vector.broadcast %cst_93 : f32 to vector<1x16xf32>
    %197 = arith.mulf %193, %196 : vector<1x16xf32>
    %198 = arith.mulf %195, %195 : vector<1x16xf32>
    %199 = arith.subf %197, %198 : vector<1x16xf32>
    %cst_94 = arith.constant 0.000000e+00 : f32
    %200 = vector.broadcast %cst_94 : f32 to vector<1x16xf32>
    %201 = arith.maximumf %199, %200 : vector<1x16xf32>
    %202 = vector.broadcast %195 : vector<1x16xf32> to vector<64x16xf32>
    %203 = arith.subf %188, %202 : vector<64x16xf32>
    %cst_95 = arith.constant 9.99999974E-6 : f32
    %204 = vector.broadcast %cst_95 : f32 to vector<1x16xf32>
    %205 = arith.addf %201, %204 : vector<1x16xf32>
    %206 = math.rsqrt %205 : vector<1x16xf32>
    %207 = vector.broadcast %206 : vector<1x16xf32> to vector<64x16xf32>
    %208 = arith.mulf %203, %207 : vector<64x16xf32>
    %209 = vector.broadcast %172 : vector<1x16xf32> to vector<64x16xf32>
    %210 = arith.mulf %208, %209 : vector<64x16xf32>
    %211 = vector.broadcast %173 : vector<1x16xf32> to vector<64x16xf32>
    %212 = arith.addf %210, %211 : vector<64x16xf32>
    %c136 = arith.constant 136 : index
    %c0_96 = arith.constant 0 : index
    %213 = vector.load %arg4[%c136, %c0_96] : memref<472x16xf32, #tpu.memory_space<vmem>>, vector<96x16xf32>
    %c232 = arith.constant 232 : index
    %c0_97 = arith.constant 0 : index
    %214 = vector.load %arg4[%c232, %c0_97] : memref<472x16xf32, #tpu.memory_space<vmem>>, vector<1x16xf32>
    %c233 = arith.constant 233 : index
    %c0_98 = arith.constant 0 : index
    %215 = vector.load %arg4[%c233, %c0_98] : memref<472x16xf32, #tpu.memory_space<vmem>>, vector<1x16xf32>
    %c234 = arith.constant 234 : index
    %c0_99 = arith.constant 0 : index
    %216 = vector.load %arg4[%c234, %c0_99] : memref<472x16xf32, #tpu.memory_space<vmem>>, vector<1x16xf32>
    %c0_100 = arith.constant 0 : index
    %c0_101 = arith.constant 0 : index
    %217 = vector.load %arg7[%c0_100, %c0_101] : memref<384x128xf32, #tpu.memory_space<vmem>>, vector<384x128xf32>
    %cst_102 = arith.constant dense<0.000000e+00> : vector<384x16xf32>
    %218 = tpu.matmul %217, %169, %cst_102 {dimension_numbers = #tpu.dot_dimension_numbers<[1], [0], [0], [1], [0, 0, 1, 1], [], []>} : vector<384x128xf32>, vector<128x16xf32>, vector<384x16xf32> -> vector<384x16xf32>
    %c0_103 = arith.constant 0 : index
    %c0_104 = arith.constant 0 : index
    %219 = vector.load %arg3[%c0_103, %c0_104] : memref<128x64xf32, #tpu.memory_space<vmem>>, vector<128x64xf32>
    %cst_105 = arith.constant dense<0.000000e+00> : vector<128x16xf32>
    %220 = tpu.matmul %219, %100, %cst_105 {dimension_numbers = #tpu.dot_dimension_numbers<[1], [0], [0], [1], [0, 0, 1, 1], [], []>} : vector<128x64xf32>, vector<64x16xf32>, vector<128x16xf32> -> vector<128x16xf32>
    %221 = arith.mulf %31, %169 : vector<128x16xf32>
    %222 = vector.extract_strided_slice %218 {offsets = [0, 0], sizes = [128, 16], strides = [1, 1]} : vector<384x16xf32> to vector<128x16xf32>
    %223 = vector.extract_strided_slice %218 {offsets = [128, 0], sizes = [128, 16], strides = [1, 1]} : vector<384x16xf32> to vector<128x16xf32>
    %224 = vector.extract_strided_slice %218 {offsets = [256, 0], sizes = [128, 16], strides = [1, 1]} : vector<384x16xf32> to vector<128x16xf32>
    %225 = tpu.concatenate %169, %221, %222, %223, %224, %220 in 1 : vector<128x16xf32>, vector<128x16xf32>, vector<128x16xf32>, vector<128x16xf32>, vector<128x16xf32>, vector<128x16xf32> -> vector<128x96xf32>
    %cst_106 = arith.constant dense<0.000000e+00> : vector<128x16xf32>
    %226 = tpu.matmul %225, %213, %cst_106 {dimension_numbers = #tpu.dot_dimension_numbers<[1], [0], [0], [1], [0, 0, 1, 1], [], []>} : vector<128x96xf32>, vector<96x16xf32>, vector<128x16xf32> -> vector<128x16xf32>
    %227 = vector.broadcast %214 : vector<1x16xf32> to vector<128x16xf32>
    %228 = arith.addf %226, %227 : vector<128x16xf32>
    %cst_107 = arith.constant 0.000000e+00 : f32
    %229 = vector.broadcast %cst_107 : f32 to vector<128x16xf32>
    %230 = arith.maximumf %228, %229 : vector<128x16xf32>
    %231 = arith.select %27, %228, %230 : vector<128x16xi1>, vector<128x16xf32>
    %cst_108 = arith.constant dense<0.000000e+00> : vector<16xf32>
    %232 = vector.multi_reduction <add>, %231, %cst_108 [0] : vector<128x16xf32> to vector<16xf32>
    %233 = vector.shape_cast %232 : vector<16xf32> to vector<1x16xf32>
    %234 = arith.mulf %231, %231 : vector<128x16xf32>
    %cst_109 = arith.constant dense<0.000000e+00> : vector<16xf32>
    %235 = vector.multi_reduction <add>, %234, %cst_109 [0] : vector<128x16xf32> to vector<16xf32>
    %236 = vector.shape_cast %235 : vector<16xf32> to vector<1x16xf32>
    %cst_110 = arith.constant 7.812500e-03 : f32
    %237 = vector.broadcast %cst_110 : f32 to vector<1x16xf32>
    %238 = arith.mulf %233, %237 : vector<1x16xf32>
    %cst_111 = arith.constant 7.812500e-03 : f32
    %239 = vector.broadcast %cst_111 : f32 to vector<1x16xf32>
    %240 = arith.mulf %236, %239 : vector<1x16xf32>
    %241 = arith.mulf %238, %238 : vector<1x16xf32>
    %242 = arith.subf %240, %241 : vector<1x16xf32>
    %cst_112 = arith.constant 0.000000e+00 : f32
    %243 = vector.broadcast %cst_112 : f32 to vector<1x16xf32>
    %244 = arith.maximumf %242, %243 : vector<1x16xf32>
    %245 = vector.broadcast %238 : vector<1x16xf32> to vector<128x16xf32>
    %246 = arith.subf %231, %245 : vector<128x16xf32>
    %cst_113 = arith.constant 9.99999974E-6 : f32
    %247 = vector.broadcast %cst_113 : f32 to vector<1x16xf32>
    %248 = arith.addf %244, %247 : vector<1x16xf32>
    %249 = math.rsqrt %248 : vector<1x16xf32>
    %250 = vector.broadcast %249 : vector<1x16xf32> to vector<128x16xf32>
    %251 = arith.mulf %246, %250 : vector<128x16xf32>
    %252 = vector.broadcast %215 : vector<1x16xf32> to vector<128x16xf32>
    %253 = arith.mulf %251, %252 : vector<128x16xf32>
    %254 = vector.broadcast %216 : vector<1x16xf32> to vector<128x16xf32>
    %255 = arith.addf %253, %254 : vector<128x16xf32>
    %c240 = arith.constant 240 : index
    %c0_114 = arith.constant 0 : index
    %256 = vector.load %arg4[%c240, %c0_114] : memref<472x16xf32, #tpu.memory_space<vmem>>, vector<96x16xf32>
    %c336 = arith.constant 336 : index
    %c0_115 = arith.constant 0 : index
    %257 = vector.load %arg4[%c336, %c0_115] : memref<472x16xf32, #tpu.memory_space<vmem>>, vector<1x16xf32>
    %c337 = arith.constant 337 : index
    %c0_116 = arith.constant 0 : index
    %258 = vector.load %arg4[%c337, %c0_116] : memref<472x16xf32, #tpu.memory_space<vmem>>, vector<1x16xf32>
    %c338 = arith.constant 338 : index
    %c0_117 = arith.constant 0 : index
    %259 = vector.load %arg4[%c338, %c0_117] : memref<472x16xf32, #tpu.memory_space<vmem>>, vector<1x16xf32>
    %c0_118 = arith.constant 0 : index
    %c0_119 = arith.constant 0 : index
    %260 = vector.load %arg6[%c0_118, %c0_119] : memref<192x64xf32, #tpu.memory_space<vmem>>, vector<192x64xf32>
    %cst_120 = arith.constant dense<0.000000e+00> : vector<192x16xf32>
    %261 = tpu.matmul %260, %212, %cst_120 {dimension_numbers = #tpu.dot_dimension_numbers<[1], [0], [0], [1], [0, 0, 1, 1], [], []>} : vector<192x64xf32>, vector<64x16xf32>, vector<192x16xf32> -> vector<192x16xf32>
    %c0_121 = arith.constant 0 : index
    %c0_122 = arith.constant 0 : index
    %262 = vector.load %arg2[%c0_121, %c0_122] : memref<64x128xf32, #tpu.memory_space<vmem>>, vector<64x128xf32>
    %cst_123 = arith.constant dense<0.000000e+00> : vector<64x16xf32>
    %263 = tpu.matmul %262, %255, %cst_123 {dimension_numbers = #tpu.dot_dimension_numbers<[1], [0], [0], [1], [0, 0, 1, 1], [], []>} : vector<64x128xf32>, vector<128x16xf32>, vector<64x16xf32> -> vector<64x16xf32>
    %264 = arith.mulf %29, %212 : vector<64x16xf32>
    %265 = vector.extract_strided_slice %261 {offsets = [0, 0], sizes = [64, 16], strides = [1, 1]} : vector<192x16xf32> to vector<64x16xf32>
    %266 = vector.extract_strided_slice %261 {offsets = [64, 0], sizes = [64, 16], strides = [1, 1]} : vector<192x16xf32> to vector<64x16xf32>
    %267 = vector.extract_strided_slice %261 {offsets = [128, 0], sizes = [64, 16], strides = [1, 1]} : vector<192x16xf32> to vector<64x16xf32>
    %268 = tpu.concatenate %212, %264, %265, %266, %267, %263 in 1 : vector<64x16xf32>, vector<64x16xf32>, vector<64x16xf32>, vector<64x16xf32>, vector<64x16xf32>, vector<64x16xf32> -> vector<64x96xf32>
    %cst_124 = arith.constant dense<0.000000e+00> : vector<64x16xf32>
    %269 = tpu.matmul %268, %256, %cst_124 {dimension_numbers = #tpu.dot_dimension_numbers<[1], [0], [0], [1], [0, 0, 1, 1], [], []>} : vector<64x96xf32>, vector<96x16xf32>, vector<64x16xf32> -> vector<64x16xf32>
    %270 = vector.broadcast %257 : vector<1x16xf32> to vector<64x16xf32>
    %271 = arith.addf %269, %270 : vector<64x16xf32>
    %cst_125 = arith.constant 0.000000e+00 : f32
    %272 = vector.broadcast %cst_125 : f32 to vector<64x16xf32>
    %273 = arith.maximumf %271, %272 : vector<64x16xf32>
    %274 = arith.select %24, %271, %273 : vector<64x16xi1>, vector<64x16xf32>
    %cst_126 = arith.constant dense<0.000000e+00> : vector<16xf32>
    %275 = vector.multi_reduction <add>, %274, %cst_126 [0] : vector<64x16xf32> to vector<16xf32>
    %276 = vector.shape_cast %275 : vector<16xf32> to vector<1x16xf32>
    %277 = arith.mulf %274, %274 : vector<64x16xf32>
    %cst_127 = arith.constant dense<0.000000e+00> : vector<16xf32>
    %278 = vector.multi_reduction <add>, %277, %cst_127 [0] : vector<64x16xf32> to vector<16xf32>
    %279 = vector.shape_cast %278 : vector<16xf32> to vector<1x16xf32>
    %cst_128 = arith.constant 1.562500e-02 : f32
    %280 = vector.broadcast %cst_128 : f32 to vector<1x16xf32>
    %281 = arith.mulf %276, %280 : vector<1x16xf32>
    %cst_129 = arith.constant 1.562500e-02 : f32
    %282 = vector.broadcast %cst_129 : f32 to vector<1x16xf32>
    %283 = arith.mulf %279, %282 : vector<1x16xf32>
    %284 = arith.mulf %281, %281 : vector<1x16xf32>
    %285 = arith.subf %283, %284 : vector<1x16xf32>
    %cst_130 = arith.constant 0.000000e+00 : f32
    %286 = vector.broadcast %cst_130 : f32 to vector<1x16xf32>
    %287 = arith.maximumf %285, %286 : vector<1x16xf32>
    %288 = vector.broadcast %281 : vector<1x16xf32> to vector<64x16xf32>
    %289 = arith.subf %274, %288 : vector<64x16xf32>
    %cst_131 = arith.constant 9.99999974E-6 : f32
    %290 = vector.broadcast %cst_131 : f32 to vector<1x16xf32>
    %291 = arith.addf %287, %290 : vector<1x16xf32>
    %292 = math.rsqrt %291 : vector<1x16xf32>
    %293 = vector.broadcast %292 : vector<1x16xf32> to vector<64x16xf32>
    %294 = arith.mulf %289, %293 : vector<64x16xf32>
    %295 = vector.broadcast %258 : vector<1x16xf32> to vector<64x16xf32>
    %296 = arith.mulf %294, %295 : vector<64x16xf32>
    %297 = vector.broadcast %259 : vector<1x16xf32> to vector<64x16xf32>
    %298 = arith.addf %296, %297 : vector<64x16xf32>
    %c448 = arith.constant 448 : index
    %c0_132 = arith.constant 0 : index
    %299 = vector.load %arg4[%c448, %c0_132] : memref<472x16xf32, #tpu.memory_space<vmem>>, vector<16x16xf32>
    %c464 = arith.constant 464 : index
    %c0_133 = arith.constant 0 : index
    %300 = vector.load %arg4[%c464, %c0_133] : memref<472x16xf32, #tpu.memory_space<vmem>>, vector<1x16xf32>
    %cst_134 = arith.constant dense<0.000000e+00> : vector<64x16xf32>
    %301 = tpu.matmul %298, %299, %cst_134 {dimension_numbers = #tpu.dot_dimension_numbers<[1], [0], [0], [1], [0, 0, 1, 1], [], []>} : vector<64x16xf32>, vector<16x16xf32>, vector<64x16xf32> -> vector<64x16xf32>
    %302 = vector.broadcast %300 : vector<1x16xf32> to vector<64x16xf32>
    %303 = arith.addf %301, %302 : vector<64x16xf32>
    %c0_135 = arith.constant 0 : index
    %c0_136 = arith.constant 0 : index
    %304 = vector.load %arg5[%c0_135, %c0_136] : memref<64x16xf32, #tpu.memory_space<vmem>>, vector<64x16xf32>
    tpu.vector_store %arg5[%c0_135, %c0_136], %303 {strides = array<i32>} : memref<64x16xf32, #tpu.memory_space<vmem>>, vector<64x16xf32>,
    return
  }
}

</mosaic_0001>

<bundles_post_ra>
// kernel: lgnn_forward.1
= control target key start
LH: loop header
LB: loop body
LE: loop exit
PB: predicated region body
PF: predicated region fallthrough
CT: control target
= control target key end

     0   :  { %vm28_vm0 = vcmask 523264   ;;  %vm907_vm2 = vcmask 130048   ;;  %s4294_s29 = smov 32   ;;  %s4295_s21 = smov 48   ;;  %vm2180_vm9 = vcmask 261120   ;;  %vm2189_vm10 = vcmask 392192   ;;  %s7470_s1 = inlined_call_operand.vmem [shape: f32[128,128], index: 1, kind: input, shape index: {}]   ;;  %s7471_s0 = inlined_call_operand.vmem [shape: f32[64,64], index: 0, kind: input, shape index: {}]   ;;  %s7472_s4 = inlined_call_operand.vmem [shape: f32[472,16], index: 4, kind: input, shape index: {}]   ;;  %s7473_s2 = inlined_call_operand.vmem [shape: f32[64,128], index: 2, kind: input, shape index: {}]   ;;  %s7474_s3 = inlined_call_operand.vmem [shape: f32[128,64], index: 3, kind: input, shape index: {}]   ;;  %s7475_s5 = inlined_call_operand.vmem [shape: f32[64,16], index: 5, kind: output, shape index: {}]  }
   0x1   :  { %v4331_v0 = vld [vmem:[%s7470_s1 + $0x78] sm:$0xff]  ;;  %v4339_v2 = vld [vmem:[%s7470_s1 + $0x70] sm:$0xff]  ;;  %v25_v4 = vld [vmem:[%s7471_s0 + $0x28] sm:$0xff]  ;;  %s4296_s7 = smov 64   ;;  %vm2206_vm11 = vcmask 654336   ;;  %vm2216_vm12 = vcmask 785408  }
   0x2   :  { %v27_v1 = vld [vmem:[%s7471_s0 + $0x38] sm:$0xff]  ;;  %319 = vmatpush.msra.mxu2 %v4331_v0  ;;  %v44_v6 = vsel %vm28_vm0, %v25_v4, 0.0  ;;  %106 = vst.msk [vmem:[#allocation2 + $0x28] sm:$0xff] %vm28_vm0, %v25_v4  ;;  %v4355_v7 = vld [vmem:[%s7470_s1 + $0x68] sm:$0xff]  ;;  %v26_v9 = vld [vmem:[%s7471_s0 + $0x30] sm:$0xff] }
   0x3   :  { %v50_v3 = vsel %vm28_vm0, %v27_v1, 0.0  ;;  %108 = vst.msk [vmem:[#allocation2 + $0x38] sm:$0xff] %vm28_vm0, %v27_v1  ;;  %v23_v5 = vld [vmem:[%s7471_s0 + $0x18] sm:$0xff]  ;;  %45 = vadd.xlane.f32.xlu1 %v44_v6  ;;  %v24_v10 = vld [vmem:[%s7471_s0 + $0x20] sm:$0xff]  ;;  %v22_v12 = vld [vmem:[%s7471_s0 + $0x10] sm:$0xff]  ;;  %v47_v16 = vsel %vm28_vm0, %v26_v9, 0.0 }
   0x4   :  { %51 = vadd.xlane.f32.xlu0 %v50_v3  ;;  %v38_v8 = vsel %vm28_vm0, %v23_v5, 0.0  ;;  %320 = vmatpush.msra.mxu2 %v4339_v2  ;;  %104 = vst.msk [vmem:[#allocation2 + $0x18] sm:$0xff] %vm28_vm0, %v23_v5  ;;  %v4369_v11 = vld [vmem:[%s7470_s1 + $0x60] sm:$0xff]  ;;  %v21_v13 = vld [vmem:[%s7471_s0 + $0x8] sm:$0xff]  ;;  %v4386_v15 = vld [vmem:[%s7470_s1 + $0x58] sm:$0xff]  ;;  %v41_v19 = vsel %vm28_vm0, %v24_v10, 0.0 }
   0x5   :  { %39 = vadd.xlane.f32.xlu2 %v38_v8  ;;  %107 = vst.msk [vmem:[#allocation2 + $0x30] sm:$0xff] %vm28_vm0, %v26_v9  ;;  %v20_v14 = vld [vmem:[%s7471_s0] sm:$0xff]  ;;  %v4397_v18 = vld [vmem:[%s7470_s1 + $0x50] sm:$0xff]  ;;  %v35_v20 = vsel %vm28_vm0, %v22_v12, 0.0  ;;  %v4407_v21 = vld [vmem:[%s7470_s1 + $0x48] sm:$0xff]  ;;  %v32_v28 = vsel %vm28_vm0, %v21_v13, 0.0 }
   0x6   :  { %321 = vmatpush.msra.mxu2 %v4355_v7  ;;  %105 = vst.msk [vmem:[#allocation2 + $0x20] sm:$0xff] %vm28_vm0, %v24_v10  ;;  %v4418_v24 = vld [vmem:[%s7470_s1 + $0x40] sm:$0xff]  ;;  %v4427_v26 = vld [vmem:[%s7470_s1 + $0x38] sm:$0xff]  ;;  %v4437_v29 = vld [vmem:[%s7470_s1 + $0x30] sm:$0xff]  ;;  %v29_v30 = vsel %vm28_vm0, %v20_v14, 0.0  ;;  %s4293_s0 = smov 16  }
   0x7   :  { %103 = vst.msk [vmem:[#allocation2 + $0x10] sm:$0xff] %vm28_vm0, %v22_v12  ;;  %v4448_v33 = vld [vmem:[%s7470_s1 + $0x28] sm:$0xff]  ;;  %v4454_v34 = vld [vmem:[%s7470_s1 + $0x20] sm:$0xff]  ;;  %v4464_v36 = vld [vmem:[%s7470_s1 + $0x18] sm:$0xff] }
   0x8   :  { %322 = vmatpush.msra.mxu2 %v4369_v11  ;;  %102 = vst.msk [vmem:[#allocation2 + $0x8] sm:$0xff] %vm28_vm0, %v21_v13  ;;  %v4473_v37 = vld [vmem:[%s7470_s1 + $0x10] sm:$0xff]  ;;  %v4482_v38 = vld [vmem:[%s7470_s1 + $0x8] sm:$0xff]  ;;  %v4490_v39 = vld [vmem:[%s7470_s1] sm:$0xff] }
   0x9   :  { %101 = vst.msk [vmem:[#allocation2] sm:$0xff] %vm28_vm0, %v20_v14  ;;  %v4412_v23 = vld [vmem:[#allocation2 + $0x28] sm:$0xff]  ;;  %v4548_v46 = vld [vmem:[%s7472_s4 + $0x10] sm:$0x3f]  ;;  %v4553_v47 = vld [vmem:[%s7472_s4] sm:$0x3f] }
   0xa   :  { %v4392_v17 = vld [vmem:[#allocation2 + $0x38] sm:$0xff]  ;;  %323 = vmatpush.msra.mxu2 %v4386_v15  ;;  %7589 = vst [vmem:[#allocation6_spill] sm:$0xff] %v4412_v23  ;;  %v4556_v48 = vperm.slane %v4548_v46, 2  ;;  %v645_v49 = vperm.slane %v4553_v47, 3 }
   0xb   :  { %7587 = vst [vmem:[#allocation4_spill] sm:$0xff] %v4392_v17  ;;  %149 = vmatpush.msra.mxu0 %v4392_v17  ;;  %42 = vadd.xlane.f32.xlu1 %v41_v19  ;;  %v4430_v27 = vld [vmem:[#allocation2 + $0x18] sm:$0xff] }
   0xc   :  { %48 = vadd.xlane.f32.xlu0 %v47_v16  ;;  %v4409_v22 = vld [vmem:[#allocation2 + $0x30] sm:$0xff]  ;;  %324 = vmatpush.msra.mxu2 %v4397_v18 }
   0xd   :  { %7588 = vst [vmem:[#allocation5_spill] sm:$0xff] %v4409_v22  ;;  %150 = vmatpush.msra.mxu0 %v4409_v22  ;;  %36 = vadd.xlane.f32.xlu2 %v35_v20  ;;  %v4421_v25 = vld [vmem:[#allocation2 + $0x20] sm:$0xff] }
   0xe   :  { %325 = vmatpush.msra.mxu2 %v4407_v21  ;;  %7590 = vst [vmem:[#allocation7_spill] sm:$0xff] %v4421_v25  ;;  %v4441_v31 = vld [vmem:[#allocation2 + $0x10] sm:$0xff] }
   0xf   :  { %151 = vmatpush.msra.mxu0 %v4412_v23  ;;  %v4443_v32 = vld [vmem:[#allocation2 + $0x8] sm:$0xff] }
  0x10   :  { %326 = vmatpush.msra.mxu2 %v4418_v24  ;;  %v4457_v35 = vld [vmem:[#allocation2] sm:$0xff] }
  0x11   :  { %152 = vmatpush.msra.mxu0 %v4421_v25 }
  0x12   :  { %327 = vmatpush.msra.mxu2 %v4427_v26 }
  0x13   :  { %153 = vmatpush.msra.mxu0 %v4430_v27  ;;  %30 = vadd.xlane.f32.xlu1 %v29_v30 }
  0x14   :  { %33 = vadd.xlane.f32.xlu0 %v32_v28  ;;  %328 = vmatpush.msra.mxu2 %v4437_v29 }
  0x15   :  { %154 = vmatpush.msra.mxu0 %v4441_v31  ;;  %99 = vadd.xlane.f32.xlu2 %v4331_v0 }
  0x16   :  { %329 = vmatpush.msra.mxu2 %v4448_v33 }
  0x17   :  { %155 = vmatpush.msra.mxu0 %v4443_v32 }
  0x18   :  { %330 = vmatpush.msra.mxu2 %v4454_v34 }
  0x19   :  { %156 = vmatpush.msra.mxu0 %v4457_v35 }
  0x1a   :  { %4021 = vmatmul.msk.f32.vlgmr.msra.gmra.mxu0 %vm28_vm0, %v4457_v35  ;;  %331 = vmatpush.msra.mxu2 %v4464_v36 }
  0x1b   :  { %95 = vadd.xlane.f32.xlu1 %v4355_v7 }
  0x1c   :  { %97 = vadd.xlane.f32.xlu0 %v4339_v2  ;;  %332 = vmatpush.msra.mxu2 %v4473_v37 }
  0x1d   :  { %93 = vadd.xlane.f32.xlu2 %v4369_v11 }
  0x1e   :  { %333 = vmatpush.msra.mxu2 %v4482_v38 }
  0x20   :  { %334 = vmatpush.msra.mxu2 %v4490_v39 }
  0x21   :  { %335 = vmatmul.f32.vlgmr.msra.gmra.mxu2 %v4490_v39 }
  0x22   :  { %4022 = vmatmul.msk.f32.gmra.mxu0 %vm28_vm0, %v4443_v32 }
  0x23   :  { %89 = vadd.xlane.f32.xlu1 %v4397_v18 }
  0x24   :  { %91 = vadd.xlane.f32.xlu0 %v4386_v15 }
  0x25   :  { %87 = vadd.xlane.f32.xlu2 %v4407_v21 }
  0x29   :  { %338 = vmatmul.f32.gmra.mxu2 %v4482_v38 }
  0x2a   :  { %4023 = vmatmul.msk.f32.gmra.mxu0 %vm28_vm0, %v4441_v31 }
  0x2b   :  { %83 = vadd.xlane.f32.xlu1 %v4427_v26 }
  0x2c   :  { %85 = vadd.xlane.f32.xlu0 %v4418_v24 }
  0x2d   :  { %81 = vadd.xlane.f32.xlu2 %v4437_v29 }
  0x31   :  { %341 = vmatmul.f32.gmra.mxu2 %v4473_v37 }
  0x32   :  { %4024 = vmatmul.msk.f32.gmra.mxu0 %vm28_vm0, %v4430_v27 }
  0x33   :  { %77 = vadd.xlane.f32.xlu1 %v4454_v34 }
  0x34   :  { %79 = vadd.xlane.f32.xlu0 %v4448_v33 }
  0x35   :  { %75 = vadd.xlane.f32.xlu2 %v4464_v36 }
  0x39   :  { %344 = vmatmul.f32.gmra.mxu2 %v4464_v36 }
  0x3a   :  { %4025 = vmatmul.msk.f32.gmra.mxu0 %vm28_vm0, %v4421_v25 }
  0x3b   :  { %71 = vadd.xlane.f32.xlu1 %v4482_v38 }
  0x3c   :  { %73 = vadd.xlane.f32.xlu0 %v4473_v37 }
  0x3d   :  { %69 = vadd.xlane.f32.xlu2 %v4490_v39 }
  0x41   :  { %347 = vmatmul.f32.gmra.mxu2 %v4454_v34 }
  0x42   :  { %4026 = vmatmul.msk.f32.gmra.mxu0 %vm28_vm0, %v4412_v23 }
  0x49   :  { %350 = vmatmul.f32.gmra.mxu2 %v4448_v33 }
  0x4a   :  { %4027 = vmatmul.msk.f32.gmra.mxu0 %vm28_vm0, %v4409_v22 }
  0x51   :  { %353 = vmatmul.f32.gmra.mxu2 %v4437_v29 }
  0x52   :  { %4028 = vmatmul.msk.f32.gmra.mxu0 %vm28_vm0, %v4392_v17 }
  0x59   :  { %356 = vmatmul.f32.gmra.mxu2 %v4427_v26 }
  0x61   :  { %359 = vmatmul.f32.gmra.mxu2 %v4418_v24 }
  0x69   :  { %362 = vmatmul.f32.gmra.mxu2 %v4407_v21 }
  0x71   :  { %365 = vmatmul.f32.gmra.mxu2 %v4397_v18 }
  0x76   :  { %v4533_v41 = vpop.xlane.xlu1 %45 }
  0x77   :  { %v4531_v40 = vpop.xlane.xlu0 %51  ;;  %7592 = vst [vmem:[#allocation9_spill] sm:$0xff] %v4533_v41  ;;  %v651_v56 = vmul.f32 %v645_v49, %v4533_v41 }
  0x78   :  { %7591 = vst [vmem:[#allocation8_spill] sm:$0xff] %v4531_v40  ;;  %v4535_v42 = vpop.xlane.xlu2 %39  ;;  %v653_v52 = vmul.f32 %v645_v49, %v4531_v40 }
  0x79   :  { %7593 = vst [vmem:[#allocation10_spill] sm:$0xff] %v4535_v42  ;;  %368 = vmatmul.f32.gmra.mxu2 %v4386_v15  ;;  %v649_v61 = vmul.f32 %v645_v49, %v4535_v42 }
  0x7a   :  { %686 = vmatpush.msra.mxu1 %v653_v52 }
  0x7e   :  { %v4540_v44 = vpop.xlane.xlu1 %42 }
  0x7f   :  { %v4538_v43 = vpop.xlane.xlu0 %48  ;;  %7595 = vst [vmem:[#allocation12_spill] sm:$0xff] %v4540_v44  ;;  %v650_v57 = vmul.f32 %v645_v49, %v4540_v44 }
  0x80   :  { %7594 = vst [vmem:[#allocation11_spill] sm:$0xff] %v4538_v43  ;;  %v4542_v45 = vpop.xlane.xlu2 %36  ;;  %v652_v54 = vmul.f32 %v645_v49, %v4538_v43 }
  0x81   :  { %7596 = vst [vmem:[#allocation13_spill] sm:$0xff] %v4542_v45  ;;  %371 = vmatmul.f32.gmra.mxu2 %v4369_v11  ;;  %v648_v1 = vmul.f32 %v645_v49, %v4542_v45 }
  0x82   :  { %687 = vmatpush.msra.mxu1 %v652_v54 }
  0x84   :  { %688 = vmatpush.msra.mxu1 %v651_v56 }
  0x86   :  { %v4561_v51 = vpop.xlane.xlu1 %30  ;;  %689 = vmatpush.msra.mxu1 %v650_v57 }
  0x87   :  { %v4559_v50 = vpop.xlane.xlu0 %33  ;;  %7598 = vst [vmem:[#allocation15_spill] sm:$0xff] %v4561_v51  ;;  %v646_v5 = vmul.f32 %v645_v49, %v4561_v51 }
  0x88   :  { %7597 = vst [vmem:[#allocation14_spill] sm:$0xff] %v4559_v50  ;;  %v4564_v53 = vpop.xlane.xlu2 %99  ;;  %690 = vmatpush.msra.mxu1 %v649_v61  ;;  %v647_v4 = vmul.f32 %v645_v49, %v4559_v50 }
  0x89   :  { %7599 = vst [vmem:[#allocation16_spill] sm:$0xff] %v4564_v53  ;;  %374 = vmatmul.f32.gmra.mxu2 %v4355_v7  ;;  %v1127_v55 = vmul.f32 %v4556_v48, %v4564_v53 }
  0x8a   :  { %691 = vmatpush.msra.mxu1 %v648_v1 }
  0x8b   :  { %1128 = vmatpush.msrb.mxu2 %v1127_v55 }
  0x8c   :  { %692 = vmatpush.msra.mxu1 %v647_v4 }
  0x8e   :  { %v4574_v59 = vpop.xlane.xlu1 %95  ;;  %693 = vmatpush.msra.mxu1 %v646_v5 }
  0x8f   :  { %v4572_v58 = vpop.xlane.xlu0 %97  ;;  %7601 = vst [vmem:[#allocation18_spill] sm:$0xff] %v4574_v59  ;;  %v1125_v63 = vmul.f32 %v4556_v48, %v4574_v59 }
  0x90   :  { %7600 = vst [vmem:[#allocation17_spill] sm:$0xff] %v4572_v58  ;;  %v1126_v60 = vmul.f32 %v4556_v48, %v4572_v58  ;;  %v4579_v62 = vpop.xlane.xlu2 %93 }
  0x91   :  { %7602 = vst [vmem:[#allocation19_spill] sm:$0xff] %v4579_v62  ;;  %377 = vmatmul.f32.gmra.mxu2 %v4339_v2  ;;  %v1124_v3 = vmul.f32 %v4556_v48, %v4579_v62 }
  0x92   :  { %1129 = vmatpush.msrb.mxu2 %v1126_v60 }
  0x94   :  { %1130 = vmatpush.msrb.mxu2 %v1125_v63 }
  0x96   :  { %1131 = vmatpush.msrb.mxu2 %v1124_v3  ;;  %v4591_v9 = vpop.xlane.xlu1 %89 }
  0x97   :  { %v4589_v6 = vpop.xlane.xlu0 %91  ;;  %v158_v8 = vpop.f32.mrf.mxu0  ;;  %7604 = vst [vmem:[#allocation21_spill] sm:$0xff] %v4591_v9  ;;  %v1122_v13 = vmul.f32 %v4556_v48, %v4591_v9 }
  0x98   :  { %7603 = vst [vmem:[#allocation20_spill] sm:$0xff] %v4589_v6  ;;  %v1123_v10 = vmul.f32 %v4556_v48, %v4589_v6  ;;  %v4596_v12 = vpop.xlane.xlu2 %87 }
  0x99   :  { %182 = vst.msk [vmem:[#allocation2 + $0x40] sm:$0xff] %vm28_vm0, %v158_v8  ;;  %380 = vmatmul.f32.gmra.mxu2 %v4331_v0  ;;  %v1121_v14 = vmul.f32 %v4556_v48, %v4596_v12 }
  0x9a   :  { %7605 = vst [vmem:[#allocation22_spill] sm:$0xff] %v4596_v12  ;;  %1132 = vmatpush.msrb.mxu2 %v1123_v10 }
  0x9c   :  { %1133 = vmatpush.msrb.mxu2 %v1122_v13 }
  0x9e   :  { %1134 = vmatpush.msrb.mxu2 %v1121_v14  ;;  %v4605_v20 = vpop.xlane.xlu1 %83 }
  0x9f   :  { %v4603_v16 = vpop.xlane.xlu0 %85  ;;  %v161_v19 = vpop.f32.mrf.mxu0  ;;  %7607 = vst [vmem:[#allocation24_spill] sm:$0xff] %v4605_v20  ;;  %v1119_v52 = vmul.f32 %v4556_v48, %v4605_v20 }
  0xa0   :  { %7606 = vst [vmem:[#allocation23_spill] sm:$0xff] %v4603_v16  ;;  %v1120_v28 = vmul.f32 %v4556_v48, %v4603_v16  ;;  %v4609_v30 = vld [vmem:[#allocation2 + $0x40] sm:$0xff]  ;;  %v4612_v49 = vpop.xlane.xlu2 %81 }
  0xa1   :  { %183 = vst.msk [vmem:[#allocation2 + $0x48] sm:$0xff] %vm28_vm0, %v161_v19  ;;  %4045 = vmatmul.msk.f32.vlgmr.msra.gmra.mxu1 %vm28_vm0, %v4609_v30  ;;  %v1118_v54 = vmul.f32 %v4556_v48, %v4612_v49 }
  0xa2   :  { %7608 = vst [vmem:[#allocation25_spill] sm:$0xff] %v4612_v49  ;;  %1135 = vmatpush.msrb.mxu2 %v1120_v28 }
  0xa4   :  { %1136 = vmatpush.msrb.mxu2 %v1119_v52  ;;  %v4620_v55 = vpop.f32.mrf.mxu2 }
  0xa5   :  { %7609 = vst [vmem:[#allocation26_spill] sm:$0xff] %v4620_v55 }
  0xa6   :  { %1137 = vmatpush.msrb.mxu2 %v1118_v54  ;;  %v4624_v60 = vpop.xlane.xlu1 %77 }
  0xa7   :  { %v4622_v56 = vpop.xlane.xlu0 %79  ;;  %v164_v57 = vpop.f32.mrf.mxu0  ;;  %7611 = vst [vmem:[#allocation28_spill] sm:$0xff] %v4624_v60  ;;  %v1116_v3 = vmul.f32 %v4556_v48, %v4624_v60 }
  0xa8   :  { %7610 = vst [vmem:[#allocation27_spill] sm:$0xff] %v4622_v56  ;;  %v1117_v61 = vmul.f32 %v4556_v48, %v4622_v56  ;;  %v4628_v63 = vld [vmem:[#allocation2 + $0x48] sm:$0xff]  ;;  %v4631_v1 = vpop.xlane.xlu2 %75 }
  0xa9   :  { %184 = vst.msk [vmem:[#allocation2 + $0x50] sm:$0xff] %vm28_vm0, %v164_v57  ;;  %4046 = vmatmul.msk.f32.gmra.mxu1 %vm28_vm0, %v4628_v63  ;;  %v1115_v4 = vmul.f32 %v4556_v48, %v4631_v1 }
  0xaa   :  { %7612 = vst [vmem:[#allocation29_spill] sm:$0xff] %v4631_v1  ;;  %1138 = vmatpush.msrb.mxu2 %v1117_v61 }
  0xac   :  { %1139 = vmatpush.msrb.mxu2 %v1116_v3  ;;  %v4639_v5 = vpop.f32.mrf.mxu2 }
  0xad   :  { %7613 = vst [vmem:[#allocation30_spill] sm:$0xff] %v4639_v5 }
  0xae   :  { %1140 = vmatpush.msrb.mxu2 %v1115_v4  ;;  %v4643_v13 = vpop.xlane.xlu1 %71 }
  0xaf   :  { %v4641_v8 = vpop.xlane.xlu0 %73  ;;  %v167_v10 = vpop.f32.mrf.mxu0  ;;  %7615 = vst [vmem:[#allocation32_spill] sm:$0xff] %v4643_v13  ;;  %v1113_v52 = vmul.f32 %v4556_v48, %v4643_v13 }
  0xb0   :  { %7614 = vst [vmem:[#allocation31_spill] sm:$0xff] %v4641_v8  ;;  %v1114_v14 = vmul.f32 %v4556_v48, %v4641_v8  ;;  %v4647_v19 = vld [vmem:[#allocation2 + $0x50] sm:$0xff]  ;;  %v4650_v28 = vpop.xlane.xlu2 %69 }
  0xb1   :  { %185 = vst.msk [vmem:[#allocation2 + $0x58] sm:$0xff] %vm28_vm0, %v167_v10  ;;  %4047 = vmatmul.msk.f32.gmra.mxu1 %vm28_vm0, %v4647_v19  ;;  %v1112_v54 = vmul.f32 %v4556_v48, %v4650_v28 }
  0xb2   :  { %7616 = vst [vmem:[#allocation33_spill] sm:$0xff] %v4650_v28  ;;  %1141 = vmatpush.msrb.mxu2 %v1114_v14 }
  0xb4   :  { %1142 = vmatpush.msrb.mxu2 %v1113_v52  ;;  %v4658_v57 = vpop.f32.mrf.mxu2 }
  0xb5   :  { %7617 = vst [vmem:[#allocation34_spill] sm:$0xff] %v4658_v57 }
  0xb6   :  { %1143 = vmatpush.msrb.mxu2 %v1112_v54 }
  0xb7   :  { %1144 = vmatmul.f32.vlgmr.msrb.gmra.mxu2 %v4490_v39  ;;  %v170_v61 = vpop.f32.mrf.mxu0 }
  0xb8   :  { %v4661_v3 = vld [vmem:[#allocation2 + $0x58] sm:$0xff]  ;;  %186 = vst.msk [vmem:[#allocation2 + $0x60] sm:$0xff] %vm28_vm0, %v170_v61 }
  0xb9   :  { %4048 = vmatmul.msk.f32.gmra.mxu1 %vm28_vm0, %v4661_v3 }
  0xbc   :  { %v4666_v4 = vpop.f32.mrf.mxu2 }
  0xbd   :  { %7618 = vst [vmem:[#allocation35_spill] sm:$0xff] %v4666_v4 }
  0xbf   :  { %1147 = vmatmul.f32.gmra.mxu2 %v4482_v38  ;;  %v173_v10 = vpop.f32.mrf.mxu0  ;;  %v4669_v48 = vld [vmem:[#allocation2 + $0x60] sm:$0xff] }
  0xc0   :  { %187 = vst.msk [vmem:[#allocation2 + $0x68] sm:$0xff] %vm28_vm0, %v173_v10 }
  0xc1   :  { %4049 = vmatmul.msk.f32.gmra.mxu1 %vm28_vm0, %v4669_v48 }
  0xc4   :  { %v4674_v39 = vpop.f32.mrf.mxu2 }
  0xc5   :  { %7619 = vst [vmem:[#allocation36_spill] sm:$0xff] %v4674_v39 }
  0xc7   :  { %1150 = vmatmul.f32.gmra.mxu2 %v4473_v37  ;;  %v176_v14 = vpop.f32.mrf.mxu0  ;;  %v4677_v52 = vld [vmem:[#allocation2 + $0x68] sm:$0xff] }
  0xc8   :  { %188 = vst.msk [vmem:[#allocation2 + $0x70] sm:$0xff] %vm28_vm0, %v176_v14 }
  0xc9   :  { %4050 = vmatmul.msk.f32.gmra.mxu1 %vm28_vm0, %v4677_v52 }
  0xcc   :  { %v4682_v38 = vpop.f32.mrf.mxu2 }
  0xcd   :  { %7620 = vst [vmem:[#allocation37_spill] sm:$0xff] %v4682_v38 }
  0xcf   :  { %1153 = vmatmul.f32.gmra.mxu2 %v4464_v36  ;;  %v179_v54 = vpop.f32.mrf.mxu0  ;;  %v4685_v61 = vld [vmem:[#allocation2 + $0x70] sm:$0xff] }
  0xd0   :  { %189 = vst.msk [vmem:[#allocation2 + $0x78] sm:$0xff] %vm28_vm0, %v179_v54  ;;  %v825_v54 = vperm.slane %v4553_v47, 5 }
  0xd1   :  { %4051 = vmatmul.msk.f32.gmra.mxu1 %vm28_vm0, %v4685_v61 }
  0xd2   :  { %v840_v17 = vmul.f32 %v825_v54, %v4572_v58  ;;  %v838_v23 = vmul.f32 %v825_v54, %v4579_v62 }
  0xd4   :  { %v4690_v37 = vpop.f32.mrf.mxu2 }
  0xd5   :  { %7621 = vst [vmem:[#allocation38_spill] sm:$0xff] %v4690_v37 }
  0xd7   :  { %1156 = vmatmul.f32.gmra.mxu2 %v4454_v34  ;;  %v4693_v10 = vld [vmem:[#allocation2 + $0x78] sm:$0xff] }
  0xd8   :  { %230 = vmatpush.msrb.mxu0 %v4693_v10 }
  0xd9   :  { %4052 = vmatmul.msk.f32.gmra.mxu1 %vm28_vm0, %v4693_v10 }
  0xda   :  { %231 = vmatpush.msrb.mxu0 %v4685_v61 }
  0xdc   :  { %232 = vmatpush.msrb.mxu0 %v4677_v52  ;;  %v4700_v36 = vpop.f32.mrf.mxu2 }
  0xdd   :  { %7622 = vst [vmem:[#allocation39_spill] sm:$0xff] %v4700_v36 }
  0xde   :  { %233 = vmatpush.msrb.mxu0 %v4669_v48 }
  0xdf   :  { %1159 = vmatmul.f32.gmra.mxu2 %v4448_v33  ;;  %v841_v33 = vmul.f32 %v825_v54, %v4564_v53 }
  0xe0   :  { %234 = vmatpush.msrb.mxu0 %v4661_v3 }
  0xe1   :  { %842 = vmatpush.msrb.mxu1 %v841_v33  ;;  %v836_v33 = vmul.f32 %v825_v54, %v4591_v9 }
  0xe2   :  { %235 = vmatpush.msrb.mxu0 %v4647_v19 }
  0xe3   :  { %843 = vmatpush.msrb.mxu1 %v840_v17 }
  0xe4   :  { %236 = vmatpush.msrb.mxu0 %v4628_v63  ;;  %v4707_v34 = vpop.f32.mrf.mxu2 }
  0xe5   :  { %7623 = vst [vmem:[#allocation40_spill] sm:$0xff] %v4707_v34 }
  0xe6   :  { %237 = vmatpush.msrb.mxu0 %v4609_v30 }
  0xe7   :  { %1162 = vmatmul.f32.gmra.mxu2 %v4437_v29  ;;  %4029 = vmatmul.msk.f32.vlgmr.msrb.gmra.mxu0 %vm28_vm0, %v4609_v30  ;;  %v839_v29 = vmul.f32 %v825_v54, %v4574_v59  ;;  %v555_v30 = vperm.slane %v4553_v47, 2 }
  0xe9   :  { %844 = vmatpush.msrb.mxu1 %v839_v29  ;;  %v562_v17 = vmul.f32 %v555_v30, %v4538_v43  ;;  %v561_v25 = vmul.f32 %v555_v30, %v4533_v41 }
  0xeb   :  { %845 = vmatpush.msrb.mxu1 %v838_v23  ;;  %v834_v23 = vmul.f32 %v825_v54, %v4603_v16 }
  0xec   :  { %v4713_v14 = vpop.f32.mrf.mxu2 }
  0xed   :  { %7624 = vst [vmem:[#allocation41_spill] sm:$0xff] %v4713_v14 }
  0xef   :  { %1165 = vmatmul.f32.gmra.mxu2 %v4427_v26  ;;  %4030 = vmatmul.msk.f32.gmra.mxu0 %vm28_vm0, %v4628_v63  ;;  %v563_v26 = vmul.f32 %v555_v30, %v4531_v40  ;;  %v837_v63 = vmul.f32 %v825_v54, %v4589_v6 }
  0xf1   :  { %596 = vmatpush.msra.mxu0 %v563_v26  ;;  %846 = vmatpush.msrb.mxu1 %v837_v63  ;;  %v559_v26 = vmul.f32 %v555_v30, %v4535_v42  ;;  %v833_v63 = vmul.f32 %v825_v54, %v4605_v20 }
  0xf3   :  { %597 = vmatpush.msra.mxu0 %v562_v17  ;;  %847 = vmatpush.msrb.mxu1 %v836_v33  ;;  %v558_v17 = vmul.f32 %v555_v30, %v4542_v45  ;;  %v557_v33 = vmul.f32 %v555_v30, %v4559_v50 }
  0xf4   :  { %v4722_v22 = vpop.f32.mrf.mxu2 }
  0xf5   :  { %7625 = vst [vmem:[#allocation42_spill] sm:$0xff] %v4722_v22  ;;  %598 = vmatpush.msra.mxu0 %v561_v25  ;;  %v832_v25 = vmul.f32 %v825_v54, %v4612_v49 }
  0xf7   :  { %1168 = vmatmul.f32.gmra.mxu2 %v4418_v24  ;;  %4031 = vmatmul.msk.f32.gmra.mxu0 %vm28_vm0, %v4647_v19  ;;  %v835_v24 = vmul.f32 %v825_v54, %v4596_v12  ;;  %v560_v19 = vmul.f32 %v555_v30, %v4540_v44 }
  0xf9   :  { %848 = vmatpush.msrb.mxu1 %v835_v24  ;;  %599 = vmatpush.msra.mxu0 %v560_v19  ;;  %v830_v19 = vmul.f32 %v825_v54, %v4624_v60 }
  0xfb   :  { %849 = vmatpush.msrb.mxu1 %v834_v23  ;;  %600 = vmatpush.msra.mxu0 %v559_v26  ;;  %v829_v23 = vmul.f32 %v825_v54, %v4631_v1  ;;  %v828_v26 = vmul.f32 %v825_v54, %v4641_v8 }
  0xfc   :  { %v4735_v29 = vpop.f32.mrf.mxu2 }
  0xfd   :  { %7626 = vst [vmem:[#allocation43_spill] sm:$0xff] %v4735_v29  ;;  %850 = vmatpush.msrb.mxu1 %v833_v63  ;;  %601 = vmatpush.msra.mxu0 %v558_v17  ;;  %v827_v63 = vmul.f32 %v825_v54, %v4643_v13 }
  0xff   :  { %1171 = vmatmul.f32.gmra.mxu2 %v4407_v21  ;;  %4032 = vmatmul.msk.f32.gmra.mxu0 %vm28_vm0, %v4661_v3  ;;  %v831_v21 = vmul.f32 %v825_v54, %v4622_v56  ;;  %v556_v3 = vmul.f32 %v555_v30, %v4561_v51  ;;  %v735_v30 = vperm.slane %v4553_v47, 4 }
 0x100   :  { %851 = vmatpush.msrb.mxu1 %v832_v25  ;;  %602 = vmatpush.msra.mxu0 %v557_v33  ;;  %v1453_v25 = vperm.slane %v4548_v46, 5 }
 0x102   :  { %852 = vmatpush.msrb.mxu1 %v831_v21  ;;  %603 = vmatpush.msra.mxu0 %v556_v3  ;;  %v1461_v33 = vmul.f32 %v1453_v25, %v4531_v40  ;;  %v742_v21 = vmul.f32 %v735_v30, %v4538_v43  ;;  %v1460_v3 = vmul.f32 %v1453_v25, %v4538_v43 }
 0x104   :  { %v4748_v24 = vpop.f32.mrf.mxu2  ;;  %853 = vmatpush.msrb.mxu1 %v830_v19 }
 0x105   :  { %7627 = vst [vmem:[#allocation44_spill] sm:$0xff] %v4748_v24 }
 0x106   :  { %854 = vmatpush.msrb.mxu1 %v829_v23  ;;  %v740_v23 = vmul.f32 %v735_v30, %v4540_v44 }
 0x107   :  { %1174 = vmatmul.f32.gmra.mxu2 %v4397_v18  ;;  %4033 = vmatmul.msk.f32.gmra.mxu0 %vm28_vm0, %v4669_v48  ;;  %v826_v18 = vmul.f32 %v825_v54, %v4650_v28  ;;  %v743_v48 = vmul.f32 %v735_v30, %v4531_v40  ;;  %v741_v54 = vmul.f32 %v735_v30, %v4533_v41 }
 0x108   :  { %855 = vmatpush.msrb.mxu1 %v828_v26  ;;  %v739_v26 = vmul.f32 %v735_v30, %v4535_v42 }
 0x109   :  { %776 = vmatpush.msrb.mxu0 %v743_v48  ;;  %v738_v48 = vmul.f32 %v735_v30, %v4542_v45 }
 0x10a   :  { %856 = vmatpush.msrb.mxu1 %v827_v63  ;;  %v1457_v63 = vmul.f32 %v1453_v25, %v4535_v42 }
 0x10b   :  { %777 = vmatpush.msrb.mxu0 %v742_v21  ;;  %v1454_v21 = vmul.f32 %v1453_v25, %v4561_v51 }
 0x10c   :  { %v4758_v17 = vpop.f32.mrf.mxu2  ;;  %857 = vmatpush.msrb.mxu1 %v826_v18 }
 0x10d   :  { %7628 = vst [vmem:[#allocation45_spill] sm:$0xff] %v4758_v17  ;;  %778 = vmatpush.msrb.mxu0 %v741_v54 }
 0x10e   :  { %1518 = vmatpush.msra.mxu1 %v1461_v33  ;;  %v1455_v33 = vmul.f32 %v1453_v25, %v4559_v50 }
 0x10f   :  { %1177 = vmatmul.f32.gmra.mxu2 %v4386_v15  ;;  %4034 = vmatmul.msk.f32.gmra.mxu0 %vm28_vm0, %v4677_v52  ;;  %v1459_v15 = vmul.f32 %v1453_v25, %v4533_v41  ;;  %v1458_v52 = vmul.f32 %v1453_v25, %v4540_v44 }
 0x110   :  { %1519 = vmatpush.msra.mxu1 %v1460_v3  ;;  %779 = vmatpush.msrb.mxu0 %v740_v23  ;;  %v7631_v3 = vld [vmem:[#allocation7_spill] sm:$0xff] }
 0x112   :  { %1520 = vmatpush.msra.mxu1 %v1459_v15  ;;  %780 = vmatpush.msrb.mxu0 %v739_v26 }
 0x114   :  { %v4772_v19 = vpop.f32.mrf.mxu2  ;;  %1521 = vmatpush.msra.mxu1 %v1458_v52  ;;  %781 = vmatpush.msrb.mxu0 %v738_v48  ;;  %v817_v48 = vld [vmem:[%s7473_s2] sm:$0xff] }
 0x115   :  { %7629 = vst [vmem:[#allocation46_spill] sm:$0xff] %v4772_v19  ;;  %858 = vmatmul.f32.vlgmr.msrb.gmra.mxu1 %v817_v48 }
 0x116   :  { %1522 = vmatpush.msra.mxu1 %v1457_v63 }
 0x117   :  { %1180 = vmatmul.f32.gmra.mxu2 %v4369_v11  ;;  %4035 = vmatmul.msk.f32.gmra.mxu0 %vm28_vm0, %v4685_v61  ;;  %v1456_v11 = vmul.f32 %v1453_v25, %v4542_v45  ;;  %v737_v61 = vmul.f32 %v735_v30, %v4559_v50 }
 0x119   :  { %1523 = vmatpush.msra.mxu1 %v1456_v11  ;;  %782 = vmatpush.msrb.mxu0 %v737_v61  ;;  %v7632_v11 = vld [vmem:[#allocation6_spill] sm:$0xff] }
 0x11b   :  { %1524 = vmatpush.msra.mxu1 %v1455_v33 }
 0x11c   :  { %v4781_v18 = vpop.f32.mrf.mxu2 }
 0x11d   :  { %7630 = vst [vmem:[#allocation47_spill] sm:$0xff] %v4781_v18  ;;  %416 = vmatpush.msra.mxu3 %v4781_v18  ;;  %1525 = vmatpush.msra.mxu1 %v1454_v21 }
 0x11f   :  { %1183 = vmatmul.f32.gmra.mxu2 %v4355_v7  ;;  %4036 = vmatmul.msk.f32.gmra.mxu0 %vm28_vm0, %v4693_v10  ;;  %v736_v7 = vmul.f32 %v735_v30, %v4561_v51 }
 0x120   :  { %417 = vmatpush.msra.mxu3 %v4772_v19 }
 0x121   :  { %783 = vmatpush.msrb.mxu0 %v736_v7 }
 0x122   :  { %418 = vmatpush.msra.mxu3 %v4758_v17 }
 0x124   :  { %419 = vmatpush.msra.mxu3 %v4748_v24 }
 0x126   :  { %420 = vmatpush.msra.mxu3 %v4735_v29 }
 0x127   :  { %1186 = vmatmul.f32.gmra.mxu2 %v4339_v2  ;;  %4037 = vmatmul.msk.f32.vlgmr.msra.gmra.mxu0 %vm28_vm0, %v4457_v35  ;;  %v4819_v2 = vperm.slane %v4548_v46, 4 }
 0x128   :  { %421 = vmatpush.msra.mxu3 %v4722_v22 }
 0x129   :  { %v1353_v30 = vmul.f32 %v4819_v2, %v4574_v59  ;;  %v1352_v25 = vmul.f32 %v4819_v2, %v4579_v62  ;;  %v1351_v15 = vmul.f32 %v4819_v2, %v4589_v6  ;;  %v1350_v52 = vmul.f32 %v4819_v2, %v4591_v9 }
 0x12a   :  { %422 = vmatpush.msra.mxu3 %v4713_v14  ;;  %v1349_v63 = vmul.f32 %v4819_v2, %v4596_v12  ;;  %v1348_v33 = vmul.f32 %v4819_v2, %v4603_v16  ;;  %v1347_v21 = vmul.f32 %v4819_v2, %v4605_v20  ;;  %v1341_v48 = vmul.f32 %v4819_v2, %v4643_v13 }
 0x12c   :  { %423 = vmatpush.msra.mxu3 %v4707_v34 }
 0x12e   :  { %424 = vmatpush.msra.mxu3 %v4700_v36 }
 0x12f   :  { %1189 = vmatmul.f32.gmra.mxu2 %v4331_v0  ;;  %4038 = vmatmul.msk.f32.gmra.mxu0 %vm28_vm0, %v4443_v32  ;;  %v4816_v0 = vperm.slane %v4548_v46, 3  ;;  %v1354_v46 = vmul.f32 %v4819_v2, %v4572_v58 }
 0x130   :  { %425 = vmatpush.msra.mxu3 %v4690_v37 }
 0x131   :  { %v1241_v32 = vmul.f32 %v4816_v0, %v4564_v53  ;;  %v1240_v35 = vmul.f32 %v4816_v0, %v4572_v58  ;;  %v1239_v10 = vmul.f32 %v4816_v0, %v4574_v59  ;;  %v1237_v54 = vmul.f32 %v4816_v0, %v4589_v6 }
 0x132   :  { %426 = vmatpush.msra.mxu3 %v4682_v38  ;;  %v1236_v23 = vmul.f32 %v4816_v0, %v4591_v9  ;;  %v1235_v26 = vmul.f32 %v4816_v0, %v4596_v12  ;;  %v1234_v61 = vmul.f32 %v4816_v0, %v4603_v16  ;;  %v1233_v7 = vmul.f32 %v4816_v0, %v4605_v20 }
 0x133   :  { %v525_v20 = vmul.f32 %v4535_v42, %v4535_v42 }
 0x134   :  { %427 = vmatpush.msra.mxu3 %v4674_v39 }
 0x136   :  { %428 = vmatpush.msra.mxu3 %v4666_v4 }
 0x137   :  { %4039 = vmatmul.msk.f32.gmra.mxu0 %vm28_vm0, %v4441_v31  ;;  %v1355_v31 = vmul.f32 %v4819_v2, %v4564_v53 }
 0x138   :  { %429 = vmatpush.msra.mxu3 %v4658_v57 }
 0x139   :  { %1356 = vmatpush.msra.mxu0 %v1355_v31  ;;  %v1346_v31 = vmul.f32 %v4819_v2, %v4612_v49 }
 0x13a   :  { %430 = vmatpush.msra.mxu3 %v4639_v5 }
 0x13b   :  { %1357 = vmatpush.msra.mxu0 %v1354_v46  ;;  %v7633_v46 = vld [vmem:[#allocation5_spill] sm:$0xff] }
 0x13c   :  { %431 = vmatpush.msra.mxu3 %v4620_v55 }
 0x13d   :  { %432 = vmatmul.f32.vlgmr.msra.gmra.mxu3 %v4620_v55  ;;  %1358 = vmatpush.msra.mxu0 %v1353_v30  ;;  %v1345_v30 = vmul.f32 %v4819_v2, %v4622_v56 }
 0x13e   :  { %1242 = vmatpush.msrb.mxu3 %v1241_v32  ;;  %v1232_v32 = vmul.f32 %v4816_v0, %v4612_v49  ;;  %v526_v49 = vmul.f32 %v4540_v44, %v4540_v44 }
 0x13f   :  { %4040 = vmatmul.msk.f32.gmra.mxu0 %vm28_vm0, %v4430_v27  ;;  %v1238_v27 = vmul.f32 %v4816_v0, %v4579_v62 }
 0x140   :  { %1243 = vmatpush.msrb.mxu3 %v1240_v35  ;;  %1359 = vmatpush.msra.mxu0 %v1352_v25  ;;  %v818_v35 = vld [vmem:[%s7473_s2 + $0x8] sm:$0xff]  ;;  %v1344_v25 = vmul.f32 %v4819_v2, %v4624_v60 }
 0x141   :  { %861 = vmatmul.f32.gmra.mxu1 %v818_v35  ;;  %v822_v35 = vld [vmem:[%s7473_s2 + $0x28] sm:$0xff] }
 0x142   :  { %1244 = vmatpush.msrb.mxu3 %v1239_v10  ;;  %1360 = vmatpush.msra.mxu0 %v1351_v15  ;;  %v1231_v10 = vmul.f32 %v4816_v0, %v4622_v56  ;;  %v819_v15 = vld [vmem:[%s7473_s2 + $0x10] sm:$0xff] }
 0x144   :  { %1245 = vmatpush.msrb.mxu3 %v1238_v27  ;;  %1361 = vmatpush.msra.mxu0 %v1350_v52  ;;  %v1230_v27 = vmul.f32 %v4816_v0, %v4624_v60  ;;  %v1228_v52 = vmul.f32 %v4816_v0, %v4641_v8 }
 0x145   :  { %435 = vmatmul.f32.gmra.mxu3 %v4639_v5 }
 0x146   :  { %1246 = vmatpush.msrb.mxu3 %v1237_v54  ;;  %1362 = vmatpush.msra.mxu0 %v1349_v63  ;;  %v1343_v54 = vmul.f32 %v4819_v2, %v4631_v1  ;;  %v1227_v63 = vmul.f32 %v4816_v0, %v4643_v13 }
 0x147   :  { %4041 = vmatmul.msk.f32.gmra.mxu0 %vm28_vm0, %v7631_v3  ;;  %v1229_v3 = vmul.f32 %v4816_v0, %v4631_v1 }
 0x148   :  { %1247 = vmatpush.msrb.mxu3 %v1236_v23  ;;  %1363 = vmatpush.msra.mxu0 %v1348_v33  ;;  %v7634_v23 = vld [vmem:[#allocation4_spill] sm:$0xff]  ;;  %v1340_v33 = vmul.f32 %v4819_v2, %v4650_v28 }
 0x149   :  { %864 = vmatmul.f32.gmra.mxu1 %v819_v15 }
 0x14a   :  { %1248 = vmatpush.msrb.mxu3 %v1235_v26  ;;  %1364 = vmatpush.msra.mxu0 %v1347_v21  ;;  %v1342_v26 = vmul.f32 %v4819_v2, %v4641_v8 }
 0x14c   :  { %1249 = vmatpush.msrb.mxu3 %v1234_v61  ;;  %1365 = vmatpush.msra.mxu0 %v1346_v31  ;;  %v1226_v61 = vmul.f32 %v4816_v0, %v4650_v28  ;;  %v821_v0 = vld [vmem:[%s7473_s2 + $0x20] sm:$0xff] }
 0x14d   :  { %438 = vmatmul.f32.gmra.mxu3 %v4658_v57 }
 0x14e   :  { %1250 = vmatpush.msrb.mxu3 %v1233_v7  ;;  %1366 = vmatpush.msra.mxu0 %v1345_v30  ;;  %v820_v7 = vld [vmem:[%s7473_s2 + $0x18] sm:$0xff]  ;;  %v823_v30 = vld [vmem:[%s7473_s2 + $0x30] sm:$0xff] }
 0x14f   :  { %4042 = vmatmul.msk.f32.gmra.mxu0 %vm28_vm0, %v7632_v11 }
 0x150   :  { %1251 = vmatpush.msrb.mxu3 %v1232_v32  ;;  %1367 = vmatpush.msra.mxu0 %v1344_v25 }
 0x151   :  { %867 = vmatmul.f32.gmra.mxu1 %v820_v7 }
 0x152   :  { %1252 = vmatpush.msrb.mxu3 %v1231_v10  ;;  %1368 = vmatpush.msra.mxu0 %v1343_v54  ;;  %v4939_v54 = vpop.f32.mrf.mxu1 }
 0x154   :  { %1253 = vmatpush.msrb.mxu3 %v1230_v27  ;;  %1369 = vmatpush.msra.mxu0 %v1342_v26 }
 0x155   :  { %441 = vmatmul.f32.gmra.mxu3 %v4666_v4 }
 0x156   :  { %1254 = vmatpush.msrb.mxu3 %v1229_v3  ;;  %1370 = vmatpush.msra.mxu0 %v1341_v48  ;;  %v824_v3 = vld [vmem:[%s7473_s2 + $0x38] sm:$0xff] }
 0x157   :  { %4043 = vmatmul.msk.f32.gmra.mxu0 %vm28_vm0, %v7633_v46 }
 0x158   :  { %1255 = vmatpush.msrb.mxu3 %v1228_v52  ;;  %1371 = vmatpush.msra.mxu0 %v1340_v33 }
 0x159   :  { %870 = vmatmul.f32.gmra.mxu1 %v821_v0 }
 0x15a   :  { %1256 = vmatpush.msrb.mxu3 %v1227_v63  ;;  %v4944_v52 = vpop.f32.mrf.mxu1 }
 0x15c   :  { %1257 = vmatpush.msrb.mxu3 %v1226_v61 }
 0x15d   :  { %444 = vmatmul.f32.gmra.mxu3 %v4674_v39 }
 0x15f   :  { %4044 = vmatmul.msk.f32.gmra.mxu0 %vm28_vm0, %v7634_v23 }
 0x161   :  { %873 = vmatmul.f32.gmra.mxu1 %v822_v35 }
 0x162   :  { %v4949_v48 = vpop.f32.mrf.mxu1 }
 0x164   :  { %v239_v11 = vpop.f32.mrf.mxu0 }
 0x165   :  { %447 = vmatmul.f32.gmra.mxu3 %v4682_v38  ;;  %263 = vst.msk [vmem:[#allocation2 + $0x80] sm:$0xff] %vm28_vm0, %v239_v11 }
 0x169   :  { %876 = vmatmul.f32.gmra.mxu1 %v823_v30 }
 0x16c   :  { %v242_v21 = vpop.f32.mrf.mxu0  ;;  %v727_v32 = vld [vmem:[#allocation2 + $0x80] sm:$0xff] }
 0x16d   :  { %450 = vmatmul.f32.gmra.mxu3 %v4690_v37  ;;  %264 = vst.msk [vmem:[#allocation2 + $0x88] sm:$0xff] %vm28_vm0, %v242_v21  ;;  %4053 = vmatmul.msk.f32.vlgmr.msrb.gmra.mxu0 %vm28_vm0, %v727_v32  ;;  %v1437_v21 = vld [vmem:[%s7474_s3] sm:$0xff]  ;;  %v4961_v32 = vpop.f32.mrf.mxu1 }
 0x171   :  { %879 = vmatmul.f32.gmra.mxu1 %v824_v3 }
 0x174   :  { %v245_v2 = vpop.f32.mrf.mxu0  ;;  %v728_v31 = vld [vmem:[#allocation2 + $0x88] sm:$0xff] }
 0x175   :  { %453 = vmatmul.f32.gmra.mxu3 %v4700_v36  ;;  %265 = vst.msk [vmem:[#allocation2 + $0x90] sm:$0xff] %vm28_vm0, %v245_v2  ;;  %4054 = vmatmul.msk.f32.gmra.mxu0 %vm28_vm0, %v728_v31  ;;  %v1438_v2 = vld [vmem:[%s7474_s3 + $0x8] sm:$0xff]  ;;  %v4971_v31 = vpop.f32.mrf.mxu1 }
 0x179   :  { %4061 = vmatmul.msk.f32.vlgmr.msra.gmra.mxu1 %vm28_vm0, %v1437_v21 }
 0x17c   :  { %v248_v46 = vpop.f32.mrf.mxu0  ;;  %v729_v10 = vld [vmem:[#allocation2 + $0x90] sm:$0xff] }
 0x17d   :  { %456 = vmatmul.f32.gmra.mxu3 %v4707_v34  ;;  %266 = vst.msk [vmem:[#allocation2 + $0x98] sm:$0xff] %vm28_vm0, %v248_v46  ;;  %4055 = vmatmul.msk.f32.gmra.mxu0 %vm28_vm0, %v729_v10  ;;  %v1439_v46 = vld [vmem:[%s7474_s3 + $0x10] sm:$0xff]  ;;  %v4980_v10 = vpop.f32.mrf.mxu1 }
 0x181   :  { %4062 = vmatmul.msk.f32.gmra.mxu1 %vm28_vm0, %v1438_v2  ;;  %v1443_v2 = vld [vmem:[%s7474_s3 + $0x30] sm:$0xff] }
 0x184   :  { %v251_v27 = vpop.f32.mrf.mxu0  ;;  %v730_v25 = vld [vmem:[#allocation2 + $0x98] sm:$0xff] }
 0x185   :  { %459 = vmatmul.f32.gmra.mxu3 %v4713_v14  ;;  %267 = vst.msk [vmem:[#allocation2 + $0xa0] sm:$0xff] %vm28_vm0, %v251_v27  ;;  %4056 = vmatmul.msk.f32.gmra.mxu0 %vm28_vm0, %v730_v25  ;;  %v1440_v27 = vld [vmem:[%s7474_s3 + $0x18] sm:$0xff]  ;;  %v4992_v3 = vpop.f32.mrf.mxu1 }
 0x189   :  { %4063 = vmatmul.msk.f32.gmra.mxu1 %vm28_vm0, %v1439_v46 }
 0x18c   :  { %v254_v15 = vpop.f32.mrf.mxu0  ;;  %v731_v23 = vld [vmem:[#allocation2 + $0xa0] sm:$0xff] }
 0x18d   :  { %462 = vmatmul.f32.gmra.mxu3 %v4722_v22  ;;  %268 = vst.msk [vmem:[#allocation2 + $0xa8] sm:$0xff] %vm28_vm0, %v254_v15  ;;  %4057 = vmatmul.msk.f32.gmra.mxu0 %vm28_vm0, %v731_v23  ;;  %v1441_v23 = vld [vmem:[%s7474_s3 + $0x20] sm:$0xff] }
 0x191   :  { %4064 = vmatmul.msk.f32.gmra.mxu1 %vm28_vm0, %v1440_v27 }
 0x194   :  { %v257_v26 = vpop.f32.mrf.mxu0  ;;  %v732_v63 = vld [vmem:[#allocation2 + $0xa8] sm:$0xff] }
 0x195   :  { %465 = vmatmul.f32.gmra.mxu3 %v4735_v29  ;;  %269 = vst.msk [vmem:[#allocation2 + $0xb0] sm:$0xff] %vm28_vm0, %v257_v26  ;;  %4058 = vmatmul.msk.f32.gmra.mxu0 %vm28_vm0, %v732_v63  ;;  %v5005_v63 = vpop.f32.mrf.mxu1 }
 0x199   :  { %4065 = vmatmul.msk.f32.gmra.mxu1 %vm28_vm0, %v1441_v23  ;;  %v1444_v23 = vld [vmem:[%s7474_s3 + $0x38] sm:$0xff] }
 0x19c   :  { %v260_v11 = vpop.f32.mrf.mxu0  ;;  %v733_v61 = vld [vmem:[#allocation2 + $0xb0] sm:$0xff] }
 0x19d   :  { %468 = vmatmul.f32.gmra.mxu3 %v4748_v24  ;;  %270 = vst.msk [vmem:[#allocation2 + $0xb8] sm:$0xff] %vm28_vm0, %v260_v11  ;;  %4059 = vmatmul.msk.f32.gmra.mxu0 %vm28_vm0, %v733_v61  ;;  %v1442_v61 = vld [vmem:[%s7474_s3 + $0x28] sm:$0xff]  ;;  %v5017_v21 = vpop.f32.mrf.mxu1 }
 0x1a1   :  { %4066 = vmatmul.msk.f32.gmra.mxu1 %vm28_vm0, %v1442_v61 }
 0x1a4   :  { %v4954_v33 = vpop.f32.mrf.mxu0  ;;  %v734_v7 = vld [vmem:[#allocation2 + $0xb8] sm:$0xff] }
 0x1a5   :  { %471 = vmatmul.f32.gmra.mxu3 %v4758_v17  ;;  %4060 = vmatmul.msk.f32.gmra.mxu0 %vm28_vm0, %v734_v7 }
 0x1a9   :  { %4067 = vmatmul.msk.f32.gmra.mxu1 %vm28_vm0, %v1443_v2  ;;  %v1445_v2 = vld [vmem:[%s7474_s3 + $0x40] sm:$0xff] }
 0x1ac   :  { %v4964_v0 = vpop.f32.mrf.mxu0 }
 0x1ad   :  { %474 = vmatmul.f32.gmra.mxu3 %v4772_v19 }
 0x1b1   :  { %4068 = vmatmul.msk.f32.gmra.mxu1 %vm28_vm0, %v1444_v23 }
 0x1b4   :  { %v4973_v35 = vpop.f32.mrf.mxu0 }
 0x1b5   :  { %477 = vmatmul.f32.gmra.mxu3 %v4781_v18 }
 0x1b9   :  { %4069 = vmatmul.msk.f32.gmra.mxu1 %vm28_vm0, %v1445_v2 }
 0x1bc   :  { %v4982_v30 = vpop.f32.mrf.mxu0 }
 0x1bd   :  { %1258 = vmatmul.f32.vlgmr.msrb.gmra.mxu3 %v4620_v55 }
 0x1c0   :  { %v4989_v25 = vpop.f32.mrf.mxu3 }
 0x1c1   :  { %7635 = vst [vmem:[#allocation7_spill] sm:$0xff] %v4989_v25  ;;  %1372 = vmatmul.f32.vlgmr.msra.gmra.mxu0 %v4989_v25 }
 0x1c4   :  { %v4994_v15 = vpop.f32.mrf.mxu0 }
 0x1c5   :  { %1261 = vmatmul.f32.gmra.mxu3 %v4639_v5  ;;  %v522_v5 = vmul.f32 %v4561_v51, %v4561_v51 }
 0x1c8   :  { %v5001_v26 = vpop.f32.mrf.mxu3 }
 0x1c9   :  { %7636 = vst [vmem:[#allocation6_spill] sm:$0xff] %v5001_v26  ;;  %1375 = vmatmul.f32.gmra.mxu0 %v5001_v26 }
 0x1cc   :  { %v5007_v11 = vpop.f32.mrf.mxu0 }
 0x1cd   :  { %1264 = vmatmul.f32.gmra.mxu3 %v4658_v57  ;;  %v5080_v57 = vperm.slane %v4553_v47, 1 }
 0x1cf   :  { %v535_v13 = vmul.f32 %v5080_v57, %v526_v49 }
 0x1d0   :  { %v5012_v7 = vpop.f32.mrf.mxu3 }
 0x1d1   :  { %7637 = vst [vmem:[#allocation5_spill] sm:$0xff] %v5012_v7  ;;  %1378 = vmatmul.f32.gmra.mxu0 %v5012_v7  ;;  %v5036_v7 = vpop.f32.mrf.mxu1 }
 0x1d4   :  { %v5025_v27 = vpop.f32.mrf.mxu0 }
 0x1d5   :  { %1267 = vmatmul.f32.gmra.mxu3 %v4666_v4 }
 0x1d8   :  { %v5022_v46 = vpop.f32.mrf.mxu3 }
 0x1d9   :  { %7638 = vst [vmem:[#allocation4_spill] sm:$0xff] %v5022_v46  ;;  %1381 = vmatmul.f32.gmra.mxu0 %v5022_v46  ;;  %v5050_v23 = vpop.f32.mrf.mxu1 }
 0x1dc   :  { %v5038_v26 = vpop.f32.mrf.mxu0 }
 0x1dd   :  { %1270 = vmatmul.f32.gmra.mxu3 %v4674_v39 }
 0x1e0   :  { %v5032_v61 = vpop.f32.mrf.mxu3 }
 0x1e1   :  { %7639 = vst [vmem:[#allocation48_spill] sm:$0xff] %v5032_v61  ;;  %1384 = vmatmul.f32.gmra.mxu0 %v5032_v61  ;;  %v1446_v61 = vld [vmem:[%s7474_s3 + $0x48] sm:$0xff]  ;;  %v5063_v2 = vpop.f32.mrf.mxu1 }
 0x1e2   :  { %4070 = vmatmul.msk.f32.gmra.mxu1 %vm28_vm0, %v1446_v61  ;;  %v5073_v61 = vperm.slane %v4553_v47, 0  ;;  %v524_v47 = vmul.f32 %v4542_v45, %v4542_v45 }
 0x1e4   :  { %v506_v4 = vmul.f32 %v5073_v61, %v4559_v50  ;;  %v507_v55 = vmul.f32 %v5073_v61, %v4542_v45  ;;  %v508_v16 = vmul.f32 %v5073_v61, %v4535_v42  ;;  %v509_v59 = vmul.f32 %v5073_v61, %v4540_v44 }
 0x1e5   :  { %1273 = vmatmul.f32.gmra.mxu3 %v4682_v38  ;;  %v533_v58 = vmul.f32 %v5080_v57, %v524_v47  ;;  %v510_v56 = vmul.f32 %v5073_v61, %v4533_v41 }
 0x1e8   :  { %v5044_v46 = vpop.f32.mrf.mxu3 }
 0x1e9   :  { %7640 = vst [vmem:[#allocation49_spill] sm:$0xff] %v5044_v46  ;;  %1387 = vmatmul.f32.gmra.mxu0 %v5044_v46  ;;  %v1447_v46 = vld [vmem:[%s7474_s3 + $0x50] sm:$0xff]  ;;  %v5096_v9 = vpop.f32.mrf.mxu1 }
 0x1ea   :  { %v5048_v25 = vpop.f32.mrf.mxu0  ;;  %4071 = vmatmul.msk.f32.gmra.mxu1 %vm28_vm0, %v1447_v46  ;;  %v505_v46 = vmul.f32 %v5073_v61, %v4561_v51 }
 0x1ed   :  { %1276 = vmatmul.f32.gmra.mxu3 %v4690_v37 }
 0x1f0   :  { %v5056_v38 = vpop.f32.mrf.mxu3 }
 0x1f1   :  { %7641 = vst [vmem:[#allocation50_spill] sm:$0xff] %v5056_v38  ;;  %1390 = vmatmul.f32.gmra.mxu0 %v5056_v38 }
 0x1f2   :  { %v5060_v39 = vpop.f32.mrf.mxu0 }
 0x1f5   :  { %1279 = vmatmul.f32.gmra.mxu3 %v4700_v36  ;;  %v523_v36 = vmul.f32 %v4559_v50, %v4559_v50 }
 0x1f7   :  { %v532_v6 = vmul.f32 %v5080_v57, %v523_v36  ;;  %v531_v36 = vmul.f32 %v5080_v57, %v522_v5 }
 0x1f8   :  { %v5068_v37 = vpop.f32.mrf.mxu3 }
 0x1f9   :  { %7642 = vst [vmem:[#allocation51_spill] sm:$0xff] %v5068_v37  ;;  %1393 = vmatmul.f32.gmra.mxu0 %v5068_v37  ;;  %v5088_v37 = vld [vmem:[%s7472_s4 + $0x8] ss:$0 sm:$0xff] }
 0x1fa   :  { %v791_v38 = vpop.f32.mrf.mxu0  ;;  %v515_v12 = vadd.f32 %v5088_v37, %v506_v4  ;;  %v514_v4 = vadd.f32 %v5088_v37, %v505_v46  ;;  %v516_v53 = vadd.f32 %v5088_v37, %v507_v55  ;;  %v517_v8 = vadd.f32 %v5088_v37, %v508_v16 }
 0x1fb   :  { %v518_v46 = vadd.f32 %v5088_v37, %v509_v59  ;;  %v519_v28 = vadd.f32 %v5088_v37, %v510_v56 }
 0x1fc   :  { %v540_v1 = vadd.f32 %v532_v6, %v515_v12  ;;  %v539_v5 = vadd.f32 %v531_v36, %v514_v4  ;;  %v541_v47 = vadd.f32 %v533_v58, %v516_v53  ;;  %v1449_v6 = vld [vmem:[%s7474_s3 + $0x60] sm:$0xff]  ;;  %v874_v53 = vpop.f32.mrf.mxu1 }
 0x1fd   :  { %1282 = vmatmul.f32.gmra.mxu3 %v4707_v34  ;;  %v1448_v34 = vld [vmem:[%s7474_s3 + $0x58] sm:$0xff]  ;;  %v543_v49 = vadd.f32 %v535_v13, %v518_v46 }
 0x1fe   :  { %4072 = vmatmul.msk.f32.gmra.mxu1 %vm28_vm0, %v1448_v34  ;;  %v527_v34 = vmul.f32 %v4533_v41, %v4533_v41  ;;  %v630_v55 = vadd.f32 %v4964_v0, %v540_v1  ;;  %v629_v12 = vadd.f32 %v4954_v33, %v539_v5  ;;  %v631_v59 = vadd.f32 %v4973_v35, %v541_v47 }
 0x1ff   :  { %v511_v0 = vmul.f32 %v5073_v61, %v4538_v43  ;;  %v528_v33 = vmul.f32 %v4538_v43, %v4538_v43 }
 0x200   :  { %v5107_v62 = vpop.f32.mrf.mxu3  ;;  %v536_v42 = vmul.f32 %v5080_v57, %v527_v34  ;;  %v720_v56 = vadd.f32 %v4944_v52, %v630_v55  ;;  %v719_v35 = vadd.f32 %v4939_v54, %v629_v12  ;;  %v721_v36 = vadd.f32 %v4949_v48, %v631_v59  ;;  %v1450_v54 = vld [vmem:[%s7474_s3 + $0x68] sm:$0xff] }
 0x201   :  { %7643 = vst [vmem:[#allocation52_spill] sm:$0xff] %v5107_v62  ;;  %1396 = vmatmul.f32.gmra.mxu0 %v5107_v62  ;;  %v534_v62 = vmul.f32 %v5080_v57, %v525_v20  ;;  %v497_v34 = vlaneseq  ;;  %v512_v55 = vmul.f32 %v5073_v61, %v4531_v40 }
 0x202   :  { %v794_v60 = vpop.f32.mrf.mxu0  ;;  %v544_v1 = vadd.f32 %v536_v42, %v519_v28  ;;  %v810_v4 = vadd.f32 %v5060_v39, %v720_v56  ;;  %v809_v42 = vadd.f32 %v5048_v25, %v719_v35  ;;  %v811_v28 = vadd.f32 %v791_v38, %v721_v36  ;;  %v1451_v56 = vld [vmem:[%s7474_s3 + $0x70] sm:$0xff] }
 0x203   :  { %v542_v16 = vadd.f32 %v534_v62, %v517_v8  ;;  %v633_v8 = vadd.f32 %v4994_v15, %v543_v49  ;;  %v537_v39 = vmul.f32 %v5080_v57, %v528_v33 }
 0x204   :  { %v634_v13 = vadd.f32 %v5007_v11, %v544_v1  ;;  %v884_v48 = vadd.f32 %v5036_v7, %v810_v4  ;;  %v883_v38 = vadd.f32 %v5017_v21, %v809_v42  ;;  %v877_v47 = vpop.f32.mrf.mxu1 }
 0x205   :  { %1285 = vmatmul.f32.gmra.mxu3 %v4713_v14  ;;  %v632_v58 = vadd.f32 %v4982_v30, %v542_v16  ;;  %v520_v30 = vadd.f32 %v5088_v37, %v511_v0  ;;  %v723_v46 = vadd.f32 %v4971_v31, %v633_v8  ;;  %v5172_v31 = vand.u32 127, %v497_v34  ;;  %v7668_v14 = vld [vmem:[#allocation28_spill] sm:$0xff] }
 0x206   :  { %4073 = vmatmul.msk.f32.gmra.mxu1 %vm28_vm0, %v1449_v6  ;;  %v724_v5 = vadd.f32 %v4980_v10, %v634_v13  ;;  %v892_v12 = vmax.f32 %v884_v48, 0.0  ;;  %v891_v10 = vmax.f32 %v883_v38, 0.0 }
 0x207   :  { %v722_v52 = vadd.f32 %v4961_v32, %v632_v58  ;;  %v885_v32 = vadd.f32 %v5050_v23, %v811_v28  ;;  %v545_v6 = vadd.f32 %v537_v39, %v520_v30  ;;  %v521_v58 = vadd.f32 %v5088_v37, %v512_v55 }
 0x208   :  { %v5136_v20 = vpop.f32.mrf.mxu3  ;;  %vm499_vm1 = vcmp.lt.s32.totalorder %v5172_v31, 8 }
 0x209   :  { %7644 = vst [vmem:[#allocation53_spill] sm:$0xff] %v5136_v20  ;;  %1399 = vmatmul.f32.gmra.mxu0 %v5136_v20  ;;  %v812_v15 = vadd.f32 %v794_v60, %v722_v52  ;;  %v529_v60 = vmul.f32 %v4531_v40, %v4531_v40  ;;  %v635_v23 = vadd.f32 %v5025_v27, %v545_v6  ;;  %v893_v16 = vmax.f32 %v885_v32, 0.0 }
 0x20a   :  { %v797_v62 = vpop.f32.mrf.mxu0 }
 0x20b   :  { %v813_v25 = vadd.f32 %v797_v62, %v723_v46  ;;  %v886_v59 = vadd.f32 %v5063_v2, %v812_v15  ;;  %v538_v49 = vmul.f32 %v5080_v57, %v529_v60  ;;  %v5186_v2 = vsel %vm499_vm1, %v884_v48, %v892_v12  ;;  %v5201_v62 = vpop.f32.mrf.mxu2 }
 0x20c   :  { %v5198_v57 = vsel %vm499_vm1, %v885_v32, %v893_v16  ;;  %v725_v33 = vadd.f32 %v4992_v3, %v635_v23  ;;  %v930_v8 = vmul.f32 %v5186_v2, %v5186_v2  ;;  %v909_v3 = vsel %vm907_vm2, %v5186_v2, 0.0  ;;  %v880_v52 = vpop.f32.mrf.mxu1 }
 0x20d   :  { %1288 = vmatmul.f32.gmra.mxu3 %v4722_v22  ;;  %v887_v61 = vadd.f32 %v5096_v9, %v813_v25  ;;  %v894_v1 = vmax.f32 %v886_v59, 0.0  ;;  %v5194_v9 = vsel %vm499_vm1, %v883_v38, %v891_v10  ;;  %v931_v28 = vmul.f32 %v5198_v57, %v5198_v57 }
 0x20e   :  { %4074 = vmatmul.msk.f32.gmra.mxu1 %vm28_vm0, %v1450_v54  ;;  %v929_v42 = vmul.f32 %v5194_v9, %v5194_v9  ;;  %v908_v39 = vsel %vm907_vm2, %v5194_v9, 0.0  ;;  %v938_v48 = vsel %vm907_vm2, %v930_v8, 0.0  ;;  %v911_v15 = vsel %vm907_vm2, %v5198_v57, 0.0 }
 0x20f   :  { %v895_v37 = vmax.f32 %v887_v61, 0.0  ;;  %v5207_v4 = vsel %vm499_vm1, %v886_v59, %v894_v1  ;;  %v910_v38 = vadd.f32 %v909_v3, %v908_v39  ;;  %v940_v60 = vsel %vm907_vm2, %v931_v28, 0.0 }
 0x210   :  { %v5161_v11 = vpop.f32.mrf.mxu3  ;;  %v932_v46 = vmul.f32 %v5207_v4, %v5207_v4  ;;  %v937_v55 = vsel %vm907_vm2, %v929_v42, 0.0 }
 0x211   :  { %7645 = vst [vmem:[#allocation54_spill] sm:$0xff] %v5161_v11  ;;  %1402 = vmatmul.f32.gmra.mxu0 %v5161_v11  ;;  %v5219_v34 = vsel %vm499_vm1, %v887_v61, %v895_v37  ;;  %v939_v6 = vadd.f32 %v938_v48, %v937_v55  ;;  %v912_v12 = vadd.f32 %v911_v15, %v910_v38 }
 0x212   :  { %v800_v7 = vpop.f32.mrf.mxu0  ;;  %v942_v23 = vsel %vm907_vm2, %v932_v46, 0.0  ;;  %v915_v10 = vsel %vm907_vm2, %v5219_v34, 0.0 }
 0x213   :  { %v814_v21 = vadd.f32 %v800_v7, %v724_v5  ;;  %v913_v7 = vsel %vm907_vm2, %v5207_v4, 0.0  ;;  %v5255_v1 = vpop.f32.mrf.mxu2 }
 0x215   :  { %1291 = vmatmul.f32.gmra.mxu3 %v4735_v29  ;;  %v888_v27 = vadd.f32 %v874_v53, %v814_v21  ;;  %v546_v53 = vadd.f32 %v538_v49, %v521_v58  ;;  %v941_v58 = vadd.f32 %v940_v60, %v939_v6  ;;  %v914_v49 = vadd.f32 %v913_v7, %v912_v12 }
 0x216   :  { %4075 = vmatmul.msk.f32.gmra.mxu1 %vm28_vm0, %v1451_v56 }
 0x217   :  { %v896_v36 = vmax.f32 %v888_v27, 0.0  ;;  %v636_v30 = vadd.f32 %v5038_v26, %v546_v53  ;;  %v1452_v26 = vld [vmem:[%s7474_s3 + $0x78] sm:$0xff]  ;;  %v943_v53 = vadd.f32 %v942_v23, %v941_v58  ;;  %v916_v8 = vadd.f32 %v915_v10, %v914_v49 }
 0x218   :  { %v5188_v0 = vpop.f32.mrf.mxu3 }
 0x219   :  { %7646 = vst [vmem:[#allocation55_spill] sm:$0xff] %v5188_v0  ;;  %1405 = vmatmul.f32.gmra.mxu0 %v5188_v0  ;;  %v5233_v32 = vsel %vm499_vm1, %v888_v27, %v896_v36  ;;  %v726_v21 = vadd.f32 %v5005_v63, %v636_v30 }
 0x21a   :  { %v803_v35 = vpop.f32.mrf.mxu0  ;;  %v934_v16 = vmul.f32 %v5233_v32, %v5233_v32  ;;  %v917_v37 = vsel %vm907_vm2, %v5233_v32, 0.0 }
 0x21b   :  { %v815_v13 = vadd.f32 %v803_v35, %v725_v33  ;;  %v5263_v33 = vpop.f32.mrf.mxu1  ;;  %v918_v3 = vadd.f32 %v917_v37, %v916_v8 }
 0x21c   :  { %v946_v36 = vsel %vm907_vm2, %v934_v16, 0.0 }
 0x21d   :  { %1294 = vmatmul.f32.gmra.mxu3 %v4748_v24  ;;  %v889_v54 = vadd.f32 %v877_v47, %v815_v13  ;;  %v933_v47 = vmul.f32 %v5219_v34, %v5219_v34  ;;  %v7667_v24 = vld [vmem:[#allocation29_spill] sm:$0xff] }
 0x21e   :  { %4076 = vmatmul.msk.f32.gmra.mxu1 %vm28_vm0, %v1452_v26  ;;  %v1049_v22 = vmul.f32 %v7667_v24, %v7667_v24 }
 0x21f   :  { %v897_v25 = vmax.f32 %v889_v54, 0.0  ;;  %v944_v27 = vsel %vm907_vm2, %v933_v47, 0.0  ;;  %v5284_v47 = vpop.f32.mrf.mxu2 }
 0x220   :  { %v5235_v5 = vpop.f32.mrf.mxu3  ;;  %v945_v42 = vadd.f32 %v944_v27, %v943_v53 }
 0x221   :  { %7647 = vst [vmem:[#allocation56_spill] sm:$0xff] %v5235_v5  ;;  %1408 = vmatmul.f32.gmra.mxu0 %v5235_v5  ;;  %v5247_v59 = vsel %vm499_vm1, %v889_v54, %v897_v25 }
 0x222   :  { %v806_v61 = vpop.f32.mrf.mxu0  ;;  %v935_v63 = vmul.f32 %v5247_v59, %v5247_v59  ;;  %v919_v13 = vsel %vm907_vm2, %v5247_v59, 0.0  ;;  %v947_v39 = vadd.f32 %v946_v36, %v945_v42 }
 0x223   :  { %v816_v56 = vadd.f32 %v806_v61, %v726_v21  ;;  %v920_v48 = vadd.f32 %v919_v13, %v918_v3  ;;  %v5282_v55 = vpop.f32.mrf.mxu1 }
 0x224   :  { %v948_v54 = vsel %vm907_vm2, %v935_v63, 0.0 }
 0x225   :  { %1297 = vmatmul.f32.gmra.mxu3 %v4758_v17  ;;  %v890_v35 = vadd.f32 %v880_v52, %v816_v56  ;;  %v949_v26 = vadd.f32 %v948_v54, %v947_v39 }
 0x227   :  { %v898_v28 = vmax.f32 %v890_v35, 0.0  ;;  %v5294_v53 = vpop.f32.mrf.mxu2 }
 0x228   :  { %v5268_v30 = vpop.f32.mrf.mxu3 }
 0x229   :  { %7648 = vst [vmem:[#allocation57_spill] sm:$0xff] %v5268_v30  ;;  %1411 = vmatmul.f32.gmra.mxu0 %v5268_v30  ;;  %v5274_v15 = vsel %vm499_vm1, %v890_v35, %v898_v28 }
 0x22a   :  { %v921_v52 = vsel %vm907_vm2, %v5274_v15, 0.0  ;;  %v936_v46 = vmul.f32 %v5274_v15, %v5274_v15 }
 0x22b   :  { %v922_v38 = vadd.f32 %v921_v52, %v920_v48  ;;  %v5290_v56 = vpop.f32.mrf.mxu1 }
 0x22c   :  { %v950_v25 = vsel %vm907_vm2, %v936_v46, 0.0 }
 0x22d   :  { %1300 = vmatmul.f32.gmra.mxu3 %v4772_v19  ;;  %v923_v60 = vrot.slane %v922_v38, 4  ;;  %v951_v7 = vadd.f32 %v950_v25, %v949_v26 }
 0x22f   :  { %v924_v6 = vadd.f32 %v923_v60, %v922_v38  ;;  %v952_v12 = vrot.slane %v951_v7, 4  ;;  %v5307_v52 = vpop.f32.mrf.mxu2 }
 0x230   :  { %v5286_v21 = vpop.f32.mrf.mxu3 }
 0x231   :  { %7649 = vst [vmem:[#allocation58_spill] sm:$0xff] %v5286_v21  ;;  %1414 = vmatmul.f32.gmra.mxu0 %v5286_v21  ;;  %v925_v23 = vrot.slane %v924_v6, 2  ;;  %v953_v10 = vadd.f32 %v952_v12, %v951_v7 }
 0x233   :  { %v926_v16 = vadd.f32 %v925_v23, %v924_v6  ;;  %v954_v61 = vrot.slane %v953_v10, 2  ;;  %v5305_v39 = vpop.f32.mrf.mxu1 }
 0x235   :  { %1303 = vmatmul.f32.gmra.mxu3 %v4781_v18  ;;  %v927_v58 = vrot.slane %v926_v16, 1  ;;  %v955_v49 = vadd.f32 %v954_v61, %v953_v10 }
 0x237   :  { %v928_v27 = vadd.f32 %v927_v58, %v926_v16  ;;  %v956_v37 = vrot.slane %v955_v49, 1  ;;  %v5315_v7 = vpop.f32.mrf.mxu2 }
 0x238   :  { %v5292_v63 = vpop.f32.mrf.mxu3 }
 0x239   :  { %7650 = vst [vmem:[#allocation59_spill] sm:$0xff] %v5292_v63  ;;  %1417 = vmatmul.f32.gmra.mxu0 %v5292_v63  ;;  %v957_v8 = vadd.f32 %v956_v37, %v955_v49  ;;  %v5297_v35 = vmul.f32 0.015625, %v928_v27  ;;  %v4188_v49 = vld [vmem:[%s7472_s4 + $0x9] ss:$0 sm:$0xff] }
 0x23b   :  { %v959_v36 = vmul.f32 0.015625, %v957_v8  ;;  %v960_v13 = vmul.f32 %v5297_v35, %v5297_v35  ;;  %v5313_v60 = vpop.f32.mrf.mxu1  ;;  %v970_v58 = vsub.f32 %v5274_v15, %v5297_v35  ;;  %v969_v27 = vsub.f32 %v5247_v59, %v5297_v35 }
 0x23c   :  { %v965_v37 = vsub.f32 %v5198_v57, %v5297_v35  ;;  %v964_v8 = vsub.f32 %v5186_v2, %v5297_v35  ;;  %v968_v15 = vsub.f32 %v5233_v32, %v5297_v35  ;;  %v4189_v57 = vld [vmem:[%s7472_s4 + $0xa] ss:$0 sm:$0xff] }
 0x23d   :  { %v961_v42 = vsub.f32 %v959_v36, %v960_v13  ;;  %v963_v13 = vsub.f32 %v5194_v9, %v5297_v35 }
 0x23e   :  { %v5301_v3 = vpop.f32.mrf.mxu0 }
 0x23f   :  { %v962_v28 = vmax.f32 %v961_v42, 0.0  ;;  %v967_v42 = vsub.f32 %v5219_v34, %v5297_v35 }
 0x240   :  { %v5303_v54 = vpop.f32.mrf.mxu3 }
 0x241   :  { %v971_v48 = vadd.f32 1e-05, %v962_v28 }
 0x243   :  { %4202 = vrsqrt.f32 %v971_v48  ;;  %vm978_vm4 = vweird.f32 %v971_v48  ;;  %v5338_v28 = vpop.f32.mrf.mxu1 }
 0x246   :  { %v5309_v46 = vpop.f32.mrf.mxu0 }
 0x248   :  { %v5311_v26 = vpop.f32.mrf.mxu3 }
 0x249   :  { %v4203_v38 = vpop.eup %4202 }
 0x24a   :  { %v973_v25 = vmul.f32 %v4203_v38, %v971_v48  ;;  %vm979_vm3 = vweird.f32 %v4203_v38 }
 0x24b   :  { %vm980_vm5 = vmor %vm978_vm4, %vm979_vm3 }
 0x24c   :  { %v974_v6 = vmul.f32 %v4203_v38, %v973_v25 }
 0x24e   :  { %v5317_v12 = vpop.f32.mrf.mxu0  ;;  %v975_v23 = vmul.f32 0.5, %v974_v6  ;;  %v5345_v6 = vpop.f32.mrf.mxu2 }
 0x250   :  { %v5319_v10 = vpop.f32.mrf.mxu3  ;;  %v976_v16 = vsub.f32 1.5, %v975_v23 }
 0x252   :  { %v977_v61 = vmul.f32 %v4203_v38, %v976_v16 }
 0x254   :  { %v981_v36 = vsel %vm980_vm5, %v4203_v38, %v977_v61 }
 0x255   :  { %v989_v48 = vmul.f32 %v981_v36, %v970_v58  ;;  %v988_v2 = vmul.f32 %v981_v36, %v969_v27  ;;  %v984_v38 = vmul.f32 %v981_v36, %v965_v37  ;;  %v983_v25 = vmul.f32 %v981_v36, %v964_v8 }
 0x256   :  { %v5340_v59 = vpop.f32.mrf.mxu0  ;;  %v982_v9 = vmul.f32 %v981_v36, %v963_v13  ;;  %v987_v23 = vmul.f32 %v981_v36, %v968_v15  ;;  %v986_v32 = vmul.f32 %v981_v36, %v967_v42  ;;  %v966_v15 = vsub.f32 %v5207_v4, %v5297_v35  ;;  %v5375_v4 = vpop.f32.mrf.mxu1 }
 0x257   :  { %v998_v34 = vmul.f32 %v4188_v49, %v989_v48  ;;  %v997_v61 = vmul.f32 %v4188_v49, %v988_v2  ;;  %v993_v63 = vmul.f32 %v4188_v49, %v984_v38  ;;  %v992_v58 = vmul.f32 %v4188_v49, %v983_v25 }
 0x258   :  { %v5347_v16 = vpop.f32.mrf.mxu3  ;;  %v991_v21 = vmul.f32 %v4188_v49, %v982_v9  ;;  %v996_v5 = vmul.f32 %v4188_v49, %v987_v23  ;;  %v995_v13 = vmul.f32 %v4188_v49, %v986_v32  ;;  %v5383_v23 = vpop.f32.mrf.mxu2 }
 0x259   :  { %v5349_v30 = vadd.f32 %v4189_v57, %v998_v34  ;;  %v5351_v0 = vadd.f32 %v4189_v57, %v993_v63  ;;  %v5353_v27 = vadd.f32 %v4189_v57, %v992_v58  ;;  %v5356_v37 = vadd.f32 %v4189_v57, %v997_v61  ;;  %v7659_v34 = vld [vmem:[#allocation10_spill] sm:$0xff]  ;;  %v1810_v58 = vld [vmem:[#allocation2] sm:$0xff] }
 0x25a   :  { %v5358_v8 = vadd.f32 %v4189_v57, %v991_v21  ;;  %v5371_v38 = vadd.f32 %v4189_v57, %v996_v5  ;;  %v985_v21 = vmul.f32 %v981_v36, %v966_v15  ;;  %v5381_v25 = vadd.f32 %v4189_v57, %v995_v13 }
 0x25b   :  { %7651 = vst [vmem:[#allocation60_spill] sm:$0xff] %v5349_v30  ;;  %1882 = vmatpush.msra.mxu2 %v5349_v30  ;;  %v2006_v42 = vmul.f32 %v5351_v0, %v4542_v45  ;;  %v2005_v48 = vmul.f32 %v5353_v27, %v4559_v50  ;;  %v7663_v50 = vld [vmem:[#allocation32_spill] sm:$0xff] }
 0x25c   :  { %7652 = vst [vmem:[#allocation61_spill] sm:$0xff] %v5351_v0  ;;  %v2004_v63 = vmul.f32 %v5358_v8, %v4561_v51  ;;  %v994_v9 = vmul.f32 %v4188_v49, %v985_v21  ;;  %v2009_v36 = vmul.f32 %v5371_v38, %v4533_v41  ;;  %v2008_v32 = vmul.f32 %v5381_v25, %v4540_v44  ;;  %v5442_v44 = vld [vmem:[%s7472_s4 + $0x18] ss:$0 sm:$0xff] }
 0x25d   :  { %7653 = vst [vmem:[#allocation62_spill] sm:$0xff] %v5353_v27  ;;  %1883 = vmatpush.msra.mxu2 %v5356_v37  ;;  %2024 = vrot.lane.b32.xlu2 %v2006_v42, %s4293_s0  ;;  %v2011_v42 = vmul.f32 %v5349_v30, %v4531_v40  ;;  %v1047_v45 = vmul.f32 %v7663_v50, %v7663_v50 }
 0x25e   :  { %7654 = vst [vmem:[#allocation63_spill] sm:$0xff] %v5356_v37  ;;  %v5369_v2 = vpop.f32.mrf.mxu0  ;;  %2022 = vrot.lane.b32.xlu1 %v2005_v48, %s4293_s0  ;;  %2020 = vrot.lane.b32.xlu0 %v2004_v63, %s4293_s0  ;;  %v5386_v5 = vadd.f32 %v4189_v57, %v994_v9  ;;  %v5404_v13 = vpop.f32.mrf.mxu1  ;;  %v2010_v48 = vmul.f32 %v5356_v37, %v4538_v43  ;;  %v1811_v9 = vld [vmem:[#allocation2 + $0x8] sm:$0xff] }
 0x25f   :  { %7655 = vst [vmem:[#allocation64_spill] sm:$0xff] %v5358_v8  ;;  %1884 = vmatpush.msra.mxu2 %v5371_v38  ;;  %v7662_v43 = vld [vmem:[#allocation33_spill] sm:$0xff] }
 0x260   :  { %7656 = vst [vmem:[#allocation65_spill] sm:$0xff] %v5371_v38  ;;  %v5379_v35 = vpop.f32.mrf.mxu3  ;;  %v2007_v61 = vmul.f32 %v5386_v5, %v7659_v34  ;;  %v5407_v15 = vpop.f32.mrf.mxu2 }
 0x261   :  { %7657 = vst [vmem:[#allocation66_spill] sm:$0xff] %v5381_v25  ;;  %1885 = vmatpush.msra.mxu2 %v5381_v25 }
 0x262   :  { %7658 = vst [vmem:[#allocation67_spill] sm:$0xff] %v5386_v5 }
 0x263   :  { %1886 = vmatpush.msra.mxu2 %v5386_v5  ;;  %7660 = vst [vmem:[#allocation68_spill] sm:$0xff] %v5404_v13  ;;  %v7673_v13 = vld [vmem:[#allocation16_spill] sm:$0xff] }
 0x265   :  { %1887 = vmatpush.msra.mxu2 %v5351_v0  ;;  %2030 = vrot.lane.b32.xlu2 %v2009_v36, %s4293_s0  ;;  %v1813_v0 = vld [vmem:[#allocation2 + $0x18] sm:$0xff] }
 0x266   :  { %v5396_v49 = vpop.f32.mrf.mxu0  ;;  %2028 = vrot.lane.b32.xlu1 %v2008_v32, %s4293_s0  ;;  %2026 = vrot.lane.b32.xlu0 %v2007_v61, %s4293_s0  ;;  %v5421_v36 = vpop.f32.mrf.mxu1 }
 0x267   :  { %1888 = vmatpush.msra.mxu2 %v5353_v27  ;;  %7661 = vst [vmem:[#allocation69_spill] sm:$0xff] %v5421_v36 }
 0x268   :  { %v5402_v57 = vpop.f32.mrf.mxu3  ;;  %v5423_v32 = vpop.f32.mrf.mxu2 }
 0x269   :  { %1889 = vmatpush.msra.mxu2 %v5358_v8 }
 0x26a   :  { %4077 = vmatmul.msk.f32.vlgmr.msra.gmra.mxu2 %vm28_vm0, %v1810_v58  ;;  %v4212_v58 = vld [vmem:[%s7472_s4 + $0x10] sm:$0x3f] }
 0x26b   :  { %v5430_v40 = vperm.slane %v4212_v58, 0  ;;  %v5444_v34 = vperm.slane %v4212_v58, 1 }
 0x26d   :  { %v1013_v41 = vmul.f32 %v5430_v40, %v7662_v43  ;;  %v1014_v51 = vmul.f32 %v5430_v40, %v7663_v50  ;;  %v1016_v29 = vmul.f32 %v5430_v40, %v7667_v24  ;;  %v1017_v8 = vmul.f32 %v5430_v40, %v7668_v14  ;;  %v7669_v50 = vld [vmem:[#allocation27_spill] sm:$0xff] }
 0x26e   :  { %v5414_v63 = vpop.f32.mrf.mxu0  ;;  %2034 = vrot.lane.b32.xlu1 %v2011_v42, %s4293_s0  ;;  %2032 = vrot.lane.b32.xlu0 %v2010_v48, %s4293_s0  ;;  %v1812_v48 = vld [vmem:[#allocation2 + $0x10] sm:$0xff]  ;;  %v5450_v11 = vpop.f32.mrf.mxu1  ;;  %v1064_v25 = vmul.f32 %v5444_v34, %v1047_v45  ;;  %v1051_v45 = vmul.f32 %v7669_v50, %v7669_v50 }
 0x26f   :  { %7664 = vst [vmem:[#allocation70_spill] sm:$0xff] %v5450_v11  ;;  %v1030_v20 = vadd.f32 %v5442_v44, %v1013_v41  ;;  %v1050_v41 = vmul.f32 %v7668_v14, %v7668_v14  ;;  %v1031_v5 = vadd.f32 %v5442_v44, %v1014_v51  ;;  %v1033_v24 = vadd.f32 %v5442_v44, %v1016_v29 }
 0x270   :  { %v5418_v21 = vpop.f32.mrf.mxu3  ;;  %v1034_v14 = vadd.f32 %v5442_v44, %v1017_v8  ;;  %v1018_v51 = vmul.f32 %v5430_v40, %v7669_v50  ;;  %v5496_v50 = vmul.f32 %v5430_v40, %v7673_v13 }
 0x272   :  { %4078 = vmatmul.msk.f32.gmra.mxu2 %vm28_vm0, %v1811_v9  ;;  %v1046_v9 = vmul.f32 %v7662_v43, %v7662_v43  ;;  %v1067_v43 = vmul.f32 %v5444_v34, %v1050_v41  ;;  %v1035_v8 = vadd.f32 %v5442_v44, %v1018_v51  ;;  %v7672_v41 = vld [vmem:[#allocation17_spill] sm:$0xff]  ;;  %7674 = vst [vmem:[#allocation74_spill] sm:$0xff] %v5496_v50 }
 0x273   :  { %v1027_v36 = vmul.f32 %v5430_v40, %v7672_v41 }
 0x274   :  { %v1063_v18 = vmul.f32 %v5444_v34, %v1046_v9  ;;  %v5468_v9 = vpop.f32.mrf.mxu2 }
 0x276   :  { %v5425_v61 = vpop.f32.mrf.mxu0  ;;  %v1079_v38 = vadd.f32 %v1063_v18, %v1030_v20  ;;  %v1080_v18 = vadd.f32 %v1064_v25, %v1031_v5  ;;  %v5488_v11 = vpop.f32.mrf.mxu1  ;;  %v1814_v5 = vld [vmem:[#allocation2 + $0x20] sm:$0xff] }
 0x277   :  { %7671 = vst [vmem:[#allocation73_spill] sm:$0xff] %v5488_v11 }
 0x278   :  { %v5432_v42 = vpop.f32.mrf.mxu3 }
 0x27a   :  { %4079 = vmatmul.msk.f32.gmra.mxu2 %vm28_vm0, %v1812_v48  ;;  %v7665_v48 = vld [vmem:[#allocation31_spill] sm:$0xff] }
 0x27b   :  { %v1015_v19 = vmul.f32 %v5430_v40, %v7665_v48  ;;  %v1048_v17 = vmul.f32 %v7665_v48, %v7665_v48  ;;  %v1066_v48 = vmul.f32 %v5444_v34, %v1049_v22  ;;  %v1083_v22 = vadd.f32 %v1067_v43, %v1034_v14 }
 0x27d   :  { %v1032_v37 = vadd.f32 %v5442_v44, %v1015_v19  ;;  %v1065_v30 = vmul.f32 %v5444_v34, %v1048_v17  ;;  %v1193_v17 = vadd.f32 %v5201_v62, %v1079_v38  ;;  %v1082_v20 = vadd.f32 %v1066_v48, %v1033_v24  ;;  %v7676_v24 = vld [vmem:[#allocation25_spill] sm:$0xff]  ;;  %v7678_v48 = vld [vmem:[#allocation19_spill] sm:$0xff] }
 0x27e   :  { %v5458_v58 = vpop.f32.mrf.mxu0  ;;  %v1194_v62 = vadd.f32 %v5255_v1, %v1080_v18  ;;  %v1019_v43 = vmul.f32 %v5430_v40, %v7676_v24  ;;  %v1052_v14 = vmul.f32 %v7676_v24, %v7676_v24  ;;  %v1025_v51 = vmul.f32 %v5430_v40, %v7678_v48  ;;  %v7679_v24 = vld [vmem:[#allocation24_spill] sm:$0xff] }
 0x27f   :  { %7666 = vst [vmem:[#allocation71_spill] sm:$0xff] %v5458_v58  ;;  %v1081_v29 = vadd.f32 %v1065_v30, %v1032_v37  ;;  %v5505_v30 = vpop.f32.mrf.mxu2  ;;  %v7677_v37 = vld [vmem:[#allocation18_spill] sm:$0xff]  ;;  %v1060_v18 = vmul.f32 %v7672_v41, %v7672_v41  ;;  %v1020_v11 = vmul.f32 %v5430_v40, %v7679_v24 }
 0x280   :  { %v5470_v27 = vpop.f32.mrf.mxu3  ;;  %v1026_v38 = vmul.f32 %v5430_v40, %v7677_v37  ;;  %v1059_v1 = vmul.f32 %v7677_v37, %v7677_v37  ;;  %v1308_v58 = vadd.f32 %v5311_v26, %v1194_v62  ;;  %v5529_v37 = vmul.f32 %v7673_v13, %v7673_v13 }
 0x281   :  { %v1195_v50 = vadd.f32 %v5284_v47, %v1081_v29  ;;  %v1307_v47 = vadd.f32 %v5303_v54, %v1193_v17  ;;  %v1036_v29 = vadd.f32 %v5442_v44, %v1019_v43  ;;  %v1069_v41 = vmul.f32 %v5444_v34, %v1052_v14 }
 0x282   :  { %4080 = vmatmul.msk.f32.gmra.mxu2 %vm28_vm0, %v1813_v0  ;;  %v1068_v0 = vmul.f32 %v5444_v34, %v1051_v45  ;;  %v1058_v45 = vmul.f32 %v7678_v48, %v7678_v48  ;;  %v5525_v48 = vadd.f32 %v5442_v44, %v1027_v36  ;;  %v1076_v36 = vmul.f32 %v5444_v34, %v1059_v1 }
 0x283   :  { %v1309_v26 = vadd.f32 %v5319_v10, %v1195_v50  ;;  %v1196_v54 = vadd.f32 %v5294_v53, %v1082_v20  ;;  %v1037_v17 = vadd.f32 %v5442_v44, %v1020_v11  ;;  %v1422_v14 = vadd.f32 %v5309_v46, %v1308_v58  ;;  %v7680_v10 = vld [vmem:[#allocation23_spill] sm:$0xff]  ;;  %v7681_v20 = vld [vmem:[#allocation20_spill] sm:$0xff]  ;;  %v7682_v58 = vld [vmem:[#allocation22_spill] sm:$0xff] }
 0x284   :  { %v1197_v50 = vadd.f32 %v5307_v52, %v1083_v22  ;;  %v1085_v53 = vadd.f32 %v1069_v41, %v1036_v29  ;;  %v1024_v11 = vmul.f32 %v5430_v40, %v7681_v20  ;;  %v5558_v52 = vpop.f32.mrf.mxu1  ;;  %v1022_v22 = vmul.f32 %v5430_v40, %v7682_v58  ;;  %v7683_v29 = vld [vmem:[#allocation21_spill] sm:$0xff] }
 0x285   :  { %v1310_v46 = vadd.f32 %v5347_v16, %v1196_v54  ;;  %v1055_v13 = vmul.f32 %v7682_v58, %v7682_v58  ;;  %v1056_v16 = vmul.f32 %v7683_v29, %v7683_v29  ;;  %v1576_v54 = vadd.f32 %v5282_v55, %v1422_v14 }
 0x286   :  { %v5485_v19 = vpop.f32.mrf.mxu0  ;;  %v1311_v41 = vadd.f32 %v5379_v35, %v1197_v50 }
 0x287   :  { %7670 = vst [vmem:[#allocation72_spill] sm:$0xff] %v5485_v19  ;;  %v1053_v19 = vmul.f32 %v7679_v24, %v7679_v24  ;;  %v1043_v24 = vadd.f32 %v5442_v44, %v1026_v38  ;;  %v1021_v38 = vmul.f32 %v5430_v40, %v7680_v10  ;;  %v1072_v55 = vmul.f32 %v5444_v34, %v1055_v13  ;;  %v1816_v13 = vld [vmem:[#allocation2 + $0x30] sm:$0xff] }
 0x288   :  { %v5498_v25 = vpop.f32.mrf.mxu3 }
 0x289   :  { %7675 = vst [vmem:[#allocation75_spill] sm:$0xff] %v5498_v25  ;;  %v1084_v25 = vadd.f32 %v1068_v0, %v1035_v8  ;;  %v1075_v8 = vmul.f32 %v5444_v34, %v1058_v45  ;;  %v1077_v0 = vmul.f32 %v5444_v34, %v1060_v18  ;;  %v1070_v43 = vmul.f32 %v5444_v34, %v1053_v19  ;;  %v1815_v18 = vld [vmem:[#allocation2 + $0x28] sm:$0xff] }
 0x28a   :  { %4081 = vmatmul.msk.f32.gmra.mxu2 %vm28_vm0, %v1814_v5  ;;  %v1042_v5 = vadd.f32 %v5442_v44, %v1025_v51  ;;  %v1054_v51 = vmul.f32 %v7680_v10, %v7680_v10  ;;  %v1421_v45 = vadd.f32 %v5301_v3, %v1307_v47  ;;  %v1423_v19 = vadd.f32 %v5317_v12, %v1309_v26  ;;  %v1181_v26 = vpop.f32.mrf.mxu2 }
 0x28b   :  { %v1057_v3 = vmul.f32 %v7681_v20, %v7681_v20  ;;  %v1198_v47 = vadd.f32 %v5315_v7, %v1084_v25  ;;  %v1023_v12 = vmul.f32 %v5430_v40, %v7683_v29  ;;  %v1086_v10 = vadd.f32 %v1070_v43, %v1037_v17 }
 0x28c   :  { %v1038_v58 = vadd.f32 %v5442_v44, %v1021_v38  ;;  %v1071_v20 = vmul.f32 %v5444_v34, %v1054_v51  ;;  %v1575_v35 = vadd.f32 %v5263_v33, %v1421_v45  ;;  %v1199_v7 = vadd.f32 %v5345_v6, %v1085_v53 }
 0x28d   :  { %v1577_v25 = vadd.f32 %v5290_v56, %v1423_v19  ;;  %v1424_v40 = vadd.f32 %v5340_v59, %v1310_v46  ;;  %v1312_v50 = vadd.f32 %v5402_v57, %v1198_v47  ;;  %v1039_v29 = vadd.f32 %v5442_v44, %v1022_v22 }
 0x28e   :  { %v5540_v62 = vpop.f32.mrf.mxu0  ;;  %v1091_v14 = vadd.f32 %v1075_v8, %v1042_v5  ;;  %v1425_v17 = vadd.f32 %v5369_v2, %v1311_v41  ;;  %v1041_v38 = vadd.f32 %v5442_v44, %v1024_v11  ;;  %v1074_v33 = vmul.f32 %v5444_v34, %v1057_v3 }
 0x28f   :  { %v1592_v6 = vmax.f32 %v1576_v54, 0.0  ;;  %v1313_v56 = vadd.f32 %v5418_v21, %v1199_v7  ;;  %v1087_v51 = vadd.f32 %v1071_v20, %v1038_v58  ;;  %v1040_v59 = vadd.f32 %v5442_v44, %v1023_v12 }
 0x290   :  { %v5552_v1 = vpop.f32.mrf.mxu3  ;;  %v1073_v57 = vmul.f32 %v5444_v34, %v1056_v16  ;;  %v1591_v45 = vmax.f32 %v1575_v35, 0.0  ;;  %v1200_v5 = vadd.f32 %v5383_v23, %v1086_v10  ;;  %v1593_v2 = vmax.f32 %v1577_v25, 0.0 }
 0x291   :  { %v1578_v8 = vadd.f32 %v5305_v39, %v1424_v40  ;;  %v1426_v53 = vadd.f32 %v5396_v49, %v1312_v50  ;;  %v1088_v11 = vadd.f32 %v1072_v55, %v1039_v29  ;;  %v1092_v19 = vadd.f32 %v1076_v36, %v1043_v24  ;;  %v5606_v39 = vpop.f32.mrf.mxu1 }
 0x292   :  { %4082 = vmatmul.msk.f32.gmra.mxu2 %vm28_vm0, %v1815_v18  ;;  %v5595_v46 = vadd.f32 %v1077_v0, %v5525_v48  ;;  %v1579_v21 = vadd.f32 %v5313_v60, %v1425_v17  ;;  %v1201_v20 = vadd.f32 %v5407_v15, %v1087_v51  ;;  %v5601_v58 = vsel %vm499_vm1, %v1576_v54, %v1592_v6  ;;  %v1184_v15 = vpop.f32.mrf.mxu2  ;;  %v7684_v54 = vld [vmem:[#allocation75_spill] sm:$0xff]  ;;  %v7686_v6 = vld [vmem:[#allocation68_spill] sm:$0xff] }
 0x293   :  { %v1427_v23 = vadd.f32 %v5414_v63, %v1313_v56  ;;  %v1314_v10 = vadd.f32 %v5432_v42, %v1200_v5  ;;  %v1202_v49 = vadd.f32 %v5423_v32, %v1088_v11  ;;  %v1089_v24 = vadd.f32 %v1073_v57, %v1040_v59  ;;  %v7687_v51 = vld [vmem:[#allocation72_spill] sm:$0xff] }
 0x294   :  { %v1090_v48 = vadd.f32 %v1074_v33, %v1041_v38  ;;  %v5611_v60 = vsel %vm499_vm1, %v1575_v35, %v1591_v45  ;;  %v5615_v36 = vsel %vm499_vm1, %v1577_v25, %v1593_v2  ;;  %v1594_v63 = vmax.f32 %v1578_v8, 0.0  ;;  %v1817_v25 = vld [vmem:[#allocation2 + $0x38] sm:$0xff] }
 0x295   :  { %v1580_v42 = vadd.f32 %v5338_v28, %v1426_v53  ;;  %v1315_v0 = vadd.f32 %v5470_v27, %v1201_v20  ;;  %v1203_v22 = vadd.f32 %v5468_v9, %v1089_v24  ;;  %v1661_v3 = vmul.f32 %v5601_v58, %v5601_v58 }
 0x296   :  { %v5584_v43 = vpop.f32.mrf.mxu0  ;;  %v1204_v32 = vadd.f32 %v5505_v30, %v1090_v48  ;;  %v1595_v41 = vmax.f32 %v1579_v21, 0.0  ;;  %v1205_v29 = vadd.f32 %v1181_v26, %v1091_v14  ;;  %v1581_v12 = vadd.f32 %v5375_v4, %v1427_v23 }
 0x297   :  { %v1428_v16 = vadd.f32 %v5425_v61, %v1314_v10  ;;  %v1316_v35 = vadd.f32 %v7684_v54, %v1202_v49  ;;  %v1206_v7 = vadd.f32 %v1184_v15, %v1092_v19  ;;  %v1660_v28 = vmul.f32 %v5611_v60, %v5611_v60  ;;  %v7685_v61 = vld [vmem:[#allocation71_spill] sm:$0xff]  ;;  %v7689_v15 = vld [vmem:[#allocation70_spill] sm:$0xff] }
 0x298   :  { %v1292_v18 = vpop.f32.mrf.mxu3  ;;  %v1624_v27 = vsel %vm907_vm2, %v5601_v58, 0.0  ;;  %v1662_v9 = vmul.f32 %v5615_v36, %v5615_v36  ;;  %v5634_v26 = vsel %vm499_vm1, %v1578_v8, %v1594_v63  ;;  %v1596_v4 = vmax.f32 %v1580_v42, 0.0  ;;  %v7688_v8 = vld [vmem:[#allocation69_spill] sm:$0xff] }
 0x299   :  { %v1429_v40 = vadd.f32 %v7685_v61, %v1315_v0  ;;  %v1317_v50 = vadd.f32 %v5552_v1, %v1203_v22  ;;  %v1623_v55 = vsel %vm907_vm2, %v5611_v60, 0.0  ;;  %v1677_v14 = vsel %vm907_vm2, %v1661_v3, 0.0 }
 0x29a   :  { %4083 = vmatmul.msk.f32.gmra.mxu2 %vm28_vm0, %v1816_v13  ;;  %v1626_v17 = vsel %vm907_vm2, %v5615_v36, 0.0  ;;  %v5645_v38 = vsel %vm499_vm1, %v1579_v21, %v1595_v41  ;;  %v1597_v33 = vmax.f32 %v1581_v12, 0.0  ;;  %v1582_v56 = vadd.f32 %v7686_v6, %v1428_v16  ;;  %v1187_v41 = vpop.f32.mrf.mxu2  ;;  %v7690_v16 = vld [vmem:[#allocation73_spill] sm:$0xff] }
 0x29b   :  { %v1430_v59 = vadd.f32 %v7687_v51, %v1316_v35  ;;  %v1318_v57 = vadd.f32 %v1292_v18, %v1204_v32  ;;  %v1676_v1 = vsel %vm907_vm2, %v1660_v28, 0.0  ;;  %v1625_v45 = vadd.f32 %v1624_v27, %v1623_v55  ;;  %v1566_v18 = vpop.f32.mrf.mxu1 }
 0x29c   :  { %v1679_v13 = vsel %vm907_vm2, %v1662_v9, 0.0  ;;  %v1663_v5 = vmul.f32 %v5634_v26, %v5634_v26  ;;  %v5656_v2 = vsel %vm499_vm1, %v1580_v42, %v1596_v4  ;;  %v1583_v53 = vadd.f32 %v7688_v8, %v1429_v40  ;;  %v7691_v40 = vld [vmem:[#allocation74_spill] sm:$0xff] }
 0x29d   :  { %v1431_v11 = vadd.f32 %v5540_v62, %v1317_v50  ;;  %v1678_v21 = vadd.f32 %v1677_v14, %v1676_v1  ;;  %v1627_v20 = vadd.f32 %v1626_v17, %v1625_v45  ;;  %v1628_v23 = vsel %vm907_vm2, %v5634_v26, 0.0 }
 0x29e   :  { %v1409_v47 = vpop.f32.mrf.mxu0  ;;  %v1664_v10 = vmul.f32 %v5645_v38, %v5645_v38  ;;  %v5666_v24 = vsel %vm499_vm1, %v1581_v12, %v1597_v33  ;;  %v1598_v48 = vmax.f32 %v1582_v56, 0.0  ;;  %v1584_v63 = vadd.f32 %v7689_v15, %v1430_v59 }
 0x29f   :  { %v1432_v62 = vadd.f32 %v5584_v43, %v1318_v57  ;;  %v1680_v42 = vadd.f32 %v1679_v13, %v1678_v21  ;;  %v1681_v0 = vsel %vm907_vm2, %v1663_v5, 0.0  ;;  %v1630_v22 = vsel %vm907_vm2, %v5645_v38, 0.0 }
 0x2a0   :  { %v1295_v30 = vpop.f32.mrf.mxu3  ;;  %v1665_v32 = vmul.f32 %v5656_v2, %v5656_v2  ;;  %v1585_v12 = vadd.f32 %v7690_v16, %v1431_v11  ;;  %v1629_v28 = vadd.f32 %v1628_v23, %v1627_v20  ;;  %v1683_v27 = vsel %vm907_vm2, %v1664_v10, 0.0 }
 0x2a1   :  { %v1319_v19 = vadd.f32 %v1295_v30, %v1205_v29  ;;  %v1599_v29 = vmax.f32 %v1583_v53, 0.0  ;;  %v1632_v43 = vsel %vm907_vm2, %v5656_v2, 0.0  ;;  %v1666_v9 = vmul.f32 %v5666_v24, %v5666_v24  ;;  %v1818_v30 = vld [vmem:[#allocation2 + $0x40] sm:$0xff] }
 0x2a2   :  { %4084 = vmatmul.msk.f32.gmra.mxu2 %vm28_vm0, %v1817_v25  ;;  %v5683_v25 = vsel %vm499_vm1, %v1582_v56, %v1598_v48  ;;  %v1600_v4 = vmax.f32 %v1584_v63, 0.0  ;;  %v1586_v61 = vadd.f32 %v5558_v52, %v1432_v62  ;;  %v1045_v50 = vadd.f32 %v5442_v44, %v7691_v40  ;;  %v1819_v48 = vld [vmem:[#allocation2 + $0x48] sm:$0xff]  ;;  %v1190_v15 = vpop.f32.mrf.mxu2 }
 0x2a3   :  { %v1433_v54 = vadd.f32 %v1409_v47, %v1319_v19  ;;  %v1682_v55 = vadd.f32 %v1681_v0, %v1680_v42  ;;  %v1631_v14 = vadd.f32 %v1630_v22, %v1629_v28  ;;  %v1685_v17 = vsel %vm907_vm2, %v1665_v32, 0.0  ;;  %v1569_v13 = vpop.f32.mrf.mxu1 }
 0x2a4   :  { %v5693_v33 = vsel %vm499_vm1, %v1583_v53, %v1599_v29  ;;  %v1601_v6 = vmax.f32 %v1585_v12, 0.0  ;;  %v1634_v59 = vsel %vm907_vm2, %v5666_v24, 0.0  ;;  %v1687_v44 = vsel %vm907_vm2, %v1666_v9, 0.0 }
 0x2a5   :  { %v1587_v56 = vadd.f32 %v5606_v39, %v1433_v54  ;;  %v1684_v52 = vadd.f32 %v1683_v27, %v1682_v55  ;;  %v1633_v51 = vadd.f32 %v1632_v43, %v1631_v14  ;;  %v5703_v57 = vsel %vm499_vm1, %v1584_v63, %v1600_v4 }
 0x2a6   :  { %v1412_v49 = vpop.f32.mrf.mxu0  ;;  %v1602_v1 = vmax.f32 %v1586_v61, 0.0  ;;  %v1078_v39 = vmul.f32 %v5444_v34, %v5529_v37  ;;  %v1636_v8 = vsel %vm907_vm2, %v5683_v25, 0.0  ;;  %v1668_v53 = vmul.f32 %v5693_v33, %v5693_v33 }
 0x2a7   :  { %v1686_v5 = vadd.f32 %v1685_v17, %v1684_v52  ;;  %v1635_v21 = vadd.f32 %v1634_v59, %v1633_v51  ;;  %v5713_v20 = vsel %vm499_vm1, %v1585_v12, %v1601_v6  ;;  %v1603_v23 = vmax.f32 %v1587_v56, 0.0 }
 0x2a8   :  { %v1298_v3 = vpop.f32.mrf.mxu3  ;;  %v1638_v34 = vsel %vm907_vm2, %v5693_v33, 0.0  ;;  %v1669_v37 = vmul.f32 %v5703_v57, %v5703_v57  ;;  %v5722_v62 = vsel %vm499_vm1, %v1586_v61, %v1602_v1  ;;  %v1094_v22 = vadd.f32 %v1078_v39, %v1045_v50 }
 0x2a9   :  { %v1320_v35 = vadd.f32 %v1298_v3, %v1206_v7  ;;  %v1207_v7 = vadd.f32 %v1187_v41, %v5595_v46  ;;  %v1667_v46 = vmul.f32 %v5683_v25, %v5683_v25  ;;  %v1688_v10 = vadd.f32 %v1687_v44, %v1686_v5 }
 0x2aa   :  { %4085 = vmatmul.msk.f32.gmra.mxu2 %vm28_vm0, %v1818_v30  ;;  %v1637_v63 = vadd.f32 %v1636_v8, %v1635_v21  ;;  %v1691_v32 = vsel %vm907_vm2, %v1668_v53, 0.0  ;;  %v1640_v3 = vsel %vm907_vm2, %v5703_v57, 0.0  ;;  %v1670_v41 = vmul.f32 %v5713_v20, %v5713_v20 }
 0x2ab   :  { %v1434_v47 = vadd.f32 %v1412_v49, %v1320_v35  ;;  %v1689_v49 = vsel %vm907_vm2, %v1667_v46, 0.0  ;;  %v5732_v12 = vsel %vm499_vm1, %v1587_v56, %v1603_v23  ;;  %v1208_v35 = vadd.f32 %v1190_v15, %v1094_v22  ;;  %v1820_v46 = vld [vmem:[#allocation2 + $0x50] sm:$0xff]  ;;  %v1572_v44 = vpop.f32.mrf.mxu1 }
 0x2ac   :  { %v1690_v29 = vadd.f32 %v1689_v49, %v1688_v10  ;;  %v1639_v16 = vadd.f32 %v1638_v34, %v1637_v63  ;;  %v1693_v28 = vsel %vm907_vm2, %v1669_v37, 0.0  ;;  %v1642_v27 = vsel %vm907_vm2, %v5713_v20, 0.0 }
 0x2ad   :  { %v1588_v45 = vadd.f32 %v1566_v18, %v1434_v47  ;;  %v1671_v43 = vmul.f32 %v5722_v62, %v5722_v62  ;;  %v1695_v47 = vsel %vm907_vm2, %v1670_v41, 0.0  ;;  %v1672_v40 = vmul.f32 %v5732_v12, %v5732_v12 }
 0x2ae   :  { %v1415_v11 = vpop.f32.mrf.mxu0  ;;  %v1692_v9 = vadd.f32 %v1691_v32, %v1690_v29  ;;  %v1641_v30 = vadd.f32 %v1640_v3, %v1639_v16  ;;  %v1646_v52 = vsel %vm907_vm2, %v5732_v12, 0.0 }
 0x2af   :  { %v1604_v42 = vmax.f32 %v1588_v45, 0.0  ;;  %v1697_v56 = vsel %vm907_vm2, %v1671_v43, 0.0  ;;  %v1699_v39 = vsel %vm907_vm2, %v1672_v40, 0.0 }
 0x2b0   :  { %v1301_v19 = vpop.f32.mrf.mxu3  ;;  %v1694_v55 = vadd.f32 %v1693_v28, %v1692_v9  ;;  %v1643_v14 = vadd.f32 %v1642_v27, %v1641_v30  ;;  %v1822_v27 = vld [vmem:[#allocation2 + $0x60] sm:$0xff] }
 0x2b1   :  { %v1321_v18 = vadd.f32 %v1301_v19, %v1207_v7  ;;  %v5741_v4 = vsel %vm499_vm1, %v1588_v45, %v1604_v42  ;;  %v1644_v7 = vsel %vm907_vm2, %v5722_v62, 0.0 }
 0x2b2   :  { %4086 = vmatmul.msk.f32.gmra.mxu2 %vm28_vm0, %v1819_v48  ;;  %v1673_v51 = vmul.f32 %v5741_v4, %v5741_v4  ;;  %v1696_v1 = vadd.f32 %v1695_v47, %v1694_v55  ;;  %v1645_v45 = vadd.f32 %v1644_v7, %v1643_v14  ;;  %v1648_v5 = vsel %vm907_vm2, %v5741_v4, 0.0  ;;  %v1823_v55 = vld [vmem:[#allocation2 + $0x68] sm:$0xff] }
 0x2b3   :  { %v1435_v0 = vadd.f32 %v1415_v11, %v1321_v18 }
 0x2b4   :  { %v1698_v53 = vadd.f32 %v1697_v56, %v1696_v1  ;;  %v1647_v11 = vadd.f32 %v1646_v52, %v1645_v45  ;;  %v1701_v21 = vsel %vm907_vm2, %v1673_v51, 0.0  ;;  %v1825_v1 = vld [vmem:[#allocation2 + $0x78] sm:$0xff] }
 0x2b5   :  { %v1589_v54 = vadd.f32 %v1569_v13, %v1435_v0  ;;  %v1821_v0 = vld [vmem:[#allocation2 + $0x58] sm:$0xff] }
 0x2b6   :  { %v1418_v59 = vpop.f32.mrf.mxu0  ;;  %v1700_v18 = vadd.f32 %v1699_v39, %v1698_v53  ;;  %v1649_v10 = vadd.f32 %v1648_v5, %v1647_v11 }
 0x2b7   :  { %v1605_v61 = vmax.f32 %v1589_v54, 0.0 }
 0x2b8   :  { %v1304_v50 = vpop.f32.mrf.mxu3  ;;  %v1702_v37 = vadd.f32 %v1701_v21, %v1700_v18  ;;  %v5793_v18 = vld [vmem:[%s7472_s4 + $0x19] ss:$0 sm:$0xff] }
 0x2b9   :  { %v5750_v17 = vsel %vm499_vm1, %v1589_v54, %v1605_v61  ;;  %v1322_v6 = vadd.f32 %v1304_v50, %v1208_v35 }
 0x2ba   :  { %4087 = vmatmul.msk.f32.gmra.mxu2 %vm28_vm0, %v1820_v46  ;;  %v1674_v8 = vmul.f32 %v5750_v17, %v5750_v17  ;;  %v1650_v23 = vsel %vm907_vm2, %v5750_v17, 0.0 }
 0x2bb   :  { %v1436_v13 = vadd.f32 %v1418_v59, %v1322_v6  ;;  %v1651_v48 = vadd.f32 %v1650_v23, %v1649_v10  ;;  %v1824_v59 = vld [vmem:[#allocation2 + $0x70] sm:$0xff]  ;;  %v4213_v23 = vld [vmem:[#allocation2 + $0x80] sm:$0xff] }
 0x2bc   :  { %v1703_v34 = vsel %vm907_vm2, %v1674_v8, 0.0 }
 0x2bd   :  { %v1590_v19 = vadd.f32 %v1572_v44, %v1436_v13  ;;  %v1704_v22 = vadd.f32 %v1703_v34, %v1702_v37 }
 0x2bf   :  { %v1606_v49 = vmax.f32 %v1590_v19, 0.0 }
 0x2c1   :  { %v1622_v15 = vsel %vm499_vm1, %v1590_v19, %v1606_v49 }
 0x2c2   :  { %v1652_v63 = vsel %vm907_vm2, %v1622_v15, 0.0  ;;  %v1675_v42 = vmul.f32 %v1622_v15, %v1622_v15  ;;  %4088 = vmatmul.msk.f32.gmra.mxu2 %vm28_vm0, %v1821_v0 }
 0x2c3   :  { %v1653_v32 = vadd.f32 %v1652_v63, %v1651_v48 }
 0x2c4   :  { %v1705_v3 = vsel %vm907_vm2, %v1675_v42, 0.0 }
 0x2c5   :  { %v1654_v41 = vrot.slane %v1653_v32, 4  ;;  %v1706_v29 = vadd.f32 %v1705_v3, %v1704_v22 }
 0x2c7   :  { %v1655_v16 = vadd.f32 %v1654_v41, %v1653_v32  ;;  %v1707_v54 = vrot.slane %v1706_v29, 4 }
 0x2c9   :  { %v1656_v35 = vrot.slane %v1655_v16, 2  ;;  %v1708_v28 = vadd.f32 %v1707_v54, %v1706_v29 }
 0x2ca   :  { %4089 = vmatmul.msk.f32.gmra.mxu2 %vm28_vm0, %v1822_v27 }
 0x2cb   :  { %v1657_v43 = vadd.f32 %v1656_v35, %v1655_v16  ;;  %v1709_v9 = vrot.slane %v1708_v28, 2 }
 0x2cd   :  { %v1658_v30 = vrot.slane %v1657_v43, 1  ;;  %v1710_v61 = vadd.f32 %v1709_v9, %v1708_v28  ;;  %v4214_v9 = vld [vmem:[#allocation2 + $0x88] sm:$0xff] }
 0x2cf   :  { %v1659_v47 = vadd.f32 %v1658_v30, %v1657_v43  ;;  %v1711_v7 = vrot.slane %v1710_v61, 1  ;;  %v7692_v30 = vld [vmem:[#allocation32_spill] sm:$0xff] }
 0x2d1   :  { %v1712_v40 = vadd.f32 %v1711_v7, %v1710_v61  ;;  %v5773_v50 = vmul.f32 0.0078125, %v1659_v47  ;;  %v7693_v47 = vld [vmem:[#allocation33_spill] sm:$0xff] }
 0x2d2   :  { %4090 = vmatmul.msk.f32.gmra.mxu2 %vm28_vm0, %v1823_v55  ;;  %v7694_v55 = vld [vmem:[#allocation31_spill] sm:$0xff] }
 0x2d3   :  { %v1714_v14 = vmul.f32 0.0078125, %v1712_v40  ;;  %v1715_v6 = vmul.f32 %v5773_v50, %v5773_v50  ;;  %v1733_v5 = vsub.f32 %v1622_v15, %v5773_v50  ;;  %v1732_v8 = vsub.f32 %v5750_v17, %v5773_v50 }
 0x2d4   :  { %v1719_v53 = vsub.f32 %v5601_v58, %v5773_v50  ;;  %v1718_v19 = vsub.f32 %v5611_v60, %v5773_v50  ;;  %v1720_v21 = vsub.f32 %v5615_v36, %v5773_v50  ;;  %v1731_v58 = vsub.f32 %v5741_v4, %v5773_v50 }
 0x2d5   :  { %v1716_v56 = vsub.f32 %v1714_v14, %v1715_v6  ;;  %v1730_v17 = vsub.f32 %v5732_v12, %v5773_v50  ;;  %v1729_v60 = vsub.f32 %v5722_v62, %v5773_v50  ;;  %v1728_v36 = vsub.f32 %v5713_v20, %v5773_v50  ;;  %v5815_v62 = vld [vmem:[%s7472_s4 + $0x1a] ss:$0 sm:$0xff] }
 0x2d6   :  { %v1722_v49 = vsub.f32 %v5645_v38, %v5773_v50  ;;  %v1721_v34 = vsub.f32 %v5634_v26, %v5773_v50  ;;  %v1723_v4 = vsub.f32 %v5656_v2, %v5773_v50  ;;  %v1727_v41 = vsub.f32 %v5703_v57, %v5773_v50 }
 0x2d7   :  { %v1717_v52 = vmax.f32 %v1716_v56, 0.0  ;;  %v1726_v29 = vsub.f32 %v5693_v33, %v5773_v50  ;;  %v1725_v16 = vsub.f32 %v5683_v25, %v5773_v50 }
 0x2d9   :  { %v1734_v51 = vadd.f32 1e-05, %v1717_v52 }
 0x2da   :  { %4091 = vmatmul.msk.f32.gmra.mxu2 %vm28_vm0, %v1824_v59 }
 0x2db   :  { %4204 = vrsqrt.f32 %v1734_v51  ;;  %vm1741_vm7 = vweird.f32 %v1734_v51 }
 0x2e1   :  { %v4205_v46 = vpop.eup %4204 }
 0x2e2   :  { %v1736_v44 = vmul.f32 %v4205_v46, %v1734_v51  ;;  %4092 = vmatmul.msk.f32.gmra.mxu2 %vm28_vm0, %v1825_v1  ;;  %vm1742_vm6 = vweird.f32 %v4205_v46 }
 0x2e3   :  { %vm1743_vm8 = vmor %vm1741_vm7, %vm1742_vm6 }
 0x2e4   :  { %v1737_v45 = vmul.f32 %v4205_v46, %v1736_v44 }
 0x2e6   :  { %v1738_v13 = vmul.f32 0.5, %v1737_v45 }
 0x2e8   :  { %v1739_v39 = vsub.f32 1.5, %v1738_v13 }
 0x2ea   :  { %v1740_v11 = vmul.f32 %v4205_v46, %v1739_v39  ;;  %4093 = vmatmul.msk.f32.gmra.mxu2 %vm28_vm0, %v4213_v23 }
 0x2ec   :  { %v5803_v10 = vsel %vm1743_vm8, %v4205_v46, %v1740_v11 }
 0x2ed   :  { %v1760_v37 = vmul.f32 %v5803_v10, %v1733_v5  ;;  %v1759_v20 = vmul.f32 %v5803_v10, %v1732_v8  ;;  %v1746_v12 = vmul.f32 %v5803_v10, %v1719_v53  ;;  %v1745_v48 = vmul.f32 %v5803_v10, %v1718_v19  ;;  %v1891_v38 = vpop.f32.mrf.mxu2 }
 0x2ee   :  { %v1747_v15 = vmul.f32 %v5803_v10, %v1720_v21  ;;  %v1758_v26 = vmul.f32 %v5803_v10, %v1731_v58  ;;  %v1757_v2 = vmul.f32 %v5803_v10, %v1730_v17  ;;  %v1756_v63 = vmul.f32 %v5803_v10, %v1729_v60  ;;  %2052 = vrot.lane.b32.xlu1 %v1891_v38, %s4294_s29  ;;  %v4215_v17 = vld [vmem:[#allocation2 + $0x90] sm:$0xff]  ;;  %v7697_v60 = vld [vmem:[#allocation28_spill] sm:$0xff] }
 0x2ef   :  { %v1777_v42 = vmul.f32 %v5793_v18, %v1760_v37  ;;  %v1776_v0 = vmul.f32 %v5793_v18, %v1759_v20  ;;  %v1763_v22 = vmul.f32 %v5793_v18, %v1746_v12  ;;  %v1762_v32 = vmul.f32 %v5793_v18, %v1745_v48  ;;  %v7699_v20 = vld [vmem:[#allocation27_spill] sm:$0xff] }
 0x2f0   :  { %v1764_v3 = vmul.f32 %v5793_v18, %v1747_v15  ;;  %v1775_v27 = vmul.f32 %v5793_v18, %v1758_v26  ;;  %v1774_v33 = vmul.f32 %v5793_v18, %v1757_v2  ;;  %v1773_v25 = vmul.f32 %v5793_v18, %v1756_v63  ;;  %v4216_v2 = vld [vmem:[#allocation2 + $0x98] sm:$0xff]  ;;  %v7700_v63 = vld [vmem:[#allocation24_spill] sm:$0xff] }
 0x2f1   :  { %v5837_v54 = vadd.f32 %v5815_v62, %v1777_v42  ;;  %v5840_v35 = vadd.f32 %v5815_v62, %v1763_v22  ;;  %v5843_v28 = vadd.f32 %v5815_v62, %v1762_v32  ;;  %v5847_v43 = vadd.f32 %v5815_v62, %v1776_v0  ;;  %v7701_v0 = vld [vmem:[#allocation25_spill] sm:$0xff] }
 0x2f2   :  { %v5850_v57 = vadd.f32 %v5815_v62, %v1764_v3  ;;  %4094 = vmatmul.msk.f32.gmra.mxu2 %vm28_vm0, %v4214_v9  ;;  %v1755_v40 = vmul.f32 %v5803_v10, %v1728_v36  ;;  %v1749_v6 = vmul.f32 %v5803_v10, %v1722_v49  ;;  %v1748_v56 = vmul.f32 %v5803_v10, %v1721_v34  ;;  %v7704_v9 = vld [vmem:[#allocation63_spill] sm:$0xff] }
 0x2f3   :  { %1963 = vmatpush.msra.mxu3 %v5837_v54  ;;  %v2672_v61 = vmul.f32 %v5840_v35, %v7692_v30  ;;  %v2671_v7 = vmul.f32 %v5843_v28, %v7693_v47  ;;  %2445 = vmatpush.msrb.mxu1 %v5837_v54  ;;  %v1750_v52 = vmul.f32 %v5803_v10, %v1723_v4  ;;  %v7706_v47 = vld [vmem:[#allocation66_spill] sm:$0xff] }
 0x2f4   :  { %v2673_v14 = vmul.f32 %v5850_v57, %v7694_v55  ;;  %v5870_v51 = vadd.f32 %v5815_v62, %v1775_v27  ;;  %v1772_v59 = vmul.f32 %v5793_v18, %v1755_v40  ;;  %v1754_v46 = vmul.f32 %v5803_v10, %v1727_v41  ;;  %v4217_v41 = vld [vmem:[#allocation2 + $0xa0] sm:$0xff]  ;;  %v4219_v27 = vld [vmem:[#allocation2 + $0xa8] sm:$0xff] }
 0x2f5   :  { %1964 = vmatpush.msra.mxu3 %v5847_v43  ;;  %2705 = vrot.lane.b32.xlu0 %v2672_v61, %s4293_s0  ;;  %v5874_v44 = vpop.f32.mrf.mxu2  ;;  %v1766_v1 = vmul.f32 %v5793_v18, %v1749_v6  ;;  %v1765_v45 = vmul.f32 %v5793_v18, %v1748_v56  ;;  %v1767_v13 = vmul.f32 %v5793_v18, %v1750_v52  ;;  %v7705_v61 = vld [vmem:[#allocation65_spill] sm:$0xff]  ;;  %v7709_v52 = vld [vmem:[#allocation62_spill] sm:$0xff] }
 0x2f6   :  { %2446 = vmatpush.msrb.mxu1 %v5847_v43  ;;  %2703 = vrot.lane.b32.xlu2 %v2671_v7, %s4293_s0  ;;  %v5884_v39 = vadd.f32 %v5815_v62, %v1774_v33  ;;  %v1753_v5 = vmul.f32 %v5803_v10, %v1726_v29  ;;  %v1724_v8 = vsub.f32 %v5666_v24, %v5773_v50  ;;  %v4220_v33 = vld [vmem:[%s7470_s1] sm:$0xff]  ;;  %v4221_v7 = vld [vmem:[#allocation2 + $0xb0] sm:$0xff]  ;;  %v4222_v40 = vld [vmem:[%s7473_s2 + $0x8] sm:$0xff] }
 0x2f7   :  { %2707 = vrot.lane.b32.xlu1 %v2673_v14, %s4293_s0  ;;  %1965 = vmatpush.msra.mxu3 %v5870_v51  ;;  %v5891_v53 = vadd.f32 %v5815_v62, %v1766_v1  ;;  %v5894_v11 = vadd.f32 %v5815_v62, %v1765_v45  ;;  %v1752_v19 = vmul.f32 %v5803_v10, %v1725_v16  ;;  %v4218_v16 = vld [vmem:[%s7473_s2] sm:$0xff]  ;;  %v4223_v55 = vld [vmem:[%s7470_s1 + $0x8] sm:$0xff]  ;;  %v7707_v14 = vld [vmem:[#allocation67_spill] sm:$0xff] }
 0x2f8   :  { %2447 = vmatpush.msrb.mxu1 %v5870_v51  ;;  %v5899_v21 = vadd.f32 %v5815_v62, %v1773_v25  ;;  %v5902_v23 = vadd.f32 %v5815_v62, %v1767_v13  ;;  %v1771_v24 = vmul.f32 %v5793_v18, %v1754_v46  ;;  %v1751_v50 = vmul.f32 %v5803_v10, %v1724_v8  ;;  %v7698_v10 = vld [vmem:[#allocation29_spill] sm:$0xff]  ;;  %v7703_v25 = vld [vmem:[#allocation60_spill] sm:$0xff]  ;;  %v4224_v46 = vld [vmem:[#allocation2 + $0xb8] sm:$0xff] }
 0x2f9   :  { %7695 = vst [vmem:[#allocation75_spill] sm:$0xff] %v5891_v53  ;;  %1966 = vmatpush.msra.mxu3 %v5884_v39  ;;  %v5908_v58 = vadd.f32 %v5815_v62, %v1772_v59  ;;  %v2675_v36 = vmul.f32 %v5891_v53, %v7697_v60  ;;  %v1770_v49 = vmul.f32 %v5793_v18, %v1753_v5  ;;  %v7708_v6 = vld [vmem:[#allocation61_spill] sm:$0xff]  ;;  %v7710_v59 = vld [vmem:[#allocation64_spill] sm:$0xff]  ;;  %v4226_v1 = vld [vmem:[%s7470_s1 + $0x10] sm:$0xff] }
 0x2fa   :  { %7696 = vst [vmem:[#allocation71_spill] sm:$0xff] %v5894_v11  ;;  %2448 = vmatpush.msrb.mxu1 %v5884_v39  ;;  %4095 = vmatmul.msk.f32.gmra.mxu2 %vm28_vm0, %v4215_v17  ;;  %v1769_v34 = vmul.f32 %v5793_v18, %v1752_v19  ;;  %v2674_v4 = vmul.f32 %v5894_v11, %v7698_v10  ;;  %v4227_v13 = vld [vmem:[%s7473_s2 + $0x18] sm:$0xff]  ;;  %v4229_v19 = vld [vmem:[%s7473_s2 + $0x20] sm:$0xff]  ;;  %v4231_v17 = vld [vmem:[%s7473_s2 + $0x28] sm:$0xff] }
 0x2fb   :  { %1967 = vmatpush.msra.mxu3 %v5899_v21  ;;  %v1768_v37 = vmul.f32 %v5793_v18, %v1751_v50  ;;  %v2676_v12 = vmul.f32 %v5902_v23, %v7699_v20  ;;  %v5925_v48 = vadd.f32 %v5815_v62, %v1771_v24  ;;  %v5932_v18 = vadd.f32 %v5815_v62, %v1770_v49  ;;  %v4228_v5 = vld [vmem:[%s7470_s1 + $0x18] sm:$0xff]  ;;  %v4230_v24 = vld [vmem:[%s7470_s1 + $0x20] sm:$0xff]  ;;  %v4232_v60 = vld [vmem:[%s7470_s1 + $0x28] sm:$0xff] }
 0x2fc   :  { %2449 = vmatpush.msrb.mxu1 %v5899_v21  ;;  %v5935_v15 = vadd.f32 %v5815_v62, %v1769_v34  ;;  %v4233_v49 = vld [vmem:[%s7473_s2 + $0x30] sm:$0xff] }
 0x2fd   :  { %1968 = vmatpush.msra.mxu3 %v5908_v58  ;;  %2711 = vrot.lane.b32.xlu0 %v2675_v36, %s4293_s0  ;;  %v1897_v38 = vpop.f32.mrf.mxu2  ;;  %v5939_v26 = vadd.f32 %v5815_v62, %v1768_v37  ;;  %v7702_v62 = vld [vmem:[#allocation23_spill] sm:$0xff]  ;;  %v4234_v34 = vld [vmem:[%s7470_s1 + $0x30] sm:$0xff] }
 0x2fe   :  { %2450 = vmatpush.msrb.mxu1 %v5908_v58  ;;  %2709 = vrot.lane.b32.xlu2 %v2674_v4, %s4293_s0  ;;  %v2678_v42 = vmul.f32 %v5935_v15, %v7700_v63  ;;  %v2679_v32 = vmul.f32 %v5932_v18, %v7702_v62  ;;  %v4235_v4 = vld [vmem:[%s7473_s2 + $0x38] sm:$0xff]  ;;  %v6049_v63 = vpop.permute.xlu2 %2024 }
 0x2ff   :  { %2713 = vrot.lane.b32.xlu1 %v2676_v12, %s4293_s0  ;;  %1969 = vmatpush.msra.mxu3 %v5925_v48  ;;  %v2677_v22 = vmul.f32 %v5939_v26, %v7701_v0  ;;  %v4236_v37 = vld [vmem:[%s7470_s1 + $0x38] sm:$0xff]  ;;  %v4237_v12 = vld [vmem:[%s7474_s3] sm:$0xff]  ;;  %v4240_v0 = vld [vmem:[%s7470_s1 + $0x48] sm:$0xff] }
 0x300   :  { %2451 = vmatpush.msrb.mxu1 %v5925_v48 }
 0x301   :  { %1970 = vmatpush.msra.mxu3 %v5932_v18 }
 0x302   :  { %2452 = vmatpush.msrb.mxu1 %v5932_v18  ;;  %4096 = vmatmul.msk.f32.gmra.mxu2 %vm28_vm0, %v4216_v2 }
 0x303   :  { %1971 = vmatpush.msra.mxu3 %v5935_v15 }
 0x304   :  { %2453 = vmatpush.msrb.mxu1 %v5935_v15 }
 0x305   :  { %1972 = vmatpush.msra.mxu3 %v5939_v26  ;;  %2717 = vrot.lane.b32.xlu0 %v2678_v42, %s4293_s0  ;;  %v1900_v3 = vpop.f32.mrf.mxu2  ;;  %v4239_v42 = vld [vmem:[%s7474_s3 + $0x8] sm:$0xff] }
 0x306   :  { %2454 = vmatpush.msrb.mxu1 %v5939_v26  ;;  %2715 = vrot.lane.b32.xlu2 %v2677_v22, %s4293_s0  ;;  %v6060_v62 = vpop.permute.xlu2 %2030 }
 0x307   :  { %2719 = vrot.lane.b32.xlu1 %v2679_v32, %s4293_s0  ;;  %1973 = vmatpush.msra.mxu3 %v5902_v23  ;;  %v6062_v32 = vpop.permute.xlu0 %2020 }
 0x308   :  { %2455 = vmatpush.msrb.mxu1 %v5902_v23 }
 0x309   :  { %1974 = vmatpush.msra.mxu3 %v5891_v53 }
 0x30a   :  { %2456 = vmatpush.msrb.mxu1 %v5891_v53  ;;  %4097 = vmatmul.msk.f32.gmra.mxu2 %vm28_vm0, %v4217_v41  ;;  %v4242_v41 = vld [vmem:[%s7470_s1 + $0x50] sm:$0xff] }
 0x30b   :  { %1975 = vmatpush.msra.mxu3 %v5894_v11 }
 0x30c   :  { %2457 = vmatpush.msrb.mxu1 %v5894_v11 }
 0x30d   :  { %1976 = vmatpush.msra.mxu3 %v5850_v57  ;;  %2054 = vrot.lane.b32.xlu0 %v5874_v44, %s4294_s29  ;;  %v1903_v29 = vpop.f32.mrf.mxu2  ;;  %v4225_v44 = vld [vmem:[%s7473_s2 + $0x10] sm:$0xff] }
 0x30e   :  { %2458 = vmatpush.msrb.mxu1 %v5850_v57  ;;  %2058 = vrot.lane.b32.xlu2 %v1900_v3, %s4294_s29  ;;  %v4241_v3 = vld [vmem:[%s7474_s3 + $0x10] sm:$0xff] }
 0x30f   :  { %2056 = vrot.lane.b32.xlu1 %v1897_v38, %s4294_s29  ;;  %1977 = vmatpush.msra.mxu3 %v5840_v35  ;;  %v4238_v38 = vld [vmem:[%s7470_s1 + $0x40] sm:$0xff] }
 0x310   :  { %2459 = vmatpush.msrb.mxu1 %v5840_v35 }
 0x311   :  { %1978 = vmatpush.msra.mxu3 %v5843_v28 }
 0x312   :  { %2460 = vmatpush.msrb.mxu1 %v5843_v28  ;;  %1979 = vmatmul.f32.vlgmr.msra.gmra.mxu3 %v4218_v16 }
 0x313   :  { %4098 = vmatmul.msk.f32.gmra.mxu2 %vm28_vm0, %v4219_v27  ;;  %2461 = vmatmul.f32.vlgmr.msrb.gmra.mxu1 %v4220_v33  ;;  %v4243_v27 = vld [vmem:[%s7474_s3 + $0x18] sm:$0xff]  ;;  %v6078_v33 = vpop.permute.xlu0 %2026 }
 0x314   :  { %2614 = vmatpush.msrb.mxu3 %v7703_v25 }
 0x315   :  { %2060 = vrot.lane.b32.xlu0 %v1903_v29, %s4294_s29  ;;  %v1906_v30 = vpop.f32.mrf.mxu2 }
 0x316   :  { %2615 = vmatpush.msrb.mxu3 %v7704_v9 }
 0x317   :  { %2062 = vrot.lane.b32.xlu1 %v1906_v30, %s4294_s29  ;;  %v4244_v30 = vld [vmem:[%s7470_s1 + $0x58] sm:$0xff] }
 0x318   :  { %2616 = vmatpush.msrb.mxu3 %v7705_v61 }
 0x31a   :  { %2617 = vmatpush.msrb.mxu3 %v7706_v47 }
 0x31b   :  { %4099 = vmatmul.msk.f32.gmra.mxu2 %vm28_vm0, %v4221_v7  ;;  %1982 = vmatmul.f32.gmra.mxu3 %v4222_v40 }
 0x31c   :  { %2464 = vmatmul.f32.gmra.mxu1 %v4223_v55  ;;  %2618 = vmatpush.msrb.mxu3 %v7707_v14  ;;  %v4245_v55 = vld [vmem:[%s7474_s3 + $0x20] sm:$0xff] }
 0x31d   :  { %v1909_v56 = vpop.f32.mrf.mxu2 }
 0x31e   :  { %2619 = vmatpush.msrb.mxu3 %v7708_v6  ;;  %2064 = vrot.lane.b32.xlu2 %v1909_v56, %s4294_s29  ;;  %v4246_v56 = vld [vmem:[%s7470_s1 + $0x60] sm:$0xff] }
 0x320   :  { %2620 = vmatpush.msrb.mxu3 %v7709_v52 }
 0x322   :  { %2621 = vmatpush.msrb.mxu3 %v7710_v59 }
 0x323   :  { %4100 = vmatmul.msk.f32.gmra.mxu2 %vm28_vm0, %v4224_v46  ;;  %1985 = vmatmul.f32.gmra.mxu3 %v4225_v44  ;;  %v6093_v46 = vpop.permute.xlu0 %2032 }
 0x324   :  { %2467 = vmatmul.f32.gmra.mxu1 %v4226_v1  ;;  %v6096_v1 = vpop.permute.xlu1 %2022 }
 0x325   :  { %v1912_v45 = vpop.f32.mrf.mxu2 }
 0x326   :  { %2066 = vrot.lane.b32.xlu0 %v1912_v45, %s4294_s29  ;;  %v4247_v45 = vld [vmem:[%s7474_s3 + $0x28] sm:$0xff] }
 0x32b   :  { %1988 = vmatmul.f32.gmra.mxu3 %v4227_v13  ;;  %v4248_v13 = vld [vmem:[%s7470_s1 + $0x68] sm:$0xff] }
 0x32c   :  { %2470 = vmatmul.f32.gmra.mxu1 %v4228_v5 }
 0x32d   :  { %v1915_v8 = vpop.f32.mrf.mxu2 }
 0x32e   :  { %2084 = vrot.lane.b32.xlu2 %v1915_v8, %s4295_s21 }
 0x333   :  { %1991 = vmatmul.f32.gmra.mxu3 %v4229_v19 }
 0x334   :  { %2473 = vmatmul.f32.gmra.mxu1 %v4230_v24  ;;  %v2029_v24 = vpop.permute.xlu1 %2028 }
 0x335   :  { %v1918_v50 = vpop.f32.mrf.mxu2 }
 0x336   :  { %2086 = vrot.lane.b32.xlu2 %v1918_v50, %s4295_s21  ;;  %v4249_v50 = vld [vmem:[%s7474_s3 + $0x30] sm:$0xff] }
 0x33b   :  { %1994 = vmatmul.f32.gmra.mxu3 %v4231_v17  ;;  %v4250_v17 = vld [vmem:[%s7470_s1 + $0x70] sm:$0xff] }
 0x33c   :  { %2476 = vmatmul.f32.gmra.mxu1 %v4232_v60 }
 0x33d   :  { %v1921_v36 = vpop.f32.mrf.mxu2 }
 0x33e   :  { %2088 = vrot.lane.b32.xlu0 %v1921_v36, %s4295_s21 }
 0x343   :  { %1997 = vmatmul.f32.gmra.mxu3 %v4233_v49 }
 0x344   :  { %2479 = vmatmul.f32.gmra.mxu1 %v4234_v34  ;;  %v4251_v34 = vld [vmem:[%s7474_s3 + $0x38] sm:$0xff] }
 0x345   :  { %v1924_v10 = vpop.f32.mrf.mxu2 }
 0x346   :  { %2090 = vrot.lane.b32.xlu1 %v1924_v10, %s4295_s21  ;;  %v6126_v10 = vpop.permute.xlu1 %2034 }
 0x34b   :  { %2000 = vmatmul.f32.gmra.mxu3 %v4235_v4  ;;  %v4252_v4 = vld [vmem:[%s7470_s1 + $0x78] sm:$0xff]  ;;  %s4297_s1 = smov 80  }
 0x34c   :  { %2482 = vmatmul.f32.gmra.mxu1 %v4236_v37 }
 0x34d   :  { %v1927_v20 = vpop.f32.mrf.mxu2 }
 0x34e   :  { %2092 = vrot.lane.b32.xlu2 %v1927_v20, %s4295_s21 }
 0x350   :  { %v6072_v16 = vpop.permute.xlu2 %2703 }
 0x353   :  { %4109 = vmatmul.msk.f32.vlgmr.msrb.gmra.mxu3 %vm28_vm0, %v4237_v12 }
 0x354   :  { %2485 = vmatmul.f32.gmra.mxu1 %v4238_v38 }
 0x355   :  { %v1930_v2 = vpop.f32.mrf.mxu2 }
 0x356   :  { %2094 = vrot.lane.b32.xlu0 %v1930_v2, %s4295_s21  ;;  %v4253_v2 = vld [vmem:[%s7474_s3 + $0x40] sm:$0xff] }
 0x358   :  { %v6084_v40 = vpop.permute.xlu2 %2709 }
 0x359   :  { %7711 = vst [vmem:[#allocation68_spill] sm:$0xff] %v6084_v40 }
 0x35b   :  { %4110 = vmatmul.msk.f32.gmra.mxu3 %vm28_vm0, %v4239_v42 }
 0x35c   :  { %2488 = vmatmul.f32.gmra.mxu1 %v4240_v0  ;;  %v7713_v0 = vld [vmem:[#allocation26_spill] sm:$0xff] }
 0x35d   :  { %v1933_v22 = vpop.f32.mrf.mxu2 }
 0x35e   :  { %2096 = vrot.lane.b32.xlu1 %v1933_v22, %s4295_s21 }
 0x360   :  { %v6105_v5 = vpop.permute.xlu2 %2715  ;;  %v6140_v42 = vpop.permute.xlu1 %2052 }
 0x363   :  { %4111 = vmatmul.msk.f32.gmra.mxu3 %vm28_vm0, %v4241_v3 }
 0x364   :  { %2491 = vmatmul.f32.gmra.mxu1 %v4242_v41 }
 0x365   :  { %v1936_v29 = vpop.f32.mrf.mxu2 }
 0x366   :  { %2098 = vrot.lane.b32.xlu2 %v1936_v29, %s4295_s21 }
 0x367   :  { %v6107_v8 = vpop.permute.xlu0 %2705 }
 0x368   :  { %v6117_v36 = vpop.permute.xlu2 %2058 }
 0x36b   :  { %4112 = vmatmul.msk.f32.gmra.mxu3 %vm28_vm0, %v4243_v27  ;;  %v4254_v27 = vld [vmem:[%s7474_s3 + $0x48] sm:$0xff] }
 0x36c   :  { %2494 = vmatmul.f32.gmra.mxu1 %v4244_v30 }
 0x36d   :  { %v1939_v7 = vpop.f32.mrf.mxu2 }
 0x36e   :  { %2116 = vrot.lane.b32.xlu0 %v1939_v7, %s4296_s7  ;;  %v7714_v7 = vld [vmem:[#allocation30_spill] sm:$0xff] }
 0x36f   :  { %v6120_v49 = vpop.permute.xlu0 %2711 }
 0x370   :  { %7712 = vst [vmem:[#allocation72_spill] sm:$0xff] %v6120_v49 }
 0x373   :  { %4113 = vmatmul.msk.f32.gmra.mxu3 %vm28_vm0, %v4245_v55  ;;  %v6154_v55 = vpop.permute.xlu1 %2707 }
 0x374   :  { %2497 = vmatmul.f32.gmra.mxu1 %v4246_v56 }
 0x375   :  { %v1942_v44 = vpop.f32.mrf.mxu2 }
 0x376   :  { %2118 = vrot.lane.b32.xlu1 %v1942_v44, %s4296_s7 }
 0x377   :  { %v6134_v38 = vpop.permute.xlu0 %2717 }
 0x378   :  { %v6131_v20 = vpop.permute.xlu2 %2064 }
 0x37b   :  { %4114 = vmatmul.msk.f32.gmra.mxu3 %vm28_vm0, %v4247_v45 }
 0x37c   :  { %2500 = vmatmul.f32.gmra.mxu1 %v4248_v13  ;;  %v4255_v13 = vld [vmem:[%s7474_s3 + $0x50] sm:$0xff] }
 0x37d   :  { %v1945_v19 = vpop.f32.mrf.mxu2 }
 0x37e   :  { %2120 = vrot.lane.b32.xlu2 %v1945_v19, %s4296_s7 }
 0x37f   :  { %v6151_v30 = vpop.permute.xlu0 %2054 }
 0x383   :  { %4115 = vmatmul.msk.f32.gmra.mxu3 %vm28_vm0, %v4249_v50  ;;  %v7715_v50 = vld [vmem:[#allocation34_spill] sm:$0xff] }
 0x384   :  { %2503 = vmatmul.f32.gmra.mxu1 %v4250_v17 }
 0x385   :  { %v1948_v60 = vpop.f32.mrf.mxu2 }
 0x386   :  { %2122 = vrot.lane.b32.xlu0 %v1948_v60, %s4296_s7 }
 0x387   :  { %v2061_v17 = vpop.permute.xlu0 %2060 }
 0x388   :  { %v6144_v3 = vpop.permute.xlu2 %2084 }
 0x38b   :  { %4116 = vmatmul.msk.f32.gmra.mxu3 %vm28_vm0, %v4251_v34  ;;  %v2176_v34 = vsel %vm907_vm2, %v7706_v47, %v2029_v24 }
 0x38c   :  { %2506 = vmatmul.f32.gmra.mxu1 %v4252_v4  ;;  %v6170_v4 = vpop.permute.xlu1 %2713 }
 0x38d   :  { %v1951_v37 = vpop.f32.mrf.mxu2 }
 0x38e   :  { %2124 = vrot.lane.b32.xlu1 %v1951_v37, %s4296_s7  ;;  %v2185_v37 = vsel %vm2180_vm9, %v2176_v34, %v2061_v17  ;;  %v1806_v34 = vld [vmem:[%s7472_s4 + $0x78] sm:$0xff] }
 0x38f   :  { %2245 = vmatpush.msrb.mxu0 %v1806_v34  ;;  %v2177_v34 = vsel %vm907_vm2, %v7705_v61, %v6060_v62  ;;  %v7720_v61 = vld [vmem:[#allocation39_spill] sm:$0xff] }
 0x390   :  { %v2462_v12 = vpop.f32.mrf.mxu1  ;;  %v6158_v44 = vpop.permute.xlu2 %2086  ;;  %v1798_v62 = vld [vmem:[%s7472_s4 + $0x38] sm:$0xff] }
 0x393   :  { %4117 = vmatmul.msk.f32.gmra.mxu3 %vm28_vm0, %v4253_v2 }
 0x394   :  { %2509 = vmatmul.f32.gmra.mxu1 %v7713_v0 }
 0x395   :  { %v1980_v22 = vpop.f32.mrf.mxu3 }
 0x396   :  { %2148 = vrot.lane.b32.xlu2 %v1980_v22, %s4297_s1  ;;  %2767 = vrot.lane.b32.xlu1 %v2462_v12, %s4294_s29  ;;  %v1954_v29 = vpop.f32.mrf.mxu2  ;;  %v4256_v22 = vld [vmem:[%s7474_s3 + $0x58] sm:$0xff] }
 0x399   :  { %v2465_v41 = vpop.f32.mrf.mxu1 }
 0x39b   :  { %4118 = vmatmul.msk.f32.gmra.mxu3 %vm28_vm0, %v4254_v27  ;;  %v6184_v27 = vpop.permute.xlu1 %2719 }
 0x39c   :  { %2512 = vmatmul.f32.gmra.mxu1 %v7714_v7  ;;  %v4257_v7 = vld [vmem:[%s7474_s3 + $0x60] sm:$0xff] }
 0x39e   :  { %v1983_v56 = vpop.f32.mrf.mxu3  ;;  %2126 = vrot.lane.b32.xlu2 %v1954_v29, %s4296_s7  ;;  %v1957_v19 = vpop.f32.mrf.mxu2 }
 0x39f   :  { %2150 = vrot.lane.b32.xlu0 %v1983_v56, %s4297_s1  ;;  %v7717_v56 = vld [vmem:[#allocation36_spill] sm:$0xff] }
 0x3a1   :  { %v2468_v45 = vpop.f32.mrf.mxu1 }
 0x3a3   :  { %4119 = vmatmul.msk.f32.gmra.mxu3 %vm28_vm0, %v4255_v13  ;;  %v6198_v17 = vpop.permute.xlu1 %2056 }
 0x3a4   :  { %2515 = vmatmul.f32.gmra.mxu1 %v7715_v50  ;;  %v4258_v50 = vld [vmem:[%s7474_s3 + $0x68] sm:$0xff] }
 0x3a6   :  { %v1986_v60 = vpop.f32.mrf.mxu3  ;;  %2769 = vrot.lane.b32.xlu2 %v2465_v41, %s4294_s29  ;;  %v7716_v41 = vld [vmem:[#allocation35_spill] sm:$0xff]  ;;  %v1960_v47 = vpop.f32.mrf.mxu2 }
 0x3a7   :  { %2128 = vrot.lane.b32.xlu0 %v1957_v19, %s4296_s7  ;;  %2152 = vrot.lane.b32.xlu1 %v1986_v60, %s4297_s1  ;;  %v7718_v60 = vld [vmem:[#allocation37_spill] sm:$0xff] }
 0x3a8   :  { %v2093_v2 = vpop.permute.xlu2 %2092 }
 0x3a9   :  { %v2471_v12 = vpop.f32.mrf.mxu1  ;;  %v6174_v0 = vsel %vm2189_vm10, %v2185_v37, %v2093_v2  ;;  %v1805_v37 = vld [vmem:[%s7472_s4 + $0x70] sm:$0xff]  ;;  %v1804_v2 = vld [vmem:[%s7472_s4 + $0x68] sm:$0xff] }
 0x3aa   :  { %2246 = vmatpush.msrb.mxu0 %v1805_v37 }
 0x3ab   :  { %4120 = vmatmul.msk.f32.gmra.mxu3 %vm28_vm0, %v4256_v22  ;;  %v2179_v22 = vsel %vm907_vm2, %v7703_v25, %v6126_v10  ;;  %v7719_v25 = vld [vmem:[#allocation38_spill] sm:$0xff]  ;;  %v1802_v10 = vld [vmem:[%s7472_s4 + $0x58] sm:$0xff] }
 0x3ac   :  { %2518 = vmatmul.f32.gmra.mxu1 %v7716_v41  ;;  %2247 = vmatpush.msrb.mxu0 %v1804_v2 }
 0x3ae   :  { %v1989_v24 = vpop.f32.mrf.mxu3 }
 0x3af   :  { %2771 = vrot.lane.b32.xlu0 %v2468_v45, %s4294_s29  ;;  %2130 = vrot.lane.b32.xlu1 %v1960_v47, %s4296_s7  ;;  %v2067_v45 = vpop.permute.xlu0 %2066 }
 0x3b0   :  { %2154 = vrot.lane.b32.xlu2 %v1989_v24, %s4297_s1  ;;  %v2188_v47 = vsel %vm2180_vm9, %v2179_v22, %v2067_v45  ;;  %v1801_v45 = vld [vmem:[%s7472_s4 + $0x50] sm:$0xff] }
 0x3b1   :  { %v2474_v29 = vpop.f32.mrf.mxu1 }
 0x3b3   :  { %4121 = vmatmul.msk.f32.gmra.mxu3 %vm28_vm0, %v4257_v7 }
 0x3b4   :  { %2521 = vmatmul.f32.gmra.mxu1 %v7717_v56  ;;  %v1803_v56 = vld [vmem:[%s7472_s4 + $0x60] sm:$0xff] }
 0x3b5   :  { %2248 = vmatpush.msrb.mxu0 %v1803_v56 }
 0x3b6   :  { %v1992_v13 = vpop.f32.mrf.mxu3 }
 0x3b7   :  { %2773 = vrot.lane.b32.xlu1 %v2471_v12, %s4294_s29  ;;  %2156 = vrot.lane.b32.xlu0 %v1992_v13, %s4297_s1  ;;  %v6215_v41 = vpop.permute.xlu0 %2088  ;;  %v4259_v13 = vld [vmem:[%s7474_s3 + $0x70] sm:$0xff] }
 0x3b8   :  { %2775 = vrot.lane.b32.xlu2 %v2474_v29, %s4294_s29  ;;  %2249 = vmatpush.msrb.mxu0 %v1802_v10  ;;  %v1795_v10 = vld [vmem:[%s7472_s4 + $0x20] sm:$0xff] }
 0x3b9   :  { %v2477_v19 = vpop.f32.mrf.mxu1 }
 0x3ba   :  { %2250 = vmatpush.msrb.mxu0 %v1801_v45  ;;  %v7721_v45 = vld [vmem:[#allocation40_spill] sm:$0xff] }
 0x3bb   :  { %4122 = vmatmul.msk.f32.gmra.mxu3 %vm28_vm0, %v4258_v50 }
 0x3bc   :  { %2524 = vmatmul.f32.gmra.mxu1 %v7718_v60  ;;  %v1800_v60 = vld [vmem:[%s7472_s4 + $0x48] sm:$0xff] }
 0x3bd   :  { %2251 = vmatpush.msrb.mxu0 %v1800_v60  ;;  %v7722_v60 = vld [vmem:[#allocation41_spill] sm:$0xff] }
 0x3be   :  { %v1995_v12 = vpop.f32.mrf.mxu3 }
 0x3bf   :  { %2777 = vrot.lane.b32.xlu0 %v2477_v19, %s4294_s29  ;;  %2158 = vrot.lane.b32.xlu1 %v1995_v12, %s4297_s1  ;;  %v2063_v19 = vpop.permute.xlu1 %2062 }
 0x3c0   :  { %v2099_v29 = vpop.permute.xlu2 %2098  ;;  %v2186_v37 = vsel %vm2180_vm9, %v2177_v34, %v2063_v19 }
 0x3c1   :  { %v2480_v24 = vpop.f32.mrf.mxu1  ;;  %v6219_v7 = vsel %vm2189_vm10, %v2188_v47, %v2099_v29  ;;  %v1799_v47 = vld [vmem:[%s7472_s4 + $0x40] sm:$0xff]  ;;  %v1797_v29 = vld [vmem:[%s7472_s4 + $0x30] sm:$0xff] }
 0x3c2   :  { %2252 = vmatpush.msrb.mxu0 %v1799_v47 }
 0x3c3   :  { %4123 = vmatmul.msk.f32.gmra.mxu3 %vm28_vm0, %v4259_v13  ;;  %v1796_v13 = vld [vmem:[%s7472_s4 + $0x28] sm:$0xff] }
 0x3c4   :  { %2527 = vmatmul.f32.gmra.mxu1 %v7719_v25  ;;  %2253 = vmatpush.msrb.mxu0 %v1798_v62  ;;  %v2172_v62 = vsel %vm907_vm2, %v7710_v59, %v6062_v32  ;;  %v7725_v32 = vld [vmem:[#allocation44_spill] sm:$0xff] }
 0x3c6   :  { %v1998_v50 = vpop.f32.mrf.mxu3  ;;  %2254 = vmatpush.msrb.mxu0 %v1797_v29 }
 0x3c7   :  { %2779 = vrot.lane.b32.xlu1 %v2480_v24, %s4294_s29  ;;  %2160 = vrot.lane.b32.xlu2 %v1998_v50, %s4297_s1  ;;  %v4260_v24 = vld [vmem:[%s7474_s3 + $0x78] sm:$0xff] }
 0x3c8   :  { %v2095_v2 = vpop.permute.xlu0 %2094  ;;  %2255 = vmatpush.msrb.mxu0 %v1796_v13 }
 0x3c9   :  { %v2483_v12 = vpop.f32.mrf.mxu1  ;;  %v6245_v22 = vsel %vm2189_vm10, %v2186_v37, %v2095_v2 }
 0x3ca   :  { %2256 = vmatpush.msrb.mxu0 %v1795_v10  ;;  %v2091_v10 = vpop.permute.xlu1 %2090 }
 0x3cb   :  { %4124 = vmatmul.msk.f32.gmra.mxu3 %vm28_vm0, %v4260_v24 }
 0x3cc   :  { %2530 = vmatmul.f32.gmra.mxu1 %v7720_v61  ;;  %v7724_v61 = vld [vmem:[#allocation43_spill] sm:$0xff] }
 0x3ce   :  { %v2001_v56 = vpop.f32.mrf.mxu3 }
 0x3cf   :  { %2781 = vrot.lane.b32.xlu2 %v2483_v12, %s4294_s29  ;;  %2162 = vrot.lane.b32.xlu0 %v2001_v56, %s4297_s1  ;;  %v7723_v12 = vld [vmem:[#allocation42_spill] sm:$0xff]  ;;  %v2181_v56 = vsel %vm2180_vm9, %v2172_v62, %v6140_v42 }
 0x3d1   :  { %v2486_v25 = vpop.f32.mrf.mxu1 }
 0x3d4   :  { %2533 = vmatmul.f32.gmra.mxu1 %v7721_v45 }
 0x3d6   :  { %v2623_v19 = vpop.f32.mrf.mxu3 }
 0x3d7   :  { %2783 = vrot.lane.b32.xlu0 %v2486_v25, %s4294_s29  ;;  %2959 = vrot.lane.b32.xlu1 %v2623_v19, %s4297_s1  ;;  %v2190_v25 = vsel %vm2189_vm10, %v2181_v56, %v6144_v3  ;;  %v7727_v56 = vld [vmem:[#allocation46_spill] sm:$0xff] }
 0x3d8   :  { %v2121_v47 = vpop.permute.xlu2 %2120 }
 0x3d9   :  { %v6272_v50 = vpop.f32.mrf.mxu1 }
 0x3dc   :  { %2536 = vmatmul.f32.gmra.mxu1 %v7722_v60 }
 0x3de   :  { %v2626_v34 = vpop.f32.mrf.mxu3 }
 0x3df   :  { %2961 = vrot.lane.b32.xlu2 %v2626_v34, %s4297_s1  ;;  %v6298_v34 = vpop.permute.xlu1 %2096 }
 0x3e0   :  { %v2117_v29 = vpop.permute.xlu0 %2116 }
 0x3e1   :  { %v6276_v37 = vpop.f32.mrf.mxu1  ;;  %v2198_v45 = vsel %vm28_vm0, %v2190_v25, %v2117_v29 }
 0x3e4   :  { %2539 = vmatmul.f32.gmra.mxu1 %v7723_v12 }
 0x3e6   :  { %v2629_v2 = vpop.f32.mrf.mxu3 }
 0x3e7   :  { %2963 = vrot.lane.b32.xlu0 %v2629_v2, %s4297_s1  ;;  %v7726_v2 = vld [vmem:[#allocation45_spill] sm:$0xff] }
 0x3e8   :  { %v2119_v62 = vpop.permute.xlu1 %2118 }
 0x3e9   :  { %v6280_v24 = vpop.f32.mrf.mxu1 }
 0x3ec   :  { %2542 = vmatmul.f32.gmra.mxu1 %v7724_v61 }
 0x3ee   :  { %v2632_v13 = vpop.f32.mrf.mxu3 }
 0x3ef   :  { %2965 = vrot.lane.b32.xlu1 %v2632_v13, %s4297_s1 }
 0x3f0   :  { %v2149_v19 = vpop.permute.xlu2 %2148 }
 0x3f1   :  { %v6292_v60 = vpop.f32.mrf.mxu1  ;;  %v2207_v59 = vsel %vm2206_vm11, %v2198_v45, %v2149_v19 }
 0x3f2   :  { %4101 = vmatmul.msk.f32.vlgmr.msrb.gmra.mxu0 %vm2216_vm12, %v2207_v59 }
 0x3f4   :  { %2545 = vmatmul.f32.gmra.mxu1 %v7725_v32  ;;  %v7728_v32 = vld [vmem:[#allocation47_spill] sm:$0xff] }
 0x3f6   :  { %v2635_v42 = vpop.f32.mrf.mxu3 }
 0x3f7   :  { %2967 = vrot.lane.b32.xlu2 %v2635_v42, %s4297_s1  ;;  %v2173_v42 = vsel %vm907_vm2, %v7709_v52, %v6096_v1  ;;  %v7729_v52 = vld [vmem:[#allocation7_spill] sm:$0xff]  ;;  %v2174_v1 = vsel %vm907_vm2, %v7708_v6, %v6049_v63  ;;  %v7730_v6 = vld [vmem:[#allocation6_spill] sm:$0xff]  ;;  %v2175_v63 = vsel %vm907_vm2, %v7707_v14, %v6078_v33  ;;  %v7731_v33 = vld [vmem:[#allocation5_spill] sm:$0xff] }
 0x3f8   :  { %v6302_v12 = vpop.permute.xlu2 %2126  ;;  %v2123_v19 = vpop.permute.xlu0 %2122 }
 0x3f9   :  { %v6300_v3 = vpop.f32.mrf.mxu1 }
 0x3fc   :  { %2548 = vmatmul.f32.gmra.mxu1 %v7726_v2 }
 0x3fe   :  { %v2638_v61 = vpop.f32.mrf.mxu3 }
 0x3ff   :  { %2969 = vrot.lane.b32.xlu0 %v2638_v61, %s4297_s1  ;;  %v2182_v61 = vsel %vm2180_vm9, %v2173_v42, %v6151_v30  ;;  %v2183_v30 = vsel %vm2180_vm9, %v2174_v1, %v6198_v17  ;;  %v2184_v17 = vsel %vm2180_vm9, %v2175_v63, %v6117_v36  ;;  %v7733_v63 = vld [vmem:[#allocation48_spill] sm:$0xff] }
 0x400   :  { %v6309_v13 = vpop.permute.xlu2 %2769  ;;  %v2125_v45 = vpop.permute.xlu1 %2124 }
 0x401   :  { %v6306_v29 = vpop.f32.mrf.mxu1 }
 0x404   :  { %2551 = vmatmul.f32.gmra.mxu1 %v7727_v56  ;;  %v2191_v56 = vsel %vm2189_vm10, %v2182_v61, %v6158_v44  ;;  %v2192_v44 = vsel %vm2189_vm10, %v2183_v30, %v6215_v41  ;;  %v3009_v41 = vsel %vm907_vm2, %v5850_v57, %v6154_v55  ;;  %v2202_v57 = vsel %vm28_vm0, %v6174_v0, %v2125_v45 }
 0x405   :  { %v2199_v53 = vsel %vm28_vm0, %v2191_v56, %v2119_v62  ;;  %v3012_v0 = vsel %vm907_vm2, %v5902_v23, %v6170_v4  ;;  %v2178_v23 = vsel %vm907_vm2, %v7704_v9, %v6093_v46  ;;  %v7734_v46 = vld [vmem:[#allocation49_spill] sm:$0xff] }
 0x406   :  { %v2641_v25 = vpop.f32.mrf.mxu3  ;;  %v2187_v4 = vsel %vm2180_vm9, %v2178_v23, %v6131_v20 }
 0x407   :  { %2971 = vrot.lane.b32.xlu1 %v2641_v25, %s4297_s1 }
 0x408   :  { %v6324_v40 = vpop.permute.xlu1 %2767 }
 0x409   :  { %v6312_v59 = vpop.f32.mrf.mxu1 }
 0x40a   :  { %v2155_v25 = vpop.permute.xlu2 %2154 }
 0x40c   :  { %2554 = vmatmul.f32.gmra.mxu1 %v7728_v32 }
 0x40e   :  { %v2644_v2 = vpop.f32.mrf.mxu3 }
 0x40f   :  { %2973 = vrot.lane.b32.xlu2 %v2644_v2, %s4297_s1 }
 0x411   :  { %v2510_v49 = vpop.f32.mrf.mxu1  ;;  %v2151_v11 = vpop.permute.xlu0 %2150 }
 0x412   :  { %v2208_v32 = vsel %vm2206_vm11, %v2199_v53, %v2151_v11  ;;  %2831 = vrot.lane.b32.xlu0 %v2510_v49, %s4295_s21  ;;  %v2200_v53 = vsel %vm28_vm0, %v2192_v44, %v2121_v47  ;;  %v6338_v11 = vpop.permute.xlu2 %2775  ;;  %v2193_v47 = vsel %vm2189_vm10, %v2184_v17, %v2091_v10  ;;  %v3014_v10 = vsel %vm907_vm2, %v5935_v15, %v6134_v38 }
 0x413   :  { %4102 = vmatmul.msk.f32.gmra.mxu0 %vm2216_vm12, %v2208_v32  ;;  %v2201_v32 = vsel %vm28_vm0, %v2193_v47, %v2123_v19  ;;  %v2203_v38 = vsel %vm28_vm0, %v6245_v22, %v6302_v12  ;;  %v2196_v22 = vsel %vm2189_vm10, %v2187_v4, %v6298_v34  ;;  %v3013_v17 = vsel %vm907_vm2, %v5939_v26, %v6105_v5  ;;  %v7735_v5 = vld [vmem:[#allocation50_spill] sm:$0xff] }
 0x414   :  { %2557 = vmatmul.f32.gmra.mxu1 %v7729_v52  ;;  %v2210_v14 = vsel %vm2206_vm11, %v2201_v32, %v2155_v25 }
 0x419   :  { %v2513_v62 = vpop.f32.mrf.mxu1  ;;  %v2129_v42 = vpop.permute.xlu0 %2128 }
 0x41a   :  { %v2153_v49 = vpop.permute.xlu1 %2152  ;;  %2833 = vrot.lane.b32.xlu1 %v2513_v62, %s4295_s21 }
 0x41b   :  { %v2209_v2 = vsel %vm2206_vm11, %v2200_v53, %v2153_v49  ;;  %v7732_v53 = vld [vmem:[#allocation4_spill] sm:$0xff] }
 0x41c   :  { %4103 = vmatmul.msk.f32.gmra.mxu0 %vm2216_vm12, %v2209_v2  ;;  %2560 = vmatmul.f32.gmra.mxu1 %v7730_v6 }
 0x421   :  { %v2516_v61 = vpop.f32.mrf.mxu1  ;;  %v2772_v56 = vpop.permute.xlu0 %2771 }
 0x422   :  { %v6355_v52 = vsel %vm2180_vm9, %v3009_v41, %v2772_v56  ;;  %v2131_v1 = vpop.permute.xlu1 %2130  ;;  %v2161_v30 = vpop.permute.xlu2 %2160  ;;  %2835 = vrot.lane.b32.xlu2 %v2516_v61, %s4295_s21  ;;  %v2204_v41 = vsel %vm28_vm0, %v2196_v22, %v2129_v42  ;;  %v3015_v42 = vsel %vm907_vm2, %v5932_v18, %v6184_v27  ;;  %v7740_v27 = vld [vmem:[#allocation55_spill] sm:$0xff] }
 0x423   :  { %v2213_v61 = vsel %vm2206_vm11, %v2204_v41, %v2161_v30  ;;  %v2205_v20 = vsel %vm28_vm0, %v6219_v7, %v2131_v1  ;;  %v7736_v7 = vld [vmem:[#allocation51_spill] sm:$0xff] }
 0x424   :  { %4104 = vmatmul.msk.f32.gmra.mxu0 %vm2216_vm12, %v2210_v14  ;;  %2563 = vmatmul.f32.gmra.mxu1 %v7731_v33  ;;  %v7737_v33 = vld [vmem:[#allocation52_spill] sm:$0xff] }
 0x429   :  { %v2519_v36 = vpop.f32.mrf.mxu1  ;;  %v2157_v55 = vpop.permute.xlu0 %2156 }
 0x42a   :  { %v6366_v19 = vpop.permute.xlu1 %2773  ;;  %v2211_v44 = vsel %vm2206_vm11, %v2202_v57, %v2157_v55  ;;  %v2782_v62 = vpop.permute.xlu2 %2781  ;;  %2837 = vrot.lane.b32.xlu0 %v2519_v36, %s4295_s21  ;;  %v7738_v36 = vld [vmem:[#allocation53_spill] sm:$0xff] }
 0x42b   :  { %v6371_v25 = vsel %vm2180_vm9, %v3014_v10, %v2782_v62  ;;  %v7739_v10 = vld [vmem:[#allocation54_spill] sm:$0xff]  ;;  %v7741_v62 = vld [vmem:[#allocation56_spill] sm:$0xff] }
 0x42c   :  { %4105 = vmatmul.msk.f32.gmra.mxu0 %vm2216_vm12, %v2211_v44  ;;  %2566 = vmatmul.f32.gmra.mxu1 %v7732_v53 }
 0x431   :  { %v2522_v45 = vpop.f32.mrf.mxu1  ;;  %v2778_v15 = vpop.permute.xlu0 %2777 }
 0x432   :  { %v6382_v49 = vsel %vm2180_vm9, %v3012_v0, %v2778_v15  ;;  %v2159_v2 = vpop.permute.xlu1 %2158  ;;  %2839 = vrot.lane.b32.xlu1 %v2522_v45, %s4295_s21  ;;  %v7742_v0 = vld [vmem:[#allocation57_spill] sm:$0xff]  ;;  %v7743_v15 = vld [vmem:[#allocation58_spill] sm:$0xff] }
 0x433   :  { %v2212_v6 = vsel %vm2206_vm11, %v2203_v38, %v2159_v2 }
 0x434   :  { %4106 = vmatmul.msk.f32.gmra.mxu0 %vm2216_vm12, %v2212_v6  ;;  %2569 = vmatmul.f32.gmra.mxu1 %v7733_v63  ;;  %v7744_v6 = vld [vmem:[#allocation59_spill] sm:$0xff] }
 0x439   :  { %v2525_v12 = vpop.f32.mrf.mxu1 }
 0x43a   :  { %v2780_v47 = vpop.permute.xlu1 %2779  ;;  %2841 = vrot.lane.b32.xlu2 %v2525_v12, %s4295_s21  ;;  %v2647_v12 = vpop.f32.mrf.mxu3 }
 0x43b   :  { %v6402_v9 = vsel %vm2180_vm9, %v3013_v17, %v2780_v47  ;;  %v7745_v17 = vld [vmem:[#allocation22_spill] sm:$0xff] }
 0x43c   :  { %4107 = vmatmul.msk.f32.gmra.mxu0 %vm2216_vm12, %v2213_v61  ;;  %2572 = vmatmul.f32.gmra.mxu1 %v7734_v46  ;;  %v2680_v41 = vmul.f32 %v5925_v48, %v7745_v17 }
 0x441   :  { %v2528_v34 = vpop.f32.mrf.mxu1  ;;  %v2163_v56 = vpop.permute.xlu0 %2162 }
 0x442   :  { %v2214_v26 = vsel %vm2206_vm11, %v2205_v20, %v2163_v56  ;;  %2843 = vrot.lane.b32.xlu0 %v2528_v34, %s4295_s21  ;;  %v6451_v34 = vld [vmem:[%s7472_s4 + $0x80] ss:$0 sm:$0xff] }
 0x444   :  { %4108 = vmatmul.msk.f32.gmra.mxu0 %vm2216_vm12, %v2214_v26  ;;  %2575 = vmatmul.f32.gmra.mxu1 %v7735_v5  ;;  %v2650_v26 = vpop.f32.mrf.mxu3 }
 0x449   :  { %v2531_v32 = vpop.f32.mrf.mxu1  ;;  %v2784_v30 = vpop.permute.xlu0 %2783 }
 0x44a   :  { %v6416_v14 = vsel %vm2180_vm9, %v3015_v42, %v2784_v30  ;;  %2845 = vrot.lane.b32.xlu1 %v2531_v32, %s4295_s21 }
 0x44c   :  { %2578 = vmatmul.f32.gmra.mxu1 %v7736_v7 }
 0x451   :  { %v2534_v1 = vpop.f32.mrf.mxu1 }
 0x454   :  { %2581 = vmatmul.f32.gmra.mxu1 %v7737_v33 }
 0x459   :  { %v2537_v57 = vpop.f32.mrf.mxu1 }
 0x45c   :  { %2584 = vmatmul.f32.gmra.mxu1 %v7738_v36 }
 0x461   :  { %v6422_v55 = vpop.f32.mrf.mxu1 }
 0x464   :  { %2587 = vmatmul.f32.gmra.mxu1 %v7739_v10 }
 0x469   :  { %v6425_v18 = vpop.f32.mrf.mxu1 }
 0x46c   :  { %2590 = vmatmul.f32.gmra.mxu1 %v7740_v27 }
 0x46f   :  { %v2258_v38 = vpop.f32.mrf.mxu0 }
 0x470   :  { %v2259_v5 = vadd.f32 %v6451_v34, %v2258_v38  ;;  %v2653_v38 = vpop.f32.mrf.mxu3 }
 0x471   :  { %v6428_v44 = vpop.f32.mrf.mxu1 }
 0x472   :  { %v2282_v33 = vmax.f32 %v2259_v5, 0.0 }
 0x474   :  { %2593 = vmatmul.f32.gmra.mxu1 %v7741_v62  ;;  %v6473_v62 = vsel %vm499_vm1, %v2259_v5, %v2282_v33 }
 0x479   :  { %v6431_v53 = vpop.f32.mrf.mxu1 }
 0x47c   :  { %2596 = vmatmul.f32.gmra.mxu1 %v7742_v0 }
 0x481   :  { %v6434_v45 = vpop.f32.mrf.mxu1 }
 0x484   :  { %2599 = vmatmul.f32.gmra.mxu1 %v7743_v15 }
 0x489   :  { %v6437_v2 = vpop.f32.mrf.mxu1 }
 0x48c   :  { %2602 = vmatmul.f32.gmra.mxu1 %v7744_v6 }
 0x490   :  { %v2261_v63 = vpop.f32.mrf.mxu0 }
 0x491   :  { %v2558_v23 = vpop.f32.mrf.mxu1  ;;  %v2262_v56 = vadd.f32 %v6451_v34, %v2261_v63 }
 0x492   :  { %2895 = vrot.lane.b32.xlu2 %v2558_v23, %s4296_s7  ;;  %v2319_v23 = vmul.f32 %v6473_v62, %v6473_v62 }
 0x493   :  { %v2283_v32 = vmax.f32 %v2262_v56, 0.0 }
 0x499   :  { %v2264_v4 = vpop.f32.mrf.mxu0  ;;  %v2561_v22 = vpop.f32.mrf.mxu1 }
 0x49a   :  { %2897 = vrot.lane.b32.xlu0 %v2561_v22, %s4296_s7  ;;  %2847 = vrot.lane.b32.xlu2 %v2534_v1, %s4295_s21  ;;  %v2265_v42 = vadd.f32 %v6451_v34, %v2264_v4 }
 0x49c   :  { %v2284_v36 = vmax.f32 %v2265_v42, 0.0 }
 0x49e   :  { %v6477_v0 = vsel %vm499_vm1, %v2265_v42, %v2284_v36 }
 0x49f   :  { %v2321_v22 = vmul.f32 %v6477_v0, %v6477_v0 }
 0x4a1   :  { %v2267_v47 = vpop.f32.mrf.mxu0  ;;  %v2564_v61 = vpop.f32.mrf.mxu1 }
 0x4a2   :  { %2899 = vrot.lane.b32.xlu1 %v2564_v61, %s4296_s7  ;;  %2721 = vrot.lane.b32.xlu2 %v2680_v41, %s4293_s0  ;;  %v2268_v30 = vadd.f32 %v6451_v34, %v2267_v47  ;;  %v7746_v41 = vld [vmem:[#allocation21_spill] sm:$0xff] }
 0x4a3   :  { %2975 = vrot.lane.b32.xlu0 %v2647_v12, %s4297_s1  ;;  %v2681_v47 = vmul.f32 %v5908_v58, %v7746_v41 }
 0x4a4   :  { %v2285_v10 = vmax.f32 %v2268_v30, 0.0 }
 0x4a6   :  { %v6483_v6 = vsel %vm499_vm1, %v2268_v30, %v2285_v10 }
 0x4a7   :  { %v2322_v5 = vmul.f32 %v6483_v6, %v6483_v6  ;;  %v2303_v33 = vsel %vm907_vm2, %v6483_v6, 0.0 }
 0x4a9   :  { %v2270_v46 = vpop.f32.mrf.mxu0  ;;  %v2567_v20 = vpop.f32.mrf.mxu1 }
 0x4aa   :  { %2785 = vrot.lane.b32.xlu1 %v6272_v50, %s4294_s29  ;;  %2901 = vrot.lane.b32.xlu2 %v2567_v20, %s4296_s7  ;;  %v2271_v50 = vadd.f32 %v6451_v34, %v2270_v46  ;;  %v2298_v20 = vsel %vm907_vm2, %v6473_v62, 0.0 }
 0x4ab   :  { %2849 = vrot.lane.b32.xlu0 %v2537_v57, %s4295_s21  ;;  %v6468_v57 = vsel %vm499_vm1, %v2262_v56, %v2283_v32 }
 0x4ac   :  { %v2320_v15 = vmul.f32 %v6468_v57, %v6468_v57  ;;  %v2299_v4 = vsel %vm907_vm2, %v6468_v57, 0.0 }
 0x4ad   :  { %v2300_v42 = vadd.f32 %v2299_v4, %v2298_v20 }
 0x4ae   :  { %v2328_v56 = vsel %vm907_vm2, %v2320_v15, 0.0 }
 0x4b1   :  { %v2273_v7 = vpop.f32.mrf.mxu0  ;;  %v2570_v1 = vpop.f32.mrf.mxu1 }
 0x4b2   :  { %2787 = vrot.lane.b32.xlu2 %v6276_v37, %s4294_s29  ;;  %2977 = vrot.lane.b32.xlu1 %v2650_v26, %s4297_s1  ;;  %v2274_v27 = vadd.f32 %v6451_v34, %v2273_v7  ;;  %v2286_v37 = vmax.f32 %v2271_v50, 0.0  ;;  %v2301_v26 = vsel %vm907_vm2, %v6477_v0, 0.0  ;;  %v2327_v7 = vsel %vm907_vm2, %v2319_v23, 0.0 }
 0x4b3   :  { %2903 = vrot.lane.b32.xlu0 %v2570_v1, %s4296_s7  ;;  %v2330_v1 = vsel %vm907_vm2, %v2321_v22, 0.0  ;;  %v2329_v10 = vadd.f32 %v2328_v56, %v2327_v7 }
 0x4b4   :  { %v2287_v63 = vmax.f32 %v2274_v27, 0.0  ;;  %v6495_v61 = vsel %vm499_vm1, %v2271_v50, %v2286_v37  ;;  %v6518_v50 = vpop.permute.xlu2 %2961  ;;  %v2302_v37 = vadd.f32 %v2301_v26, %v2300_v42 }
 0x4b5   :  { %v2323_v36 = vmul.f32 %v6495_v61, %v6495_v61  ;;  %v2331_v23 = vadd.f32 %v2330_v1, %v2329_v10 }
 0x4b6   :  { %v6510_v32 = vsel %vm499_vm1, %v2274_v27, %v2287_v63  ;;  %v2332_v27 = vsel %vm907_vm2, %v2322_v5, 0.0  ;;  %v2304_v4 = vadd.f32 %v2303_v33, %v2302_v37  ;;  %v2407_v33 = vld [vmem:[%s7472_s4 + $0xd0] sm:$0xff] }
 0x4b7   :  { %v2324_v63 = vmul.f32 %v6510_v32, %v6510_v32  ;;  %v2334_v22 = vsel %vm907_vm2, %v2323_v36, 0.0  ;;  %v2333_v20 = vadd.f32 %v2332_v27, %v2331_v23 }
 0x4b9   :  { %v2276_v12 = vpop.f32.mrf.mxu0  ;;  %v2573_v17 = vpop.f32.mrf.mxu1  ;;  %v2336_v5 = vsel %vm907_vm2, %v2324_v63, 0.0  ;;  %v2335_v7 = vadd.f32 %v2334_v22, %v2333_v20  ;;  %v7747_v22 = vld [vmem:[#allocation20_spill] sm:$0xff] }
 0x4ba   :  { %v2277_v46 = vadd.f32 %v6451_v34, %v2276_v12  ;;  %2905 = vrot.lane.b32.xlu1 %v2573_v17, %s4296_s7  ;;  %2979 = vrot.lane.b32.xlu2 %v2653_v38, %s4297_s1  ;;  %v2305_v38 = vsel %vm907_vm2, %v6495_v61, 0.0  ;;  %v2307_v12 = vsel %vm907_vm2, %v6510_v32, 0.0 }
 0x4bb   :  { %2723 = vrot.lane.b32.xlu0 %v2681_v47, %s4293_s0  ;;  %v2306_v56 = vadd.f32 %v2305_v38, %v2304_v4  ;;  %v2337_v36 = vadd.f32 %v2336_v5, %v2335_v7  ;;  %v2406_v38 = vld [vmem:[%s7472_s4 + $0xc8] sm:$0xff] }
 0x4bc   :  { %v2288_v30 = vmax.f32 %v2277_v46, 0.0  ;;  %v6564_v63 = vpop.permute.xlu2 %2967 }
 0x4be   :  { %v6522_v15 = vsel %vm499_vm1, %v2277_v46, %v2288_v30  ;;  %v2409_v46 = vld [vmem:[%s7472_s4 + $0xe0] sm:$0xff]  ;;  %v2408_v30 = vld [vmem:[%s7472_s4 + $0xd8] sm:$0xff] }
 0x4bf   :  { %v2325_v17 = vmul.f32 %v6522_v15, %v6522_v15  ;;  %v2309_v42 = vsel %vm907_vm2, %v6522_v15, 0.0  ;;  %3140 = vmatpush.msra.mxu0 %v2409_v46 }
 0x4c1   :  { %v2279_v41 = vpop.f32.mrf.mxu0  ;;  %v2576_v47 = vpop.f32.mrf.mxu1  ;;  %3141 = vmatpush.msra.mxu0 %v2408_v30 }
 0x4c2   :  { %v2280_v26 = vadd.f32 %v6451_v34, %v2279_v41  ;;  %2851 = vrot.lane.b32.xlu1 %v6422_v55, %s4295_s21  ;;  %2907 = vrot.lane.b32.xlu2 %v2576_v47, %s4296_s7  ;;  %v2308_v34 = vadd.f32 %v2307_v12, %v2306_v56  ;;  %v2338_v55 = vsel %vm907_vm2, %v2325_v17, 0.0  ;;  %v2682_v12 = vmul.f32 %v5899_v21, %v7747_v22  ;;  %v2405_v47 = vld [vmem:[%s7472_s4 + $0xc0] sm:$0xff]  ;;  %v2404_v56 = vld [vmem:[%s7472_s4 + $0xb8] sm:$0xff] }
 0x4c3   :  { %2789 = vrot.lane.b32.xlu0 %v6280_v24, %s4294_s29  ;;  %3142 = vmatpush.msra.mxu0 %v2407_v33  ;;  %v2339_v23 = vadd.f32 %v2338_v55, %v2337_v36  ;;  %v2656_v55 = vpop.f32.mrf.mxu3  ;;  %v7748_v33 = vld [vmem:[#allocation19_spill] sm:$0xff] }
 0x4c4   :  { %v2289_v1 = vmax.f32 %v2280_v26, 0.0  ;;  %v2310_v10 = vadd.f32 %v2309_v42, %v2308_v34  ;;  %v2403_v42 = vld [vmem:[%s7472_s4 + $0xb0] sm:$0xff]  ;;  %v2683_v36 = vmul.f32 %v5884_v39, %v7748_v33 }
 0x4c5   :  { %3143 = vmatpush.msra.mxu0 %v2406_v38 }
 0x4c6   :  { %v6555_v24 = vsel %vm499_vm1, %v2280_v26, %v2289_v1 }
 0x4c7   :  { %v2311_v37 = vsel %vm907_vm2, %v6555_v24, 0.0  ;;  %v2326_v27 = vmul.f32 %v6555_v24, %v6555_v24  ;;  %3144 = vmatpush.msra.mxu0 %v2405_v47 }
 0x4c8   :  { %v2312_v4 = vadd.f32 %v2311_v37, %v2310_v10  ;;  %v2401_v37 = vld [vmem:[%s7472_s4 + $0xa0] sm:$0xff] }
 0x4c9   :  { %v2340_v17 = vsel %vm907_vm2, %v2326_v27, 0.0  ;;  %v2579_v41 = vpop.f32.mrf.mxu1  ;;  %3145 = vmatpush.msra.mxu0 %v2404_v56  ;;  %v6590_v27 = vpop.permute.xlu2 %2973 }
 0x4ca   :  { %v2313_v46 = vrot.slane %v2312_v4, 4  ;;  %v2341_v20 = vadd.f32 %v2340_v17, %v2339_v23  ;;  %2725 = vrot.lane.b32.xlu1 %v2682_v12, %s4293_s0  ;;  %2853 = vrot.lane.b32.xlu2 %v6425_v18, %s4295_s21  ;;  %v2402_v18 = vld [vmem:[%s7472_s4 + $0xa8] sm:$0xff]  ;;  %v2399_v17 = vld [vmem:[%s7472_s4 + $0x90] sm:$0xff] }
 0x4cb   :  { %2909 = vrot.lane.b32.xlu0 %v2579_v41, %s4296_s7  ;;  %3146 = vmatpush.msra.mxu0 %v2403_v42  ;;  %v6601_v41 = vpop.permute.xlu0 %2963 }
 0x4cc   :  { %v2314_v26 = vadd.f32 %v2313_v46, %v2312_v4  ;;  %v2342_v5 = vrot.slane %v2341_v20, 4  ;;  %v2400_v4 = vld [vmem:[%s7472_s4 + $0x98] sm:$0xff] }
 0x4cd   :  { %3147 = vmatpush.msra.mxu0 %v2402_v18  ;;  %v2960_v18 = vpop.permute.xlu1 %2959 }
 0x4ce   :  { %v2315_v30 = vrot.slane %v2314_v26, 2  ;;  %v2343_v7 = vadd.f32 %v2342_v5, %v2341_v20  ;;  %v2398_v20 = vld [vmem:[%s7472_s4 + $0x88] sm:$0xff] }
 0x4cf   :  { %3148 = vmatpush.msra.mxu0 %v2401_v37 }
 0x4d0   :  { %v2316_v34 = vadd.f32 %v2315_v30, %v2314_v26  ;;  %v2344_v1 = vrot.slane %v2343_v7, 2 }
 0x4d1   :  { %v2582_v10 = vpop.f32.mrf.mxu1  ;;  %3149 = vmatpush.msra.mxu0 %v2400_v4  ;;  %v6615_v30 = vpop.permute.xlu2 %2835 }
 0x4d2   :  { %v2317_v38 = vrot.slane %v2316_v34, 1  ;;  %v2345_v23 = vadd.f32 %v2344_v1, %v2343_v7  ;;  %2911 = vrot.lane.b32.xlu1 %v2582_v10, %s4296_s7  ;;  %2727 = vrot.lane.b32.xlu2 %v2683_v36, %s4293_s0 }
 0x4d3   :  { %2981 = vrot.lane.b32.xlu0 %v2656_v55, %s4297_s1  ;;  %3150 = vmatpush.msra.mxu0 %v2399_v17  ;;  %v6617_v55 = vpop.permute.xlu0 %2969 }
 0x4d4   :  { %v2318_v22 = vadd.f32 %v2317_v38, %v2316_v34  ;;  %v2346_v12 = vrot.slane %v2345_v23, 1  ;;  %v2659_v34 = vpop.f32.mrf.mxu3 }
 0x4d5   :  { %3151 = vmatpush.msra.mxu0 %v2398_v20  ;;  %v6625_v36 = vpop.permute.xlu1 %2965 }
 0x4d6   :  { %v2347_v47 = vadd.f32 %v2346_v12, %v2345_v23  ;;  %v6603_v46 = vmul.f32 0.015625, %v2318_v22  ;;  %v7749_v22 = vld [vmem:[#allocation18_spill] sm:$0xff] }
 0x4d7   :  { %v2684_v12 = vmul.f32 %v5870_v51, %v7749_v22 }
 0x4d8   :  { %v2349_v56 = vmul.f32 0.015625, %v2347_v47  ;;  %v2350_v26 = vmul.f32 %v6603_v46, %v6603_v46 }
 0x4d9   :  { %v2585_v5 = vpop.f32.mrf.mxu1 }
 0x4da   :  { %v2351_v42 = vsub.f32 %v2349_v56, %v2350_v26  ;;  %2791 = vrot.lane.b32.xlu1 %v6292_v60, %s4294_s29  ;;  %2913 = vrot.lane.b32.xlu2 %v2585_v5, %s4296_s7  ;;  %v6623_v60 = vpop.permute.xlu2 %2841 }
 0x4db   :  { %2855 = vrot.lane.b32.xlu0 %v6428_v44, %s4295_s21  ;;  %v2832_v38 = vpop.permute.xlu0 %2831 }
 0x4dc   :  { %v2352_v7 = vmax.f32 %v2351_v42, 0.0  ;;  %v2662_v37 = vpop.f32.mrf.mxu3 }
 0x4de   :  { %v2361_v1 = vadd.f32 1e-05, %v2352_v7  ;;  %v2359_v7 = vsub.f32 %v6522_v15, %v6603_v46  ;;  %v4194_v15 = vld [vmem:[%s7472_s4 + $0x82] ss:$0 sm:$0xff] }
 0x4e0   :  { %4206 = vrsqrt.f32 %v2361_v1  ;;  %vm2368_vm14 = vweird.f32 %v2361_v1 }
 0x4e1   :  { %v2588_v33 = vpop.f32.mrf.mxu1 }
 0x4e2   :  { %2793 = vrot.lane.b32.xlu2 %v6300_v3, %s4294_s29  ;;  %2983 = vrot.lane.b32.xlu1 %v2659_v34, %s4297_s1  ;;  %v3007_v3 = vsel %vm907_vm2, %v5843_v28, %v6072_v16  ;;  %v2360_v16 = vsub.f32 %v6555_v24, %v6603_v46  ;;  %v2358_v34 = vsub.f32 %v6510_v32, %v6603_v46 }
 0x4e3   :  { %2915 = vrot.lane.b32.xlu0 %v2588_v33, %s4296_s7  ;;  %v3023_v17 = vsel %vm2180_vm9, %v3007_v3, %v6324_v40  ;;  %v4193_v40 = vld [vmem:[%s7472_s4 + $0x81] ss:$0 sm:$0xff]  ;;  %v6650_v33 = vpop.permute.xlu1 %2971  ;;  %v2355_v3 = vsub.f32 %v6477_v0, %v6603_v46 }
 0x4e4   :  { %v3039_v20 = vsel %vm2189_vm10, %v3023_v17, %v2832_v38  ;;  %v7750_v17 = vld [vmem:[#allocation17_spill] sm:$0xff] }
 0x4e6   :  { %v4207_v44 = vpop.eup %4206 }
 0x4e7   :  { %v2363_v10 = vmul.f32 %v4207_v44, %v2361_v1  ;;  %vm2369_vm13 = vweird.f32 %v4207_v44 }
 0x4e8   :  { %vm2370_vm15 = vmor %vm2368_vm14, %vm2369_vm13 }
 0x4e9   :  { %v2364_v23 = vmul.f32 %v4207_v44, %v2363_v10  ;;  %v2591_v4 = vpop.f32.mrf.mxu1  ;;  %v2357_v10 = vsub.f32 %v6495_v61, %v6603_v46 }
 0x4ea   :  { %2917 = vrot.lane.b32.xlu1 %v2591_v4, %s4296_s7  ;;  %2985 = vrot.lane.b32.xlu2 %v2662_v37, %s4297_s1  ;;  %v2356_v4 = vsub.f32 %v6483_v6, %v6603_v46 }
 0x4eb   :  { %v2365_v47 = vmul.f32 0.5, %v2364_v23  ;;  %2729 = vrot.lane.b32.xlu0 %v2684_v12, %s4293_s0 }
 0x4ec   :  { %v2896_v56 = vpop.permute.xlu2 %2895 }
 0x4ed   :  { %v2366_v26 = vsub.f32 1.5, %v2365_v47  ;;  %v3055_v5 = vsel %vm28_vm0, %v3039_v20, %v2896_v56  ;;  %v2685_v47 = vmul.f32 %v5847_v43, %v7750_v17  ;;  %v3008_v17 = vsel %vm907_vm2, %v5840_v35, %v6107_v8 }
 0x4ee   :  { %v3071_v42 = vsel %vm2206_vm11, %v3055_v5, %v2960_v18  ;;  %v2353_v5 = vsub.f32 %v6473_v62, %v6603_v46 }
 0x4ef   :  { %v2367_v28 = vmul.f32 %v4207_v44, %v2366_v26  ;;  %4125 = vmatmul.msk.f32.vlgmr.msra.gmra.mxu0 %vm2216_vm12, %v3071_v42  ;;  %v2354_v26 = vsub.f32 %v6468_v57, %v6603_v46 }
 0x4f1   :  { %v2371_v18 = vsel %vm2370_vm15, %v4207_v44, %v2367_v28  ;;  %v2594_v1 = vpop.f32.mrf.mxu1 }
 0x4f2   :  { %v2379_v37 = vmul.f32 %v2371_v18, %v2360_v16  ;;  %2857 = vrot.lane.b32.xlu1 %v6431_v53, %s4295_s21  ;;  %2919 = vrot.lane.b32.xlu2 %v2594_v1, %s4296_s7  ;;  %v2378_v24 = vmul.f32 %v2371_v18, %v2359_v7  ;;  %v2377_v38 = vmul.f32 %v2371_v18, %v2358_v34  ;;  %v2834_v16 = vpop.permute.xlu1 %2833  ;;  %v6686_v7 = vpop.permute.xlu0 %2837 }
 0x4f3   :  { %2795 = vrot.lane.b32.xlu0 %v6306_v29, %s4294_s29  ;;  %v2376_v61 = vmul.f32 %v2371_v18, %v2357_v10  ;;  %v2375_v12 = vmul.f32 %v2371_v18, %v2356_v4  ;;  %v2374_v56 = vmul.f32 %v2371_v18, %v2355_v3  ;;  %v2373_v28 = vmul.f32 %v2371_v18, %v2354_v26 }
 0x4f4   :  { %v6662_v32 = vpop.permute.xlu2 %2847  ;;  %v2388_v44 = vmul.f32 %v4193_v40, %v2379_v37  ;;  %v2387_v23 = vmul.f32 %v4193_v40, %v2378_v24  ;;  %v2386_v22 = vmul.f32 %v4193_v40, %v2377_v38  ;;  %v2372_v34 = vmul.f32 %v2371_v18, %v2353_v5  ;;  %v2665_v37 = vpop.f32.mrf.mxu3 }
 0x4f5   :  { %v2385_v20 = vmul.f32 %v4193_v40, %v2376_v61  ;;  %v2384_v42 = vmul.f32 %v4193_v40, %v2375_v12  ;;  %v2383_v46 = vmul.f32 %v4193_v40, %v2374_v56  ;;  %v2382_v10 = vmul.f32 %v4193_v40, %v2373_v28  ;;  %v4261_v12 = vld [vmem:[#allocation2] sm:$0xff] }
 0x4f6   :  { %v6666_v53 = vadd.f32 %v4194_v15, %v2388_v44  ;;  %v6673_v29 = vadd.f32 %v4194_v15, %v2387_v23  ;;  %v6681_v0 = vadd.f32 %v4194_v15, %v2386_v22  ;;  %v7751_v44 = vld [vmem:[#allocation16_spill] sm:$0xff] }
 0x4f7   :  { %v6691_v62 = vadd.f32 %v4194_v15, %v2385_v20  ;;  %v6694_v1 = vadd.f32 %v4194_v15, %v2384_v42  ;;  %v6697_v24 = vadd.f32 %v4194_v15, %v2383_v46  ;;  %v2686_v23 = vmul.f32 %v5837_v54, %v7751_v44 }
 0x4f8   :  { %3428 = vmatpush.msrb.mxu2 %v6666_v53  ;;  %v6703_v18 = vadd.f32 %v4194_v15, %v2382_v10 }
 0x4f9   :  { %v2597_v6 = vpop.f32.mrf.mxu1 }
 0x4fa   :  { %3429 = vmatpush.msrb.mxu2 %v6673_v29  ;;  %2731 = vrot.lane.b32.xlu1 %v2685_v47, %s4293_s0  ;;  %v6705_v61 = vpop.permute.xlu1 %2839  ;;  %v2844_v4 = vpop.permute.xlu0 %2843  ;;  %v3024_v47 = vsel %vm2180_vm9, %v3008_v17, %v6309_v13  ;;  %v4262_v13 = vld [vmem:[#allocation2 + $0x8] sm:$0xff] }
 0x4fb   :  { %2921 = vrot.lane.b32.xlu0 %v2597_v6, %s4296_s7  ;;  %2859 = vrot.lane.b32.xlu2 %v6434_v45, %s4295_s21  ;;  %v2381_v45 = vmul.f32 %v4193_v40, %v2372_v34  ;;  %v7752_v6 = vld [vmem:[#allocation13_spill] sm:$0xff] }
 0x4fc   :  { %3430 = vmatpush.msrb.mxu2 %v6681_v0  ;;  %v6689_v57 = vpop.permute.xlu2 %2721  ;;  %v3552_v5 = vmul.f32 %v6697_v24, %v7752_v6 }
 0x4fd   :  { %v6710_v22 = vadd.f32 %v4194_v15, %v2381_v45  ;;  %v3040_v15 = vsel %vm2189_vm10, %v3024_v47, %v2834_v16  ;;  %v7754_v45 = vld [vmem:[#allocation68_spill] sm:$0xff]  ;;  %v3045_v47 = vsel %vm2189_vm10, %v6402_v9, %v2844_v4  ;;  %v7760_v4 = vld [vmem:[#allocation75_spill] sm:$0xff] }
 0x4fe   :  { %3431 = vmatpush.msrb.mxu2 %v6691_v62  ;;  %v7759_v9 = vld [vmem:[#allocation72_spill] sm:$0xff] }
 0x4ff   :  { %v3011_v6 = vsel %vm907_vm2, %v7760_v4, %v7759_v9 }
 0x500   :  { %3432 = vmatpush.msrb.mxu2 %v6694_v1 }
 0x501   :  { %v2600_v38 = vpop.f32.mrf.mxu1 }
 0x502   :  { %3433 = vmatpush.msrb.mxu2 %v6697_v24  ;;  %2923 = vrot.lane.b32.xlu1 %v2600_v38, %s4296_s7  ;;  %v6721_v20 = vpop.permute.xlu1 %2845  ;;  %v7755_v38 = vld [vmem:[#allocation71_spill] sm:$0xff] }
 0x503   :  { %2733 = vrot.lane.b32.xlu2 %v2686_v23, %s4293_s0  ;;  %2987 = vrot.lane.b32.xlu0 %v2665_v37, %s4297_s1  ;;  %v4263_v37 = vld [vmem:[#allocation2 + $0x10] sm:$0xff]  ;;  %v3010_v44 = vsel %vm907_vm2, %v7755_v38, %v7754_v45  ;;  %v4266_v45 = vld [vmem:[#allocation2 + $0x28] sm:$0xff] }
 0x504   :  { %3434 = vmatpush.msrb.mxu2 %v6703_v18  ;;  %v2902_v40 = vpop.permute.xlu2 %2901  ;;  %v3026_v23 = vsel %vm2180_vm9, %v3010_v44, %v6366_v19 }
 0x506   :  { %3435 = vmatpush.msrb.mxu2 %v6710_v22 }
 0x507   :  { %4141 = vmatmul.msk.f32.vlgmr.msrb.gmra.mxu2 %vm28_vm0, %v4261_v12  ;;  %v7757_v12 = vld [vmem:[#allocation10_spill] sm:$0xff] }
 0x509   :  { %v2603_v3 = vpop.f32.mrf.mxu1 }
 0x50a   :  { %2797 = vrot.lane.b32.xlu1 %v6312_v59, %s4294_s29  ;;  %v2668_v59 = vpop.f32.mrf.mxu3 }
 0x50b   :  { %2925 = vrot.lane.b32.xlu2 %v2603_v3, %s4296_s7  ;;  %2861 = vrot.lane.b32.xlu0 %v6437_v2, %s4295_s21  ;;  %v7753_v2 = vld [vmem:[#allocation15_spill] sm:$0xff]  ;;  %v3553_v3 = vmul.f32 %v6694_v1, %v7757_v12 }
 0x50c   :  { %v2898_v56 = vpop.permute.xlu0 %2897  ;;  %v6727_v26 = vpop.permute.xlu2 %2787  ;;  %v3550_v42 = vmul.f32 %v6710_v22, %v7753_v2 }
 0x50d   :  { %v3056_v35 = vsel %vm28_vm0, %v3040_v15, %v2898_v56 }
 0x50e   :  { %v3072_v8 = vsel %vm2206_vm11, %v3056_v35, %v6518_v50  ;;  %v3041_v50 = vsel %vm2189_vm10, %v6355_v52, %v6615_v30  ;;  %v7756_v52 = vld [vmem:[#allocation14_spill] sm:$0xff] }
 0x50f   :  { %4126 = vmatmul.msk.f32.gmra.mxu0 %vm2216_vm12, %v3072_v8  ;;  %4142 = vmatmul.msk.f32.gmra.mxu2 %vm28_vm0, %v4262_v13  ;;  %v3551_v30 = vmul.f32 %v6703_v18, %v7756_v52  ;;  %v4264_v13 = vld [vmem:[#allocation2 + $0x18] sm:$0xff]  ;;  %v4267_v52 = vld [vmem:[#allocation2 + $0x30] sm:$0xff] }
 0x512   :  { %2989 = vrot.lane.b32.xlu1 %v2668_v59, %s4297_s1 }
 0x513   :  { %3570 = vrot.lane.b32.xlu2 %v3552_v5, %s4293_s0  ;;  %3566 = vrot.lane.b32.xlu0 %v3550_v42, %s4293_s0 }
 0x514   :  { %v2900_v28 = vpop.permute.xlu1 %2899  ;;  %v6744_v16 = vpop.permute.xlu2 %2979 }
 0x515   :  { %v3057_v46 = vsel %vm28_vm0, %v3041_v50, %v2900_v28  ;;  %v6747_v34 = vpop.permute.xlu0 %2975  ;;  %v4265_v28 = vld [vmem:[#allocation2 + $0x20] sm:$0xff] }
 0x516   :  { %v3073_v10 = vsel %vm2206_vm11, %v3057_v46, %v6601_v41  ;;  %v3042_v41 = vsel %vm2189_vm10, %v3026_v23, %v6686_v7  ;;  %v3044_v46 = vsel %vm2189_vm10, %v6382_v49, %v6623_v60  ;;  %v3046_v60 = vsel %vm2189_vm10, %v6371_v25, %v6721_v20 }
 0x517   :  { %4127 = vmatmul.msk.f32.gmra.mxu0 %vm2216_vm12, %v3073_v10  ;;  %4143 = vmatmul.msk.f32.gmra.mxu2 %vm28_vm0, %v4263_v37  ;;  %v3058_v17 = vsel %vm28_vm0, %v3042_v41, %v2902_v40  ;;  %v7758_v40 = vld [vmem:[#allocation12_spill] sm:$0xff]  ;;  %v3047_v41 = vsel %vm2189_vm10, %v6416_v14, %v6662_v32 }
 0x518   :  { %v3074_v8 = vsel %vm2206_vm11, %v3058_v17, %v6625_v36  ;;  %v3554_v59 = vmul.f32 %v6691_v62, %v7758_v40  ;;  %v3027_v36 = vsel %vm2180_vm9, %v3011_v6, %v6338_v11  ;;  %v4270_v40 = vld [vmem:[#allocation2 + $0x48] sm:$0xff] }
 0x51a   :  { %3568 = vrot.lane.b32.xlu1 %v3551_v30, %s4293_s0 }
 0x51b   :  { %3572 = vrot.lane.b32.xlu0 %v3553_v3, %s4293_s0  ;;  %v4268_v3 = vld [vmem:[#allocation2 + $0x38] sm:$0xff] }
 0x51c   :  { %v2786_v15 = vpop.permute.xlu1 %2785  ;;  %v2908_v56 = vpop.permute.xlu2 %2907 }
 0x51d   :  { %v2850_v35 = vpop.permute.xlu0 %2849  ;;  %v3061_v19 = vsel %vm28_vm0, %v3045_v47, %v2908_v56 }
 0x51e   :  { %v3077_v7 = vsel %vm2206_vm11, %v3061_v19, %v6650_v33  ;;  %v3043_v33 = vsel %vm2189_vm10, %v3027_v36, %v6705_v61  ;;  %v4269_v19 = vld [vmem:[#allocation2 + $0x40] sm:$0xff] }
 0x51f   :  { %4128 = vmatmul.msk.f32.gmra.mxu0 %vm2216_vm12, %v3074_v8  ;;  %4144 = vmatmul.msk.f32.gmra.mxu2 %vm28_vm0, %v4264_v13 }
 0x522   :  { %3574 = vrot.lane.b32.xlu1 %v3554_v59, %s4293_s0 }
 0x524   :  { %v2978_v5 = vpop.permute.xlu1 %2977 }
 0x525   :  { %v2904_v2 = vpop.permute.xlu0 %2903 }
 0x526   :  { %v3059_v42 = vsel %vm28_vm0, %v3043_v33, %v2904_v2 }
 0x527   :  { %v3075_v50 = vsel %vm2206_vm11, %v3059_v42, %v6564_v63  ;;  %4145 = vmatmul.msk.f32.gmra.mxu2 %vm28_vm0, %v4265_v28  ;;  %v2854_v63 = vpop.permute.xlu2 %2853 }
 0x528   :  { %4129 = vmatmul.msk.f32.gmra.mxu0 %vm2216_vm12, %v3075_v50 }
 0x52c   :  { %v2906_v11 = vpop.permute.xlu1 %2905 }
 0x52d   :  { %v2724_v10 = vpop.permute.xlu0 %2723  ;;  %v3060_v37 = vsel %vm28_vm0, %v3044_v46, %v2906_v11 }
 0x52e   :  { %v3076_v61 = vsel %vm2206_vm11, %v3060_v37, %v6617_v55 }
 0x52f   :  { %4146 = vmatmul.msk.f32.gmra.mxu2 %vm28_vm0, %v4266_v45  ;;  %v2728_v30 = vpop.permute.xlu2 %2727 }
 0x530   :  { %4130 = vmatmul.msk.f32.gmra.mxu0 %vm2216_vm12, %v3076_v61  ;;  %v3019_v28 = vsel %vm907_vm2, %v5884_v39, %v2728_v30 }
 0x534   :  { %v2852_v38 = vpop.permute.xlu1 %2851 }
 0x535   :  { %v2790_v44 = vpop.permute.xlu0 %2789 }
 0x537   :  { %4147 = vmatmul.msk.f32.gmra.mxu2 %vm28_vm0, %v4267_v52  ;;  %v2914_v56 = vpop.permute.xlu2 %2913 }
 0x538   :  { %4131 = vmatmul.msk.f32.gmra.mxu0 %vm2216_vm12, %v3077_v7 }
 0x53c   :  { %v2726_v49 = vpop.permute.xlu1 %2725 }
 0x53d   :  { %v2910_v55 = vpop.permute.xlu0 %2909  ;;  %v3018_v4 = vsel %vm907_vm2, %v5899_v21, %v2726_v49 }
 0x53e   :  { %v3062_v23 = vsel %vm28_vm0, %v3046_v60, %v2910_v55 }
 0x53f   :  { %v3078_v12 = vsel %vm2206_vm11, %v3062_v23, %v6590_v27  ;;  %4148 = vmatmul.msk.f32.gmra.mxu2 %vm28_vm0, %v4268_v3  ;;  %v3016_v27 = vsel %vm907_vm2, %v5925_v48, %v6689_v57  ;;  %v3017_v48 = vsel %vm907_vm2, %v5908_v58, %v2724_v10  ;;  %v2794_v57 = vpop.permute.xlu2 %2793  ;;  %v3034_v58 = vsel %vm2180_vm9, %v3018_v4, %v2790_v44  ;;  %v4274_v3 = vld [vmem:[#allocation2 + $0x68] sm:$0xff] }
 0x540   :  { %4132 = vmatmul.msk.f32.gmra.mxu0 %vm2216_vm12, %v3078_v12  ;;  %v3032_v8 = vsel %vm2180_vm9, %v3016_v27, %v2786_v15  ;;  %v3033_v15 = vsel %vm2180_vm9, %v3017_v48, %v6727_v26  ;;  %v3050_v33 = vsel %vm2189_vm10, %v3034_v58, %v2854_v63  ;;  %v4275_v27 = vld [vmem:[#allocation2 + $0x70] sm:$0xff]  ;;  %v4280_v58 = vld [vmem:[#allocation2 + $0x98] sm:$0xff] }
 0x541   :  { %v3048_v14 = vsel %vm2189_vm10, %v3032_v8, %v2850_v35  ;;  %v3049_v35 = vsel %vm2189_vm10, %v3033_v15, %v2852_v38  ;;  %v4273_v38 = vld [vmem:[#allocation2 + $0x60] sm:$0xff] }
 0x542   :  { %v3064_v32 = vsel %vm28_vm0, %v3048_v14, %v2914_v56  ;;  %v4277_v15 = vld [vmem:[#allocation2 + $0x80] sm:$0xff] }
 0x544   :  { %v2912_v17 = vpop.permute.xlu1 %2911 }
 0x545   :  { %v3063_v47 = vsel %vm28_vm0, %v3047_v41, %v2912_v17  ;;  %v2982_v25 = vpop.permute.xlu0 %2981 }
 0x546   :  { %v3079_v20 = vsel %vm2206_vm11, %v3063_v47, %v6747_v34  ;;  %v3080_v34 = vsel %vm2206_vm11, %v3064_v32, %v2978_v5  ;;  %v4271_v5 = vld [vmem:[#allocation2 + $0x50] sm:$0xff]  ;;  %v4276_v32 = vld [vmem:[#allocation2 + $0x78] sm:$0xff] }
 0x547   :  { %4149 = vmatmul.msk.f32.gmra.mxu2 %vm28_vm0, %v4269_v19  ;;  %v2986_v26 = vpop.permute.xlu2 %2985 }
 0x548   :  { %4133 = vmatmul.msk.f32.gmra.mxu0 %vm2216_vm12, %v3079_v20 }
 0x54c   :  { %v2792_v7 = vpop.permute.xlu1 %2791 }
 0x54d   :  { %v2856_v13 = vpop.permute.xlu0 %2855  ;;  %v3035_v46 = vsel %vm2180_vm9, %v3019_v28, %v2792_v7 }
 0x54e   :  { %v3051_v11 = vsel %vm2189_vm10, %v3035_v46, %v2856_v13  ;;  %v4283_v46 = vld [vmem:[#allocation2 + $0xb0] sm:$0xff] }
 0x54f   :  { %4150 = vmatmul.msk.f32.gmra.mxu2 %vm28_vm0, %v4270_v40  ;;  %v2920_v37 = vpop.permute.xlu2 %2919 }
 0x550   :  { %4134 = vmatmul.msk.f32.gmra.mxu0 %vm2216_vm12, %v3080_v34  ;;  %v3067_v45 = vsel %vm28_vm0, %v3051_v11, %v2920_v37  ;;  %v4284_v37 = vld [vmem:[#allocation2 + $0xb8] sm:$0xff] }
 0x554   :  { %v2984_v59 = vpop.permute.xlu1 %2983 }
 0x555   :  { %v2916_v9 = vpop.permute.xlu0 %2915  ;;  %v3083_v63 = vsel %vm2206_vm11, %v3067_v45, %v2984_v59 }
 0x556   :  { %v3065_v6 = vsel %vm28_vm0, %v3049_v35, %v2916_v9  ;;  %v4278_v35 = vld [vmem:[#allocation2 + $0x88] sm:$0xff] }
 0x557   :  { %v3081_v36 = vsel %vm2206_vm11, %v3065_v6, %v6744_v16  ;;  %4151 = vmatmul.msk.f32.gmra.mxu2 %vm28_vm0, %v4271_v5  ;;  %v4272_v16 = vld [vmem:[#allocation2 + $0x58] sm:$0xff]  ;;  %v2860_v23 = vpop.permute.xlu2 %2859  ;;  %v4279_v6 = vld [vmem:[#allocation2 + $0x90] sm:$0xff] }
 0x558   :  { %4135 = vmatmul.msk.f32.gmra.mxu0 %vm2216_vm12, %v3081_v36 }
 0x55c   :  { %v2918_v2 = vpop.permute.xlu1 %2917 }
 0x55d   :  { %v2730_v42 = vpop.permute.xlu0 %2729  ;;  %v3066_v50 = vsel %vm28_vm0, %v3050_v33, %v2918_v2  ;;  %v4281_v2 = vld [vmem:[#allocation2 + $0xa0] sm:$0xff] }
 0x55e   :  { %v3082_v21 = vsel %vm2206_vm11, %v3066_v50, %v2982_v25  ;;  %v3020_v39 = vsel %vm907_vm2, %v5870_v51, %v2730_v42 }
 0x55f   :  { %4152 = vmatmul.msk.f32.gmra.mxu2 %vm28_vm0, %v4272_v16  ;;  %v3036_v44 = vsel %vm2180_vm9, %v3020_v39, %v2794_v57 }
 0x560   :  { %4136 = vmatmul.msk.f32.gmra.mxu0 %vm2216_vm12, %v3082_v21  ;;  %v4282_v21 = vld [vmem:[#allocation2 + $0xa8] sm:$0xff] }
 0x564   :  { %v2858_v10 = vpop.permute.xlu1 %2857 }
 0x565   :  { %v2796_v61 = vpop.permute.xlu0 %2795  ;;  %v3052_v49 = vsel %vm2189_vm10, %v3036_v44, %v2858_v10 }
 0x567   :  { %4153 = vmatmul.msk.f32.gmra.mxu2 %vm28_vm0, %v4273_v38 }
 0x568   :  { %4137 = vmatmul.msk.f32.gmra.mxu0 %vm2216_vm12, %v3083_v63 }
 0x56c   :  { %v2732_v52 = vpop.permute.xlu1 %2731  ;;  %v3153_v34 = vpop.f32.mrf.mxu0 }
 0x56d   :  { %v2922_v60 = vpop.permute.xlu0 %2921  ;;  %v3021_v55 = vsel %vm907_vm2, %v5847_v43, %v2732_v52  ;;  %v2734_v43 = vpop.permute.xlu2 %2733  ;;  %v6900_v52 = vld [vmem:[%s7472_s4 + $0xe8] ss:$0 sm:$0xff] }
 0x56e   :  { %v3068_v30 = vsel %vm28_vm0, %v3052_v49, %v2922_v60  ;;  %v3037_v51 = vsel %vm2180_vm9, %v3021_v55, %v2796_v61  ;;  %v3022_v19 = vsel %vm907_vm2, %v5837_v54, %v2734_v43  ;;  %v3154_v55 = vadd.f32 %v6900_v52, %v3153_v34 }
 0x56f   :  { %v3084_v12 = vsel %vm2206_vm11, %v3068_v30, %v2986_v26  ;;  %4154 = vmatmul.msk.f32.gmra.mxu2 %vm28_vm0, %v4274_v3  ;;  %v3053_v17 = vsel %vm2189_vm10, %v3037_v51, %v2860_v23 }
 0x570   :  { %4138 = vmatmul.msk.f32.gmra.mxu0 %vm2216_vm12, %v3084_v12  ;;  %v3201_v51 = vmax.f32 %v3154_v55, 0.0 }
 0x574   :  { %v2924_v41 = vpop.permute.xlu1 %2923 }
 0x575   :  { %v3069_v47 = vsel %vm28_vm0, %v3053_v17, %v2924_v41  ;;  %v2988_v25 = vpop.permute.xlu0 %2987  ;;  %v2926_v13 = vpop.permute.xlu2 %2925 }
 0x576   :  { %v3085_v20 = vsel %vm2206_vm11, %v3069_v47, %v2988_v25 }
 0x577   :  { %4155 = vmatmul.msk.f32.gmra.mxu2 %vm28_vm0, %v4275_v27 }
 0x578   :  { %4139 = vmatmul.msk.f32.gmra.mxu0 %vm2216_vm12, %v3085_v20 }
 0x57c   :  { %v2798_v56 = vpop.permute.xlu1 %2797 }
 0x57d   :  { %v3038_v8 = vsel %vm2180_vm9, %v3022_v19, %v2798_v56  ;;  %v2862_v14 = vpop.permute.xlu0 %2861  ;;  %v6916_v56 = vsel %vm499_vm1, %v3154_v55, %v3201_v51 }
 0x57e   :  { %v3054_v7 = vsel %vm2189_vm10, %v3038_v8, %v2862_v14 }
 0x57f   :  { %4156 = vmatmul.msk.f32.gmra.mxu2 %vm28_vm0, %v4276_v32  ;;  %v3070_v40 = vsel %vm28_vm0, %v3054_v7, %v2926_v13  ;;  %v3270_v13 = vmul.f32 %v6916_v56, %v6916_v56 }
 0x584   :  { %v2990_v48 = vpop.permute.xlu1 %2989 }
 0x585   :  { %v3086_v57 = vsel %vm2206_vm11, %v3070_v40, %v2990_v48 }
 0x586   :  { %4140 = vmatmul.msk.f32.gmra.mxu0 %vm2216_vm12, %v3086_v57 }
 0x587   :  { %4157 = vmatmul.msk.f32.gmra.mxu2 %vm28_vm0, %v4277_v15 }
 0x58a   :  { %v3437_v54 = vpop.f32.mrf.mxu2 }
 0x58b   :  { %3598 = vrot.lane.b32.xlu2 %v3437_v54, %s4294_s29  ;;  %v3233_v54 = vsel %vm907_vm2, %v6916_v56, 0.0 }
 0x58c   :  { %v3156_v59 = vpop.f32.mrf.mxu0 }
 0x58d   :  { %v3157_v60 = vadd.f32 %v6900_v52, %v3156_v59 }
 0x58f   :  { %4158 = vmatmul.msk.f32.gmra.mxu2 %vm28_vm0, %v4278_v35  ;;  %v3202_v3 = vmax.f32 %v3157_v60, 0.0 }
 0x591   :  { %v6911_v20 = vsel %vm499_vm1, %v3157_v60, %v3202_v3 }
 0x592   :  { %v3440_v9 = vpop.f32.mrf.mxu2  ;;  %v3271_v14 = vmul.f32 %v6911_v20, %v6911_v20  ;;  %v3234_v48 = vsel %vm907_vm2, %v6911_v20, 0.0 }
 0x593   :  { %3600 = vrot.lane.b32.xlu0 %v3440_v9, %s4294_s29 }
 0x594   :  { %v3159_v4 = vpop.f32.mrf.mxu0  ;;  %v3287_v9 = vsel %vm907_vm2, %v3271_v14, 0.0 }
 0x595   :  { %v3160_v23 = vadd.f32 %v6900_v52, %v3159_v4 }
 0x597   :  { %4159 = vmatmul.msk.f32.gmra.mxu2 %vm28_vm0, %v4279_v6  ;;  %v3203_v41 = vmax.f32 %v3160_v23, 0.0 }
 0x599   :  { %v6920_v19 = vsel %vm499_vm1, %v3160_v23, %v3203_v41 }
 0x59a   :  { %v3443_v36 = vpop.f32.mrf.mxu2  ;;  %v3272_v34 = vmul.f32 %v6920_v19, %v6920_v19  ;;  %v3236_v4 = vsel %vm907_vm2, %v6920_v19, 0.0 }
 0x59b   :  { %3602 = vrot.lane.b32.xlu1 %v3443_v36, %s4294_s29 }
 0x59c   :  { %v3162_v5 = vpop.f32.mrf.mxu0 }
 0x59d   :  { %v3163_v12 = vadd.f32 %v6900_v52, %v3162_v5  ;;  %v3286_v5 = vsel %vm907_vm2, %v3270_v13, 0.0 }
 0x59f   :  { %4160 = vmatmul.msk.f32.gmra.mxu2 %vm28_vm0, %v4280_v58  ;;  %v3204_v25 = vmax.f32 %v3163_v12, 0.0  ;;  %v3235_v58 = vadd.f32 %v3234_v48, %v3233_v54 }
 0x5a1   :  { %v6926_v32 = vsel %vm499_vm1, %v3163_v12, %v3204_v25 }
 0x5a2   :  { %v3446_v26 = vpop.f32.mrf.mxu2  ;;  %v3273_v59 = vmul.f32 %v6926_v32, %v6926_v32 }
 0x5a3   :  { %3604 = vrot.lane.b32.xlu2 %v3446_v26, %s4294_s29  ;;  %v3289_v26 = vsel %vm907_vm2, %v3272_v34, 0.0 }
 0x5a5   :  { %v3165_v33 = vpop.f32.mrf.mxu0 }
 0x5a6   :  { %v3166_v47 = vadd.f32 %v6900_v52, %v3165_v33 }
 0x5a7   :  { %4161 = vmatmul.msk.f32.gmra.mxu2 %vm28_vm0, %v4281_v2 }
 0x5a8   :  { %v3205_v8 = vmax.f32 %v3166_v47, 0.0 }
 0x5aa   :  { %v3449_v42 = vpop.f32.mrf.mxu2  ;;  %v6944_v35 = vsel %vm499_vm1, %v3166_v47, %v3205_v8 }
 0x5ab   :  { %3606 = vrot.lane.b32.xlu0 %v3449_v42, %s4294_s29  ;;  %v3238_v42 = vsel %vm907_vm2, %v6926_v32, 0.0 }
 0x5ad   :  { %v3168_v50 = vpop.f32.mrf.mxu0 }
 0x5ae   :  { %v3169_v27 = vadd.f32 %v6900_v52, %v3168_v50  ;;  %v3274_v50 = vmul.f32 %v6944_v35, %v6944_v35 }
 0x5af   :  { %4162 = vmatmul.msk.f32.gmra.mxu2 %vm28_vm0, %v4282_v21 }
 0x5b0   :  { %v3206_v40 = vmax.f32 %v3169_v27, 0.0 }
 0x5b2   :  { %v6887_v28 = vpop.f32.mrf.mxu2  ;;  %v6954_v33 = vsel %vm499_vm1, %v3169_v27, %v3206_v40 }
 0x5b3   :  { %v3242_v25 = vsel %vm907_vm2, %v6954_v33, 0.0 }
 0x5b5   :  { %v3171_v16 = vpop.f32.mrf.mxu0 }
 0x5b6   :  { %v3172_v7 = vadd.f32 %v6900_v52, %v3171_v16 }
 0x5b7   :  { %4163 = vmatmul.msk.f32.gmra.mxu2 %vm28_vm0, %v4283_v46  ;;  %v3288_v46 = vadd.f32 %v3287_v9, %v3286_v5 }
 0x5b8   :  { %v3207_v6 = vmax.f32 %v3172_v7, 0.0 }
 0x5b9   :  { %v3290_v55 = vadd.f32 %v3289_v26, %v3288_v46 }
 0x5ba   :  { %v6890_v11 = vpop.f32.mrf.mxu2 }
 0x5bd   :  { %v3174_v10 = vpop.f32.mrf.mxu0 }
 0x5be   :  { %v3175_v57 = vadd.f32 %v6900_v52, %v3174_v10  ;;  %v3237_v10 = vadd.f32 %v3236_v4, %v3235_v58 }
 0x5bf   :  { %4164 = vmatmul.msk.f32.gmra.mxu2 %vm28_vm0, %v4284_v37  ;;  %v3291_v37 = vsel %vm907_vm2, %v3273_v59, 0.0 }
 0x5c0   :  { %v3208_v21 = vmax.f32 %v3175_v57, 0.0  ;;  %v3239_v23 = vadd.f32 %v3238_v42, %v3237_v10 }
 0x5c2   :  { %v6893_v61 = vpop.f32.mrf.mxu2  ;;  %v6974_v12 = vsel %vm499_vm1, %v3175_v57, %v3208_v21 }
 0x5c3   :  { %v3277_v34 = vmul.f32 %v6974_v12, %v6974_v12 }
 0x5c5   :  { %v3177_v45 = vpop.f32.mrf.mxu0  ;;  %v3299_v42 = vsel %vm907_vm2, %v3277_v34, 0.0 }
 0x5c6   :  { %v3178_v36 = vadd.f32 %v6900_v52, %v3177_v45  ;;  %v3240_v45 = vsel %vm907_vm2, %v6944_v35, 0.0 }
 0x5c7   :  { %v3241_v47 = vadd.f32 %v3240_v45, %v3239_v23 }
 0x5c9   :  { %v3243_v48 = vadd.f32 %v3242_v25, %v3241_v47 }
 0x5ca   :  { %v3461_v63 = vpop.f32.mrf.mxu2 }
 0x5cb   :  { %3630 = vrot.lane.b32.xlu1 %v3461_v63, %s4295_s21  ;;  %v3275_v63 = vmul.f32 %v6954_v33, %v6954_v33 }
 0x5cd   :  { %v3180_v38 = vpop.f32.mrf.mxu0  ;;  %v3295_v27 = vsel %vm907_vm2, %v3275_v63, 0.0 }
 0x5ce   :  { %v3181_v16 = vadd.f32 %v6900_v52, %v3180_v38  ;;  %v3293_v38 = vsel %vm907_vm2, %v3274_v50, 0.0 }
 0x5d0   :  { %v3210_v3 = vmax.f32 %v3181_v16, 0.0 }
 0x5d2   :  { %v3464_v39 = vpop.f32.mrf.mxu2  ;;  %v6995_v57 = vsel %vm499_vm1, %v3181_v16, %v3210_v3 }
 0x5d3   :  { %3632 = vrot.lane.b32.xlu2 %v3464_v39, %s4295_s21  ;;  %v6968_v39 = vsel %vm499_vm1, %v3172_v7, %v3207_v6  ;;  %v3279_v50 = vmul.f32 %v6995_v57, %v6995_v57  ;;  %v3250_v63 = vsel %vm907_vm2, %v6995_v57, 0.0 }
 0x5d4   :  { %v3244_v13 = vsel %vm907_vm2, %v6968_v39, 0.0 }
 0x5d5   :  { %v3183_v44 = vpop.f32.mrf.mxu0  ;;  %v3303_v3 = vsel %vm907_vm2, %v3279_v50, 0.0 }
 0x5d6   :  { %v3184_v60 = vadd.f32 %v6900_v52, %v3183_v44  ;;  %v3276_v44 = vmul.f32 %v6968_v39, %v6968_v39 }
 0x5d8   :  { %v3211_v14 = vmax.f32 %v3184_v60, 0.0  ;;  %v3297_v4 = vsel %vm907_vm2, %v3276_v44, 0.0 }
 0x5da   :  { %v3467_v49 = vpop.f32.mrf.mxu2  ;;  %v7005_v5 = vsel %vm499_vm1, %v3184_v60, %v3211_v14 }
 0x5db   :  { %3634 = vrot.lane.b32.xlu0 %v3467_v49, %s4295_s21  ;;  %v3209_v49 = vmax.f32 %v3178_v36, 0.0 }
 0x5dd   :  { %v3186_v30 = vpop.f32.mrf.mxu0  ;;  %v6986_v8 = vsel %vm499_vm1, %v3178_v36, %v3209_v49  ;;  %v3245_v36 = vadd.f32 %v3244_v13, %v3243_v48  ;;  %v3280_v49 = vmul.f32 %v7005_v5, %v7005_v5 }
 0x5de   :  { %v3187_v51 = vadd.f32 %v6900_v52, %v3186_v30  ;;  %v3278_v6 = vmul.f32 %v6986_v8, %v6986_v8 }
 0x5e0   :  { %v3212_v54 = vmax.f32 %v3187_v51, 0.0  ;;  %v3301_v45 = vsel %vm907_vm2, %v3278_v6, 0.0 }
 0x5e2   :  { %v3470_v17 = vpop.f32.mrf.mxu2  ;;  %v7015_v46 = vsel %vm499_vm1, %v3187_v51, %v3212_v54  ;;  %v3252_v51 = vsel %vm907_vm2, %v7005_v5, 0.0 }
 0x5e3   :  { %3636 = vrot.lane.b32.xlu1 %v3470_v17, %s4295_s21  ;;  %v3292_v17 = vadd.f32 %v3291_v37, %v3290_v55  ;;  %v3254_v14 = vsel %vm907_vm2, %v7015_v46, 0.0 }
 0x5e5   :  { %v3189_v43 = vpop.f32.mrf.mxu0  ;;  %v3294_v30 = vadd.f32 %v3293_v38, %v3292_v17  ;;  %v3281_v17 = vmul.f32 %v7015_v46, %v7015_v46 }
 0x5e6   :  { %v3190_v7 = vadd.f32 %v6900_v52, %v3189_v43  ;;  %v3246_v43 = vsel %vm907_vm2, %v6974_v12, 0.0 }
 0x5e7   :  { %v3296_v9 = vadd.f32 %v3295_v27, %v3294_v30  ;;  %v3247_v16 = vadd.f32 %v3246_v43, %v3245_v36  ;;  %v3305_v27 = vsel %vm907_vm2, %v3280_v49, 0.0  ;;  %v7053_v43 = vpop.permute.xlu0 %3566 }
 0x5e8   :  { %v3213_v58 = vmax.f32 %v3190_v7, 0.0 }
 0x5e9   :  { %v3298_v21 = vadd.f32 %v3297_v4, %v3296_v9 }
 0x5ea   :  { %v6936_v15 = vpop.f32.mrf.mxu2  ;;  %v7026_v23 = vsel %vm499_vm1, %v3190_v7, %v3213_v58 }
 0x5eb   :  { %v3300_v60 = vadd.f32 %v3299_v42, %v3298_v21  ;;  %v3282_v7 = vmul.f32 %v7026_v23, %v7026_v23  ;;  %v3256_v48 = vsel %vm907_vm2, %v7026_v23, 0.0 }
 0x5ed   :  { %v3192_v2 = vpop.f32.mrf.mxu0  ;;  %v3302_v47 = vadd.f32 %v3301_v45, %v3300_v60  ;;  %v3309_v6 = vsel %vm907_vm2, %v3282_v7, 0.0 }
 0x5ee   :  { %v3193_v59 = vadd.f32 %v6900_v52, %v3192_v2  ;;  %v3248_v2 = vsel %vm907_vm2, %v6986_v8, 0.0 }
 0x5ef   :  { %v3249_v55 = vadd.f32 %v3248_v2, %v3247_v16  ;;  %v3304_v30 = vadd.f32 %v3303_v3, %v3302_v47  ;;  %v7070_v7 = vpop.permute.xlu0 %3572 }
 0x5f0   :  { %v3214_v10 = vmax.f32 %v3193_v59, 0.0 }
 0x5f1   :  { %v3251_v25 = vadd.f32 %v3250_v63, %v3249_v55 }
 0x5f2   :  { %v6977_v41 = vpop.f32.mrf.mxu2  ;;  %v7035_v44 = vsel %vm499_vm1, %v3193_v59, %v3214_v10  ;;  %v3306_v59 = vadd.f32 %v3305_v27, %v3304_v30 }
 0x5f3   :  { %v3253_v13 = vadd.f32 %v3252_v51, %v3251_v25  ;;  %v3283_v54 = vmul.f32 %v7035_v44, %v7035_v44  ;;  %v3258_v36 = vsel %vm907_vm2, %v7035_v44, 0.0 }
 0x5f5   :  { %v3195_v40 = vpop.f32.mrf.mxu0  ;;  %v3255_v9 = vadd.f32 %v3254_v14, %v3253_v13  ;;  %v3311_v21 = vsel %vm907_vm2, %v3283_v54, 0.0 }
 0x5f6   :  { %v3196_v26 = vadd.f32 %v6900_v52, %v3195_v40  ;;  %v3307_v40 = vsel %vm907_vm2, %v3281_v17, 0.0 }
 0x5f7   :  { %v3308_v42 = vadd.f32 %v3307_v40, %v3306_v59  ;;  %v3257_v2 = vadd.f32 %v3256_v48, %v3255_v9  ;;  %v7072_v40 = vpop.permute.xlu1 %3568 }
 0x5f8   :  { %v3215_v38 = vmax.f32 %v3196_v26, 0.0 }
 0x5f9   :  { %v3310_v10 = vadd.f32 %v3309_v6, %v3308_v42  ;;  %v3259_v45 = vadd.f32 %v3258_v36, %v3257_v2 }
 0x5fa   :  { %v7017_v37 = vpop.f32.mrf.mxu2  ;;  %v7044_v34 = vsel %vm499_vm1, %v3196_v26, %v3215_v38 }
 0x5fb   :  { %v3284_v58 = vmul.f32 %v7044_v34, %v7044_v34  ;;  %v3260_v16 = vsel %vm907_vm2, %v7044_v34, 0.0  ;;  %v3312_v60 = vadd.f32 %v3311_v21, %v3310_v10 }
 0x5fc   :  { %v3261_v55 = vadd.f32 %v3260_v16, %v3259_v45 }
 0x5fd   :  { %v3313_v49 = vsel %vm907_vm2, %v3284_v58, 0.0 }
 0x5fe   :  { %v3314_v17 = vadd.f32 %v3313_v49, %v3312_v60 }
 0x5ff   :  { %v3575_v16 = vpop.permute.xlu1 %3574 }
 0x600   :  { %v3722_v60 = vsel %vm907_vm2, %v6691_v62, %v3575_v16 }
 0x602   :  { %v7051_v4 = vpop.f32.mrf.mxu2 }
 0x603   :  { %v3198_v26 = vpop.f32.mrf.mxu0 }
 0x604   :  { %v3199_v50 = vadd.f32 %v6900_v52, %v3198_v26 }
 0x605   :  { %v7075_v26 = vpop.permute.xlu0 %3600 }
 0x606   :  { %v3216_v63 = vmax.f32 %v3199_v50, 0.0 }
 0x608   :  { %v3232_v38 = vsel %vm499_vm1, %v3199_v50, %v3216_v63 }
 0x609   :  { %v3262_v3 = vsel %vm907_vm2, %v3232_v38, 0.0  ;;  %v3285_v51 = vmul.f32 %v3232_v38, %v3232_v38 }
 0x60a   :  { %v3263_v52 = vadd.f32 %v3262_v3, %v3261_v55  ;;  %v3485_v47 = vpop.f32.mrf.mxu2 }
 0x60b   :  { %v3315_v25 = vsel %vm907_vm2, %v3285_v51, 0.0  ;;  %3662 = vrot.lane.b32.xlu0 %v3485_v47, %s4296_s7 }
 0x60c   :  { %v3264_v27 = vrot.slane %v3263_v52, 4  ;;  %v3316_v14 = vadd.f32 %v3315_v25, %v3314_v17 }
 0x60e   :  { %v3265_v30 = vadd.f32 %v3264_v27, %v3263_v52  ;;  %v3317_v13 = vrot.slane %v3316_v14, 4 }
 0x610   :  { %v3266_v48 = vrot.slane %v3265_v30, 2  ;;  %v3318_v54 = vadd.f32 %v3317_v13, %v3316_v14 }
 0x612   :  { %v3267_v59 = vadd.f32 %v3266_v48, %v3265_v30  ;;  %v3319_v9 = vrot.slane %v3318_v54, 2  ;;  %v3488_v6 = vpop.f32.mrf.mxu2 }
 0x613   :  { %3664 = vrot.lane.b32.xlu1 %v3488_v6, %s4296_s7 }
 0x614   :  { %v3268_v36 = vrot.slane %v3267_v59, 1  ;;  %v3320_v58 = vadd.f32 %v3319_v9, %v3318_v54  ;;  %v7093_v54 = vld [vmem:[%s7472_s4 + $0xe9] ss:$0 sm:$0xff] }
 0x616   :  { %v3269_v42 = vadd.f32 %v3268_v36, %v3267_v59  ;;  %v3321_v2 = vrot.slane %v3320_v58, 1 }
 0x618   :  { %v3322_v50 = vadd.f32 %v3321_v2, %v3320_v58  ;;  %v7077_v21 = vmul.f32 0.0078125, %v3269_v42 }
 0x61a   :  { %v3324_v10 = vmul.f32 0.0078125, %v3322_v50  ;;  %v3325_v45 = vmul.f32 %v7077_v21, %v7077_v21  ;;  %v3491_v63 = vpop.f32.mrf.mxu2  ;;  %v3343_v48 = vsub.f32 %v3232_v38, %v7077_v21  ;;  %v3342_v59 = vsub.f32 %v7044_v34, %v7077_v21  ;;  %v7105_v38 = vld [vmem:[%s7472_s4 + $0xea] ss:$0 sm:$0xff] }
 0x61b   :  { %3666 = vrot.lane.b32.xlu2 %v3491_v63, %s4296_s7  ;;  %v3341_v9 = vsub.f32 %v7035_v44, %v7077_v21  ;;  %v3340_v2 = vsub.f32 %v7026_v23, %v7077_v21  ;;  %v3339_v16 = vsub.f32 %v7015_v46, %v7077_v21 }
 0x61c   :  { %v3326_v49 = vsub.f32 %v3324_v10, %v3325_v45 }
 0x61d   :  { %v3607_v55 = vpop.permute.xlu0 %3606 }
 0x61e   :  { %v3327_v3 = vmax.f32 %v3326_v49, 0.0  ;;  %v7085_v51 = vsel %vm2180_vm9, %v3722_v60, %v3607_v55  ;;  %v3338_v49 = vsub.f32 %v7005_v5, %v7077_v21  ;;  %v3336_v5 = vsub.f32 %v6986_v8, %v7077_v21 }
 0x61f   :  { %v3334_v8 = vsub.f32 %v6968_v39, %v7077_v21  ;;  %v3332_v39 = vsub.f32 %v6944_v35, %v7077_v21  ;;  %v3330_v35 = vsub.f32 %v6920_v19, %v7077_v21  ;;  %v3328_v19 = vsub.f32 %v6916_v56, %v7077_v21 }
 0x620   :  { %v3344_v17 = vadd.f32 1e-05, %v3327_v3  ;;  %v3337_v3 = vsub.f32 %v6995_v57, %v7077_v21  ;;  %v3335_v57 = vsub.f32 %v6974_v12, %v7077_v21  ;;  %v3333_v12 = vsub.f32 %v6954_v33, %v7077_v21 }
 0x621   :  { %v3331_v33 = vsub.f32 %v6926_v32, %v7077_v21  ;;  %v3329_v32 = vsub.f32 %v6911_v20, %v7077_v21 }
 0x622   :  { %4208 = vrsqrt.f32 %v3344_v17  ;;  %v3494_v52 = vpop.f32.mrf.mxu2  ;;  %vm3351_vm4 = vweird.f32 %v3344_v17 }
 0x623   :  { %3668 = vrot.lane.b32.xlu0 %v3494_v52, %s4296_s7 }
 0x628   :  { %v4209_v47 = vpop.eup %4208 }
 0x629   :  { %v3346_v25 = vmul.f32 %v4209_v47, %v3344_v17  ;;  %vm3352_vm3 = vweird.f32 %v4209_v47 }
 0x62a   :  { %v3497_v27 = vpop.f32.mrf.mxu2  ;;  %vm3353_vm5 = vmor %vm3351_vm4, %vm3352_vm3 }
 0x62b   :  { %v3347_v14 = vmul.f32 %v4209_v47, %v3346_v25  ;;  %3670 = vrot.lane.b32.xlu1 %v3497_v27, %s4296_s7 }
 0x62d   :  { %v3348_v30 = vmul.f32 0.5, %v3347_v14 }
 0x62f   :  { %v3349_v13 = vsub.f32 1.5, %v3348_v30 }
 0x631   :  { %v3350_v62 = vmul.f32 %v4209_v47, %v3349_v13 }
 0x633   :  { %v7099_v6 = vsel %vm3353_vm5, %v4209_v47, %v3350_v62 }
 0x634   :  { %v3370_v36 = vmul.f32 %v7099_v6, %v3343_v48  ;;  %v3369_v58 = vmul.f32 %v7099_v6, %v3342_v59  ;;  %v3368_v42 = vmul.f32 %v7099_v6, %v3341_v9  ;;  %v3367_v50 = vmul.f32 %v7099_v6, %v3340_v2 }
 0x635   :  { %v3366_v63 = vmul.f32 %v7099_v6, %v3339_v16  ;;  %v3365_v55 = vmul.f32 %v7099_v6, %v3338_v49  ;;  %v3364_v52 = vmul.f32 %v7099_v6, %v3337_v3  ;;  %v3363_v27 = vmul.f32 %v7099_v6, %v3336_v5 }
 0x636   :  { %v3387_v34 = vmul.f32 %v7093_v54, %v3370_v36  ;;  %v3386_v44 = vmul.f32 %v7093_v54, %v3369_v58  ;;  %v3385_v45 = vmul.f32 %v7093_v54, %v3368_v42  ;;  %v3384_v60 = vmul.f32 %v7093_v54, %v3367_v50 }
 0x637   :  { %v3383_v17 = vmul.f32 %v7093_v54, %v3366_v63  ;;  %v3382_v25 = vmul.f32 %v7093_v54, %v3365_v55  ;;  %v3381_v30 = vmul.f32 %v7093_v54, %v3364_v52  ;;  %v3362_v13 = vmul.f32 %v7099_v6, %v3335_v57  ;;  %v4291_v57 = vld [vmem:[%s7473_s2 + $0x30] sm:$0xff] }
 0x638   :  { %v3404_v10 = vadd.f32 %v7105_v38, %v3387_v34  ;;  %v3403_v23 = vadd.f32 %v7105_v38, %v3386_v44  ;;  %v3402_v46 = vadd.f32 %v7105_v38, %v3385_v45  ;;  %v3401_v47 = vadd.f32 %v7105_v38, %v3384_v60 }
 0x639   :  { %v3400_v14 = vadd.f32 %v7105_v38, %v3383_v17  ;;  %v3399_v62 = vadd.f32 %v7105_v38, %v3382_v25  ;;  %v3380_v48 = vmul.f32 %v7093_v54, %v3363_v27  ;;  %v3361_v59 = vmul.f32 %v7099_v6, %v3334_v8  ;;  %v4289_v25 = vld [vmem:[%s7473_s2 + $0x20] sm:$0xff]  ;;  %v4290_v27 = vld [vmem:[%s7473_s2 + $0x28] sm:$0xff] }
 0x63a   :  { %3509 = vmatpush.msra.mxu3 %v3404_v10  ;;  %v3398_v9 = vadd.f32 %v7105_v38, %v3381_v30  ;;  %v3379_v36 = vmul.f32 %v7093_v54, %v3362_v13  ;;  %v3360_v58 = vmul.f32 %v7099_v6, %v3333_v12  ;;  %v3359_v34 = vmul.f32 %v7099_v6, %v3332_v39  ;;  %v7761_v8 = vld [vmem:[#allocation9_spill] sm:$0xff] }
 0x63b   :  { %v3397_v42 = vadd.f32 %v7105_v38, %v3380_v48  ;;  %v3378_v2 = vmul.f32 %v7093_v54, %v3361_v59  ;;  %v3358_v16 = vmul.f32 %v7099_v6, %v3331_v33  ;;  %v3357_v63 = vmul.f32 %v7099_v6, %v3330_v35  ;;  %v7762_v59 = vld [vmem:[#allocation11_spill] sm:$0xff]  ;;  %v3409_v33 = vld [vmem:[%s7472_s4 + $0x110] sm:$0xff] }
 0x63c   :  { %3510 = vmatpush.msra.mxu3 %v3403_v23  ;;  %v3396_v44 = vadd.f32 %v7105_v38, %v3379_v36  ;;  %v3377_v50 = vmul.f32 %v7093_v54, %v3360_v58  ;;  %v3376_v45 = vmul.f32 %v7093_v54, %v3359_v34  ;;  %v3356_v60 = vmul.f32 %v7099_v6, %v3329_v32  ;;  %v3414_v36 = vld [vmem:[%s7472_s4 + $0x138] sm:$0xff]  ;;  %v3500_v58 = vpop.f32.mrf.mxu2 }
 0x63d   :  { %v3395_v10 = vadd.f32 %v7105_v38, %v3378_v2  ;;  %v3375_v23 = vmul.f32 %v7093_v54, %v3358_v16  ;;  %v3374_v3 = vmul.f32 %v7093_v54, %v3357_v63  ;;  %v3556_v12 = vmul.f32 %v6673_v29, %v7762_v59  ;;  %v3411_v2 = vld [vmem:[%s7472_s4 + $0x120] sm:$0xff]  ;;  %v3410_v34 = vld [vmem:[%s7472_s4 + $0x118] sm:$0xff]  ;;  %v3571_v63 = vpop.permute.xlu2 %3570 }
 0x63e   :  { %3511 = vmatpush.msra.mxu3 %v3402_v46  ;;  %v3394_v49 = vadd.f32 %v7105_v38, %v3377_v50  ;;  %v3393_v55 = vadd.f32 %v7105_v38, %v3376_v45  ;;  %v3355_v46 = vmul.f32 %v7099_v6, %v3328_v19  ;;  %v3373_v17 = vmul.f32 %v7093_v54, %v3356_v60  ;;  %v4285_v6 = vld [vmem:[%s7473_s2] sm:$0xff]  ;;  %v3406_v35 = vld [vmem:[%s7472_s4 + $0xf8] sm:$0xff]  ;;  %v3405_v60 = vld [vmem:[%s7472_s4 + $0xf0] sm:$0xff] }
 0x63f   :  { %v3392_v20 = vadd.f32 %v7105_v38, %v3375_v23  ;;  %v3391_v52 = vadd.f32 %v7105_v38, %v3374_v3  ;;  %v3407_v16 = vld [vmem:[%s7472_s4 + $0x100] sm:$0xff] }
 0x640   :  { %3512 = vmatpush.msra.mxu3 %v3401_v47  ;;  %v3372_v5 = vmul.f32 %v7093_v54, %v3355_v46  ;;  %v3390_v56 = vadd.f32 %v7105_v38, %v3373_v17  ;;  %v4286_v47 = vld [vmem:[%s7473_s2 + $0x8] sm:$0xff]  ;;  %v4287_v54 = vld [vmem:[%s7473_s2 + $0x10] sm:$0xff] }
 0x642   :  { %3513 = vmatpush.msra.mxu3 %v3400_v14  ;;  %v3389_v21 = vadd.f32 %v7105_v38, %v3372_v5  ;;  %v4288_v38 = vld [vmem:[%s7473_s2 + $0x18] sm:$0xff] }
 0x643   :  { %v4292_v14 = vld [vmem:[%s7473_s2 + $0x38] sm:$0xff] }
 0x644   :  { %3514 = vmatpush.msra.mxu3 %v3399_v62  ;;  %v3555_v62 = vmul.f32 %v6681_v0, %v7761_v8 }
 0x645   :  { %v3599_v23 = vpop.permute.xlu2 %3598 }
 0x646   :  { %3515 = vmatpush.msra.mxu3 %v3398_v9 }
 0x648   :  { %3516 = vmatpush.msra.mxu3 %v3397_v42  ;;  %v3412_v42 = vld [vmem:[%s7472_s4 + $0x128] sm:$0xff] }
 0x64a   :  { %3517 = vmatpush.msra.mxu3 %v3396_v44  ;;  %v3503_v44 = vpop.f32.mrf.mxu2 }
 0x64c   :  { %3518 = vmatpush.msra.mxu3 %v3395_v10  ;;  %v7763_v10 = vld [vmem:[#allocation8_spill] sm:$0xff] }
 0x64d   :  { %v3557_v45 = vmul.f32 %v6666_v53, %v7763_v10  ;;  %v3635_v3 = vpop.permute.xlu0 %3634 }
 0x64e   :  { %3519 = vmatpush.msra.mxu3 %v3394_v49 }
 0x650   :  { %3520 = vmatpush.msra.mxu3 %v3393_v55  ;;  %v3603_v55 = vpop.permute.xlu1 %3602 }
 0x652   :  { %3521 = vmatpush.msra.mxu3 %v3392_v20  ;;  %v3506_v49 = vpop.f32.mrf.mxu2 }
 0x654   :  { %3522 = vmatpush.msra.mxu3 %v3391_v52 }
 0x656   :  { %3523 = vmatpush.msra.mxu3 %v3390_v56 }
 0x658   :  { %3524 = vmatpush.msra.mxu3 %v3389_v21  ;;  %v3631_v20 = vpop.permute.xlu1 %3630 }
 0x659   :  { %3525 = vmatmul.f32.vlgmr.msra.gmra.mxu3 %v4285_v6 }
 0x661   :  { %3528 = vmatmul.f32.gmra.mxu3 %v4286_v47  ;;  %v3637_v47 = vpop.permute.xlu1 %3636 }
 0x669   :  { %3531 = vmatmul.f32.gmra.mxu3 %v4287_v54 }
 0x671   :  { %3534 = vmatmul.f32.gmra.mxu3 %v4288_v38 }
 0x679   :  { %3537 = vmatmul.f32.gmra.mxu3 %v4289_v25 }
 0x67d   :  { %v3663_v17 = vpop.permute.xlu0 %3662 }
 0x681   :  { %3540 = vmatmul.f32.gmra.mxu3 %v4290_v27 }
 0x685   :  { %v3665_v25 = vpop.permute.xlu1 %3664 }
 0x689   :  { %3543 = vmatmul.f32.gmra.mxu3 %v4291_v57 }
 0x691   :  { %3546 = vmatmul.f32.gmra.mxu3 %v4292_v14 }
 0x695   :  { %v3669_v38 = vpop.permute.xlu0 %3668 }
 0x6dc   :  { %v3526_v30 = vpop.f32.mrf.mxu3 }
 0x6dd   :  { %3694 = vrot.lane.b32.xlu2 %v3526_v30, %s4297_s1 }
 0x6e4   :  { %v3529_v13 = vpop.f32.mrf.mxu3 }
 0x6e5   :  { %3638 = vrot.lane.b32.xlu2 %v6936_v15, %s4295_s21  ;;  %3696 = vrot.lane.b32.xlu0 %v3529_v13, %s4297_s1  ;;  %v3416_v15 = vld [vmem:[%s7472_s4 + $0x148] sm:$0xff]  ;;  %v3671_v13 = vpop.permute.xlu1 %3670 }
 0x6e6   :  { %3787 = vmatpush.msrb.mxu0 %v3416_v15  ;;  %v3721_v15 = vsel %vm907_vm2, %v6694_v1, %v7070_v7 }
 0x6ec   :  { %v3532_v48 = vpop.f32.mrf.mxu3 }
 0x6ed   :  { %3576 = vrot.lane.b32.xlu2 %v3555_v62, %s4293_s0  ;;  %3640 = vrot.lane.b32.xlu0 %v6977_v41, %s4295_s21  ;;  %v3415_v41 = vld [vmem:[%s7472_s4 + $0x140] sm:$0xff]  ;;  %v3720_v62 = vsel %vm907_vm2, %v6697_v24, %v3571_v63 }
 0x6ee   :  { %3698 = vrot.lane.b32.xlu1 %v3532_v48, %s4297_s1  ;;  %3788 = vmatpush.msrb.mxu0 %v3415_v41  ;;  %v3728_v48 = vsel %vm2180_vm9, %v3720_v62, %v3603_v55 }
 0x6f0   :  { %3789 = vmatpush.msrb.mxu0 %v3414_v36 }
 0x6f4   :  { %v3535_v9 = vpop.f32.mrf.mxu3 }
 0x6f5   :  { %3578 = vrot.lane.b32.xlu0 %v3556_v12, %s4293_s0  ;;  %3700 = vrot.lane.b32.xlu2 %v3535_v9, %s4297_s1 }
 0x6f6   :  { %3608 = vrot.lane.b32.xlu1 %v6887_v28, %s4294_s29  ;;  %v3413_v28 = vld [vmem:[%s7472_s4 + $0x130] sm:$0xff] }
 0x6f7   :  { %3790 = vmatpush.msrb.mxu0 %v3413_v28 }
 0x6f9   :  { %3791 = vmatpush.msrb.mxu0 %v3412_v42 }
 0x6fb   :  { %3792 = vmatpush.msrb.mxu0 %v3411_v2 }
 0x6fc   :  { %v3538_v39 = vpop.f32.mrf.mxu3 }
 0x6fd   :  { %3672 = vrot.lane.b32.xlu2 %v3500_v58, %s4296_s7  ;;  %3702 = vrot.lane.b32.xlu0 %v3538_v39, %s4297_s1 }
 0x6fe   :  { %3642 = vrot.lane.b32.xlu1 %v7017_v37, %s4295_s21  ;;  %3793 = vmatpush.msrb.mxu0 %v3410_v34  ;;  %v3408_v37 = vld [vmem:[%s7472_s4 + $0x108] sm:$0xff] }
 0x700   :  { %3794 = vmatpush.msrb.mxu0 %v3409_v33 }
 0x702   :  { %3795 = vmatpush.msrb.mxu0 %v3408_v37 }
 0x704   :  { %v3541_v50 = vpop.f32.mrf.mxu3  ;;  %3796 = vmatpush.msrb.mxu0 %v3407_v16 }
 0x705   :  { %3610 = vrot.lane.b32.xlu2 %v6890_v11, %s4294_s29  ;;  %3674 = vrot.lane.b32.xlu0 %v3503_v44, %s4296_s7 }
 0x706   :  { %3704 = vrot.lane.b32.xlu1 %v3541_v50, %s4297_s1  ;;  %3797 = vmatpush.msrb.mxu0 %v3406_v35 }
 0x708   :  { %3798 = vmatpush.msrb.mxu0 %v3405_v60 }
 0x70c   :  { %v3544_v11 = vpop.f32.mrf.mxu3 }
 0x70d   :  { %3612 = vrot.lane.b32.xlu0 %v6893_v61, %s4294_s29  ;;  %3706 = vrot.lane.b32.xlu2 %v3544_v11, %s4297_s1  ;;  %v3605_v61 = vpop.permute.xlu2 %3604 }
 0x70e   :  { %3580 = vrot.lane.b32.xlu1 %v3557_v45, %s4293_s0  ;;  %v3729_v41 = vsel %vm2180_vm9, %v3721_v15, %v3605_v61 }
 0x70f   :  { %v3737_v24 = vsel %vm2189_vm10, %v3729_v41, %v3637_v47 }
 0x710   :  { %v3745_v58 = vsel %vm28_vm0, %v3737_v24, %v3669_v38 }
 0x714   :  { %v3547_v32 = vpop.f32.mrf.mxu3 }
 0x715   :  { %3644 = vrot.lane.b32.xlu2 %v7051_v4, %s4295_s21  ;;  %3708 = vrot.lane.b32.xlu0 %v3547_v32, %s4297_s1  ;;  %v3633_v19 = vpop.permute.xlu2 %3632  ;;  %v3718_v4 = vsel %vm907_vm2, %v6710_v22, %v7053_v43  ;;  %v3719_v22 = vsel %vm907_vm2, %v6703_v18, %v7072_v40  ;;  %v3736_v18 = vsel %vm2189_vm10, %v3728_v48, %v3635_v3 }
 0x716   :  { %3676 = vrot.lane.b32.xlu1 %v3506_v49, %s4296_s7  ;;  %v3726_v52 = vsel %vm2180_vm9, %v3718_v4, %v3599_v23  ;;  %v3727_v43 = vsel %vm2180_vm9, %v3719_v22, %v7075_v26 }
 0x717   :  { %v3734_v5 = vsel %vm2189_vm10, %v3726_v52, %v3631_v20  ;;  %v3735_v57 = vsel %vm2189_vm10, %v3727_v43, %v3633_v19 }
 0x718   :  { %v3742_v56 = vsel %vm28_vm0, %v3734_v5, %v3663_v17  ;;  %v3743_v14 = vsel %vm28_vm0, %v3735_v57, %v3665_v25 }
 0x71d   :  { %v3667_v46 = vpop.permute.xlu2 %3666 }
 0x71e   :  { %v3744_v59 = vsel %vm28_vm0, %v3736_v18, %v3667_v46 }
 0x737   :  { %v3695_v21 = vpop.permute.xlu2 %3694 }
 0x738   :  { %v3750_v6 = vsel %vm2206_vm11, %v3742_v56, %v3695_v21 }
 0x739   :  { %4165 = vmatmul.msk.f32.vlgmr.msrb.gmra.mxu0 %vm2216_vm12, %v3750_v6  ;;  %v4198_v6 = vld [vmem:[%s7472_s4 + $0x150] ss:$0 sm:$0xff] }
 0x73f   :  { %v3639_v54 = vpop.permute.xlu2 %3638 }
 0x740   :  { %v3738_v2 = vsel %vm2189_vm10, %v7085_v51, %v3639_v54 }
 0x741   :  { %v3746_v33 = vsel %vm28_vm0, %v3738_v2, %v3671_v13 }
 0x747   :  { %v3577_v27 = vpop.permute.xlu2 %3576 }
 0x748   :  { %v3723_v44 = vsel %vm907_vm2, %v6681_v0, %v3577_v27 }
 0x74f   :  { %v3701_v40 = vpop.permute.xlu2 %3700 }
 0x750   :  { %v3753_v39 = vsel %vm2206_vm11, %v3745_v58, %v3701_v40 }
 0x757   :  { %v3697_v30 = vpop.permute.xlu0 %3696  ;;  %v3673_v42 = vpop.permute.xlu2 %3672 }
 0x758   :  { %v3751_v8 = vsel %vm2206_vm11, %v3743_v14, %v3697_v30 }
 0x759   :  { %4166 = vmatmul.msk.f32.gmra.mxu0 %vm2216_vm12, %v3751_v8 }
 0x75f   :  { %v3641_v26 = vpop.permute.xlu0 %3640  ;;  %v3611_v37 = vpop.permute.xlu2 %3610 }
 0x760   :  { %v3699_v12 = vpop.permute.xlu1 %3698 }
 0x761   :  { %v3752_v9 = vsel %vm2206_vm11, %v3744_v59, %v3699_v12 }
 0x762   :  { %4167 = vmatmul.msk.f32.gmra.mxu0 %vm2216_vm12, %v3752_v9 }
 0x767   :  { %v3579_v36 = vpop.permute.xlu0 %3578  ;;  %v3707_v63 = vpop.permute.xlu2 %3706 }
 0x768   :  { %v3609_v28 = vpop.permute.xlu1 %3608  ;;  %v3724_v10 = vsel %vm907_vm2, %v6673_v29, %v3579_v36 }
 0x769   :  { %v3731_v50 = vsel %vm2180_vm9, %v3723_v44, %v3609_v28  ;;  %v3732_v0 = vsel %vm2180_vm9, %v3724_v10, %v3611_v37 }
 0x76a   :  { %4168 = vmatmul.msk.f32.gmra.mxu0 %vm2216_vm12, %v3753_v39  ;;  %v3739_v16 = vsel %vm2189_vm10, %v3731_v50, %v3641_v26 }
 0x76b   :  { %v3747_v11 = vsel %vm28_vm0, %v3739_v16, %v3673_v42 }
 0x76f   :  { %v3703_v34 = vpop.permute.xlu0 %3702  ;;  %v3645_v55 = vpop.permute.xlu2 %3644 }
 0x770   :  { %v3754_v1 = vsel %vm2206_vm11, %v3746_v33, %v3703_v34  ;;  %v3643_v7 = vpop.permute.xlu1 %3642 }
 0x771   :  { %v3740_v32 = vsel %vm2189_vm10, %v3732_v0, %v3643_v7 }
 0x772   :  { %4169 = vmatmul.msk.f32.gmra.mxu0 %vm2216_vm12, %v3754_v1 }
 0x777   :  { %v3675_v35 = vpop.permute.xlu0 %3674 }
 0x778   :  { %v3705_v51 = vpop.permute.xlu1 %3704  ;;  %v3748_v49 = vsel %vm28_vm0, %v3740_v32, %v3675_v35 }
 0x779   :  { %v3755_v45 = vsel %vm2206_vm11, %v3747_v11, %v3705_v51  ;;  %v3756_v61 = vsel %vm2206_vm11, %v3748_v49, %v3707_v63 }
 0x77a   :  { %4170 = vmatmul.msk.f32.gmra.mxu0 %vm2216_vm12, %v3755_v45 }
 0x77f   :  { %v3613_v23 = vpop.permute.xlu0 %3612 }
 0x780   :  { %v3581_v60 = vpop.permute.xlu1 %3580 }
 0x781   :  { %v3725_v19 = vsel %vm907_vm2, %v6666_v53, %v3581_v60 }
 0x782   :  { %4171 = vmatmul.msk.f32.gmra.mxu0 %vm2216_vm12, %v3756_v61  ;;  %v3733_v29 = vsel %vm2180_vm9, %v3725_v19, %v3613_v23 }
 0x783   :  { %v3741_v46 = vsel %vm2189_vm10, %v3733_v29, %v3645_v55 }
 0x787   :  { %v3709_v3 = vpop.permute.xlu0 %3708 }
 0x788   :  { %v3677_v20 = vpop.permute.xlu1 %3676 }
 0x789   :  { %v3749_v4 = vsel %vm28_vm0, %v3741_v46, %v3677_v20 }
 0x78a   :  { %v3757_v17 = vsel %vm2206_vm11, %v3749_v4, %v3709_v3 }
 0x78b   :  { %4172 = vmatmul.msk.f32.gmra.mxu0 %vm2216_vm12, %v3757_v17 }
 0x7b6   :  { %v3800_v52 = vpop.f32.mrf.mxu0 }
 0x7b7   :  { %v3801_v54 = vadd.f32 %v4198_v6, %v3800_v52 }
 0x7b9   :  { %v3824_v27 = vmax.f32 %v3801_v54, 0.0 }
 0x7bb   :  { %v7341_v62 = vsel %vm499_vm1, %v3801_v54, %v3824_v27 }
 0x7bc   :  { %v3861_v9 = vmul.f32 %v7341_v62, %v7341_v62  ;;  %v3840_v36 = vsel %vm907_vm2, %v7341_v62, 0.0 }
 0x7be   :  { %v3869_v1 = vsel %vm907_vm2, %v3861_v9, 0.0 }
 0x7d6   :  { %v3803_v5 = vpop.f32.mrf.mxu0 }
 0x7d7   :  { %v3804_v47 = vadd.f32 %v4198_v6, %v3803_v5 }
 0x7d9   :  { %v3825_v25 = vmax.f32 %v3804_v47, 0.0 }
 0x7db   :  { %v7337_v30 = vsel %vm499_vm1, %v3804_v47, %v3825_v25 }
 0x7dc   :  { %v3862_v40 = vmul.f32 %v7337_v30, %v7337_v30  ;;  %v3841_v15 = vsel %vm907_vm2, %v7337_v30, 0.0 }
 0x7dd   :  { %v3842_v34 = vadd.f32 %v3841_v15, %v3840_v36 }
 0x7de   :  { %v3870_v28 = vsel %vm907_vm2, %v3862_v40, 0.0 }
 0x7df   :  { %v3806_v56 = vpop.f32.mrf.mxu0  ;;  %v3871_v37 = vadd.f32 %v3870_v28, %v3869_v1 }
 0x7e0   :  { %v3807_v38 = vadd.f32 %v4198_v6, %v3806_v56 }
 0x7e2   :  { %v3826_v57 = vmax.f32 %v3807_v38, 0.0 }
 0x7e4   :  { %v7345_v48 = vsel %vm499_vm1, %v3807_v38, %v3826_v57 }
 0x7e5   :  { %v3863_v41 = vmul.f32 %v7345_v48, %v7345_v48  ;;  %v3843_v39 = vsel %vm907_vm2, %v7345_v48, 0.0 }
 0x7e6   :  { %v3844_v16 = vadd.f32 %v3843_v39, %v3842_v34 }
 0x7e7   :  { %v3809_v21 = vpop.f32.mrf.mxu0  ;;  %v3872_v7 = vsel %vm907_vm2, %v3863_v41, 0.0 }
 0x7e8   :  { %v3810_v22 = vadd.f32 %v4198_v6, %v3809_v21  ;;  %v3873_v45 = vadd.f32 %v3872_v7, %v3871_v37 }
 0x7ea   :  { %v3827_v13 = vmax.f32 %v3810_v22, 0.0 }
 0x7ec   :  { %v7351_v26 = vsel %vm499_vm1, %v3810_v22, %v3827_v13 }
 0x7ed   :  { %v3864_v42 = vmul.f32 %v7351_v26, %v7351_v26  ;;  %v3845_v44 = vsel %vm907_vm2, %v7351_v26, 0.0 }
 0x7ee   :  { %v3846_v0 = vadd.f32 %v3845_v44, %v3844_v16 }
 0x7ef   :  { %v3812_v53 = vpop.f32.mrf.mxu0  ;;  %v3874_v11 = vsel %vm907_vm2, %v3864_v42, 0.0 }
 0x7f0   :  { %v3813_v14 = vadd.f32 %v4198_v6, %v3812_v53  ;;  %v3875_v60 = vadd.f32 %v3874_v11, %v3873_v45 }
 0x7f2   :  { %v3828_v18 = vmax.f32 %v3813_v14, 0.0 }
 0x7f4   :  { %v7363_v58 = vsel %vm499_vm1, %v3813_v14, %v3828_v18  ;;  %v3940_v18 = vld [vmem:[%s7472_s4 + $0x1c0] sm:$0xff] }
 0x7f5   :  { %v3865_v50 = vmul.f32 %v7363_v58, %v7363_v58  ;;  %v3847_v51 = vsel %vm907_vm2, %v7363_v58, 0.0 }
 0x7f6   :  { %v3848_v61 = vadd.f32 %v3847_v51, %v3846_v0  ;;  %v4200_v51 = vld [vmem:[%s7472_s4 + $0x152] ss:$0 sm:$0xff] }
 0x7f7   :  { %v3815_v43 = vpop.f32.mrf.mxu0  ;;  %v3876_v63 = vsel %vm907_vm2, %v3865_v50, 0.0 }
 0x7f8   :  { %v3816_v8 = vadd.f32 %v4198_v6, %v3815_v43  ;;  %v3877_v3 = vadd.f32 %v3876_v63, %v3875_v60 }
 0x7fa   :  { %v3829_v59 = vmax.f32 %v3816_v8, 0.0 }
 0x7fc   :  { %v7372_v33 = vsel %vm499_vm1, %v3816_v8, %v3829_v59  ;;  %v3941_v8 = vld [vmem:[%s7472_s4 + $0x1c8] sm:$0xff] }
 0x7fd   :  { %v3866_v10 = vmul.f32 %v7372_v33, %v7372_v33  ;;  %v3849_v32 = vsel %vm907_vm2, %v7372_v33, 0.0  ;;  %3982 = vmatpush.msrb.mxu3 %v3941_v8 }
 0x7fe   :  { %v3850_v46 = vadd.f32 %v3849_v32, %v3848_v61 }
 0x7ff   :  { %v3818_v12 = vpop.f32.mrf.mxu0  ;;  %v3878_v29 = vsel %vm907_vm2, %v3866_v10, 0.0  ;;  %3983 = vmatpush.msrb.mxu3 %v3940_v18 }
 0x800   :  { %v3819_v24 = vadd.f32 %v4198_v6, %v3818_v12  ;;  %v3879_v17 = vadd.f32 %v3878_v29, %v3877_v3 }
 0x802   :  { %v3830_v2 = vmax.f32 %v3819_v24, 0.0 }
 0x804   :  { %v7382_v35 = vsel %vm499_vm1, %v3819_v24, %v3830_v2 }
 0x805   :  { %v3867_v49 = vmul.f32 %v7382_v35, %v7382_v35  ;;  %v3851_v55 = vsel %vm907_vm2, %v7382_v35, 0.0 }
 0x806   :  { %v3852_v52 = vadd.f32 %v3851_v55, %v3850_v46 }
 0x807   :  { %v3880_v4 = vsel %vm907_vm2, %v3867_v49, 0.0 }
 0x808   :  { %v3821_v23 = vpop.f32.mrf.mxu0  ;;  %v3881_v53 = vadd.f32 %v3880_v4, %v3879_v17 }
 0x809   :  { %v3822_v19 = vadd.f32 %v4198_v6, %v3821_v23 }
 0x80b   :  { %v3831_v20 = vmax.f32 %v3822_v19, 0.0 }
 0x80d   :  { %v7400_v5 = vsel %vm499_vm1, %v3822_v19, %v3831_v20 }
 0x80e   :  { %v3853_v56 = vsel %vm907_vm2, %v7400_v5, 0.0  ;;  %v3868_v21 = vmul.f32 %v7400_v5, %v7400_v5 }
 0x80f   :  { %v3854_v6 = vadd.f32 %v3853_v56, %v3852_v52 }
 0x810   :  { %v3882_v47 = vsel %vm907_vm2, %v3868_v21, 0.0 }
 0x811   :  { %v3855_v54 = vrot.slane %v3854_v6, 4  ;;  %v3883_v38 = vadd.f32 %v3882_v47, %v3881_v53 }
 0x813   :  { %v3856_v25 = vadd.f32 %v3855_v54, %v3854_v6  ;;  %v3884_v22 = vrot.slane %v3883_v38, 4  ;;  %v4201_v6 = vld [vmem:[%s7472_s4 + $0x1d0] ss:$0 sm:$0xff] }
 0x815   :  { %v3857_v43 = vrot.slane %v3856_v25, 2  ;;  %v3885_v27 = vadd.f32 %v3884_v22, %v3883_v38 }
 0x817   :  { %v3858_v57 = vadd.f32 %v3857_v43, %v3856_v25  ;;  %v3886_v31 = vrot.slane %v3885_v27, 2 }
 0x819   :  { %v3859_v14 = vrot.slane %v3858_v57, 1  ;;  %v3887_v13 = vadd.f32 %v3886_v31, %v3885_v27 }
 0x81b   :  { %v3860_v40 = vadd.f32 %v3859_v14, %v3858_v57  ;;  %v3888_v59 = vrot.slane %v3887_v13, 1 }
 0x81d   :  { %v3889_v12 = vadd.f32 %v3888_v59, %v3887_v13  ;;  %v3890_v9 = vmul.f32 0.015625, %v3860_v40 }
 0x81f   :  { %v3891_v15 = vmul.f32 0.015625, %v3889_v12  ;;  %v3892_v41 = vmul.f32 %v3890_v9, %v3890_v9  ;;  %v3902_v24 = vsub.f32 %v7400_v5, %v3890_v9  ;;  %v3900_v28 = vsub.f32 %v7372_v33, %v3890_v9  ;;  %v4199_v33 = vld [vmem:[%s7472_s4 + $0x151] ss:$0 sm:$0xff] }
 0x820   :  { %v3901_v39 = vsub.f32 %v7382_v35, %v3890_v9  ;;  %v3895_v16 = vsub.f32 %v7341_v62, %v3890_v9  ;;  %v3896_v45 = vsub.f32 %v7337_v30, %v3890_v9  ;;  %v3897_v62 = vsub.f32 %v7345_v48, %v3890_v9 }
 0x821   :  { %v3893_v36 = vsub.f32 %v3891_v15, %v3892_v41  ;;  %v3898_v61 = vsub.f32 %v7351_v26, %v3890_v9  ;;  %v3899_v30 = vsub.f32 %v7363_v58, %v3890_v9 }
 0x823   :  { %v3894_v42 = vmax.f32 %v3893_v36, 0.0 }
 0x825   :  { %v3903_v2 = vadd.f32 1e-05, %v3894_v42 }
 0x827   :  { %4210 = vrsqrt.f32 %v3903_v2  ;;  %vm3910_vm1 = vweird.f32 %v3903_v2 }
 0x82d   :  { %v4211_v34 = vpop.eup %4210 }
 0x82e   :  { %v3905_v1 = vmul.f32 %v4211_v34, %v3903_v2  ;;  %vm3911_vm0 = vweird.f32 %v4211_v34 }
 0x82f   :  { %vm3912_vm6 = vmor %vm3910_vm1, %vm3911_vm0 }
 0x830   :  { %v3906_v7 = vmul.f32 %v4211_v34, %v3905_v1 }
 0x832   :  { %v3907_v44 = vmul.f32 0.5, %v3906_v7 }
 0x834   :  { %v3908_v50 = vsub.f32 1.5, %v3907_v44 }
 0x836   :  { %v3909_v37 = vmul.f32 %v4211_v34, %v3908_v50 }
 0x838   :  { %v3913_v11 = vsel %vm3912_vm6, %v4211_v34, %v3909_v37 }
 0x839   :  { %v3914_v35 = vmul.f32 %v3913_v11, %v3895_v16  ;;  %v3915_v63 = vmul.f32 %v3913_v11, %v3896_v45  ;;  %v3916_v23 = vmul.f32 %v3913_v11, %v3897_v62  ;;  %v3917_v29 = vmul.f32 %v3913_v11, %v3898_v61 }
 0x83a   :  { %v3918_v46 = vmul.f32 %v3913_v11, %v3899_v30  ;;  %v3919_v4 = vmul.f32 %v3913_v11, %v3900_v28  ;;  %v3920_v5 = vmul.f32 %v3913_v11, %v3901_v39  ;;  %v3921_v56 = vmul.f32 %v3913_v11, %v3902_v24 }
 0x83b   :  { %v3923_v10 = vmul.f32 %v4199_v33, %v3914_v35  ;;  %v3924_v32 = vmul.f32 %v4199_v33, %v3915_v63  ;;  %v3925_v60 = vmul.f32 %v4199_v33, %v3916_v23  ;;  %v3926_v55 = vmul.f32 %v4199_v33, %v3917_v29 }
 0x83c   :  { %v3927_v20 = vmul.f32 %v4199_v33, %v3918_v46  ;;  %v3928_v17 = vmul.f32 %v4199_v33, %v3919_v4  ;;  %v3929_v26 = vmul.f32 %v4199_v33, %v3920_v5  ;;  %v3930_v58 = vmul.f32 %v4199_v33, %v3921_v56 }
 0x83d   :  { %v3932_v0 = vadd.f32 %v4200_v51, %v3923_v10  ;;  %v3933_v49 = vadd.f32 %v4200_v51, %v3924_v32  ;;  %v3934_v19 = vadd.f32 %v4200_v51, %v3925_v60  ;;  %v3935_v3 = vadd.f32 %v4200_v51, %v3926_v55 }
 0x83e   :  { %v3936_v48 = vadd.f32 %v4200_v51, %v3927_v20  ;;  %v3937_v52 = vadd.f32 %v4200_v51, %v3928_v17  ;;  %v3938_v21 = vadd.f32 %v4200_v51, %v3929_v26  ;;  %v3939_v53 = vadd.f32 %v4200_v51, %v3930_v58 }
 0x83f   :  { %4173 = vmatmul.msk.f32.vlgmr.msrb.gmra.mxu3 %vm907_vm2, %v3932_v0 }
 0x847   :  { %4174 = vmatmul.msk.f32.gmra.mxu3 %vm907_vm2, %v3933_v49 }
 0x84f   :  { %4175 = vmatmul.msk.f32.gmra.mxu3 %vm907_vm2, %v3934_v19 }
 0x857   :  { %4176 = vmatmul.msk.f32.gmra.mxu3 %vm907_vm2, %v3935_v3 }
 0x85f   :  { %4177 = vmatmul.msk.f32.gmra.mxu3 %vm907_vm2, %v3936_v48 }
 0x867   :  { %4178 = vmatmul.msk.f32.gmra.mxu3 %vm907_vm2, %v3937_v52 }
 0x86f   :  { %4179 = vmatmul.msk.f32.gmra.mxu3 %vm907_vm2, %v3938_v21 }
 0x877   :  { %4180 = vmatmul.msk.f32.gmra.mxu3 %vm907_vm2, %v3939_v53 }
 0x8c2   :  { %v3985_v47 = vpop.f32.mrf.mxu3 }
 0x8c3   :  { %v3986_v54 = vadd.f32 %v4201_v6, %v3985_v47 }
 0x8c5   :  { %4009 = vst.msk [vmem:[%s7475_s5] sm:$0xff] %vm907_vm2, %v3986_v54 }
 0x8ca   :  { %v3988_v38 = vpop.f32.mrf.mxu3 }
 0x8cb   :  { %v3989_v25 = vadd.f32 %v4201_v6, %v3988_v38 }
 0x8cd   :  { %4010 = vst.msk [vmem:[%s7475_s5 + $0x8] sm:$0xff] %vm907_vm2, %v3989_v25 }
 0x8d2   :  { %v3991_v22 = vpop.f32.mrf.mxu3 }
 0x8d3   :  { %v3992_v43 = vadd.f32 %v4201_v6, %v3991_v22 }
 0x8d5   :  { %4011 = vst.msk [vmem:[%s7475_s5 + $0x10] sm:$0xff] %vm907_vm2, %v3992_v43 }
 0x8da   :  { %v3994_v27 = vpop.f32.mrf.mxu3 }
 0x8db   :  { %v3995_v57 = vadd.f32 %v4201_v6, %v3994_v27 }
 0x8dd   :  { %4012 = vst.msk [vmem:[%s7475_s5 + $0x18] sm:$0xff] %vm907_vm2, %v3995_v57 }
 0x8e2   :  { %v3997_v31 = vpop.f32.mrf.mxu3 }
 0x8e3   :  { %v3998_v14 = vadd.f32 %v4201_v6, %v3997_v31 }
 0x8e5   :  { %4013 = vst.msk [vmem:[%s7475_s5 + $0x20] sm:$0xff] %vm907_vm2, %v3998_v14 }
 0x8ea   :  { %v4000_v13 = vpop.f32.mrf.mxu3 }
 0x8eb   :  { %v4001_v8 = vadd.f32 %v4201_v6, %v4000_v13 }
 0x8ed   :  { %4014 = vst.msk [vmem:[%s7475_s5 + $0x28] sm:$0xff] %vm907_vm2, %v4001_v8 }
 0x8f2   :  { %v4003_v18 = vpop.f32.mrf.mxu3 }
 0x8f3   :  { %v4004_v40 = vadd.f32 %v4201_v6, %v4003_v18 }
 0x8f5   :  { %4015 = vst.msk [vmem:[%s7475_s5 + $0x30] sm:$0xff] %vm907_vm2, %v4004_v40 }
 0x8fa   :  { %v4006_v59 = vpop.f32.mrf.mxu3 }
 0x8fb   :  { %v4007_v12 = vadd.f32 %v4201_v6, %v4006_v59 }
 0x8fd   :  { %4016 = vst.msk [vmem:[%s7475_s5 + $0x38] sm:$0xff] %vm907_vm2, %v4007_v12 }

</bundles_post_ra>
